<compile_context>
chip_gen: v6e
topology: v6e:2x2x1
jax: 0.10.0
libtpu: 0.0.40
codegen_flags: <defaults>
</compile_context>

<pallas_src>
import jax
import jax.numpy as jnp
from jax import lax
from jax.experimental import pallas as pl
from jax.experimental.pallas import tpu as pltpu

INPUT_SIZE = 1
HIDDEN = 50          # real hidden size (PyTorch)
NUM_LAYERS = 2       # hard-wired: two explicit fused layers in the kernel
OUTPUT = 1

HP = 128             # hidden padded to one full lane block
GH = 2 * HP          # per-gate width covering both layers: [layer0 | layer1]
GG = 4 * GH          # 4 gates -> 1024 columns, order [i, f, o, g]
OUT_PAD = 128        # FC output padded to one full lane block

_MAX_STATIC_UNROLL = 64   # fully unroll recurrence with static slices up to here


def _make_kernel(seq_len, bp):
    """Build the kernel closure for static (T, BP)."""
    T = seq_len
    BP = bp

    def kernel(x_ref, w0_ref, b0_ref, bsum_ref, wbig_ref, wfc_ref, bfc_ref, out_ref):
        # x_ref:   (BP, T_pad)   lane-dense input, zero padded past T
        # w0_ref:  (1, GG)       layer-0 input weights, gate-interleaved, zero padded
        # b0_ref:  (1, GG)       layer-0 bias (ih+hh), zeros in layer-1 / padded lanes
        # bsum_ref:(1, GG)       b0 + b1 (steady-state bias for steps >= 1)
        # wbig:    (2*HP, GG)    bf16; rows [0:HP]=h0->{whh0,wih1}, [HP:2HP]=h1->{0,whh1}
        # wfc:     (HP, OUT_PAD) f32, only [:HIDDEN, :OUTPUT] nonzero
        # bfc:     (1, OUT_PAD)
        wbig = wbig_ref[...]                 # bf16, resident across the recurrence
        w0 = w0_ref[...]                     # (1, GG) f32
        b0 = b0_ref[...]
        bsum = bsum_ref[...]
        x_all = x_ref[...].astype(jnp.float32)   # (BP, T_pad)

        def gates(zz, c_all):
            # Gate column order [i, f, o | g]: one sigmoid + one tanh call site.
            sg = jax.nn.sigmoid(zz[:, :3 * GH])
            g = jnp.tanh(zz[:, 3 * GH:])
            i_ = sg[:, 0 * GH:1 * GH]
            f_ = sg[:, 1 * GH:2 * GH]
            o_ = sg[:, 2 * GH:3 * GH]
            c_new = f_ * c_all + i_ * g
            h_new = o_ * jnp.tanh(c_new)
            return h_new, c_new

        # ---- step 0 hoisted: h = c = 0 -> no matmul; b1 omitted so layer-1
        # columns see z = 0 and provably stay zero (skew no-op). ----
        z0 = x_all[:, 0:1] * w0 + b0
        h_all, c_all = gates(z0, jnp.zeros((BP, 2 * HP), jnp.float32))

        def step(x_col, carry):
            h_all, c_all = carry
            # Serial critical path: one bf16 (BP,256)@(256,1024) matmul.
            zz = jnp.dot(h_all.astype(jnp.bfloat16), wbig,
                         preferred_element_type=jnp.float32)
            # Per-step additive rides in idle VPU slots under the MXU latency.
            zz = zz + x_col * w0 + bsum
            return gates(zz, c_all)

        if T <= _MAX_STATIC_UNROLL:
            # Fully unrolled with static lane slices (x column T is zero padding,
            # so the final skewed step's layer-0 half is a bounded no-op).
            carry = (h_all, c_all)
            for s in range(1, T + 1):
                carry = step(x_all[:, s:s + 1], carry)
            h_all, c_all = carry
        else:
            # TODO(synk): if a Mosaic version rejects the dynamic lane-dim slice,
            # chunk time into 128-lane tiles and statically unroll within a tile.
            def body(s, carry):
                x_col = lax.dynamic_slice_in_dim(x_all, s, 1, axis=1)
                return step(x_col, carry)
            h_all, c_all = lax.fori_loop(1, T + 1, body, (h_all, c_all), unroll=8)

        # ---- Final Linear on the last step's top-layer hidden state ----
        h1 = h_all[:, HP:2 * HP]             # padded lanes are exactly 0
        out = jnp.dot(h1, wfc_ref[...], preferred_element_type=jnp.float32) + bfc_ref[...]
        out_ref[...] = out.astype(out_ref.dtype)

    return kernel


def lstm_model_forward(x, kp):
    """x: (B, T, INPUT_SIZE) float32 -> (B, OUTPUT) float32."""
    B, T, _ = x.shape
    BP = ((B + 7) // 8) * 8                      # fill sublanes
    T_pad = ((T + 1 + 127) // 128) * 128         # lane-dense time axis (>= T+1)

    x2 = jnp.zeros((BP, T_pad), jnp.float32).at[:B, :T].set(
        x[:, :, 0].astype(jnp.float32))

    kernel = _make_kernel(T, BP)
    out = pl.pallas_call(
        kernel,
        out_shape=jax.ShapeDtypeStruct((BP, OUT_PAD), jnp.float32),
        grid=(1,),
        in_specs=[
            pl.BlockSpec((BP, T_pad), lambda i: (0, 0)),        # x, lane-dense
            pl.BlockSpec((1, GG), lambda i: (0, 0)),             # w0row
            pl.BlockSpec((1, GG), lambda i: (0, 0)),             # b0row
            pl.BlockSpec((1, GG), lambda i: (0, 0)),             # bsumrow
            pl.BlockSpec((2 * HP, GG), lambda i: (0, 0)),         # wbig (bf16)
            pl.BlockSpec((HP, OUT_PAD), lambda i: (0, 0)),        # wfc
            pl.BlockSpec((1, OUT_PAD), lambda i: (0, 0)),         # bfc
        ],
        out_specs=pl.BlockSpec((BP, OUT_PAD), lambda i: (0, 0)),
        compiler_params=pltpu.CompilerParams(dimension_semantics=("arbitrary",)),
    )(x2, kp["w0row"], kp["b0row"], kp["bsumrow"], kp["wbig"], kp["wfc"], kp["bfc"])
    # TODO(synk): for large B add a 'parallel' batch grid axis so both v7x
    # TensorCores each run an independent batch shard.
    return out[:B, :OUTPUT]


# ---------------------------------------------------------------------------
# Parameters
# ---------------------------------------------------------------------------
def init_params(key):
    """PyTorch-native shapes and init: U(-1/sqrt(H), 1/sqrt(H)). Gate order [i,f,g,o]."""
    k = 1.0 / (HIDDEN ** 0.5)
    ks = jax.random.split(key, 10)
    u = lambda kk, shape: jax.random.uniform(kk, shape, jnp.float32, -k, k)
    return dict(
        weight_ih_l0=u(ks[0], (4 * HIDDEN, INPUT_SIZE)),
        weight_hh_l0=u(ks[1], (4 * HIDDEN, HIDDEN)),
        bias_ih_l0=u(ks[2], (4 * HIDDEN,)),
        bias_hh_l0=u(ks[3], (4 * HIDDEN,)),
        weight_ih_l1=u(ks[4], (4 * HIDDEN, HIDDEN)),
        weight_hh_l1=u(ks[5], (4 * HIDDEN, HIDDEN)),
        bias_ih_l1=u(ks[6], (4 * HIDDEN,)),
        bias_hh_l1=u(ks[7], (4 * HIDDEN,)),
        fc_weight=u(ks[8], (OUTPUT, HIDDEN)),
        fc_bias=u(ks[9], (OUTPUT,)),
    )


def prepare_kernel_params(native):
    """Fused, gate-interleaved, 128-lane-padded kernel layout (bf16 wbig)."""
    H = HIDDEN
    w_ih0 = native["weight_ih_l0"].astype(jnp.float32)     # (4H, 1)
    w_hh0 = native["weight_hh_l0"].astype(jnp.float32)     # (4H, H)
    w_ih1 = native["weight_ih_l1"].astype(jnp.float32)     # (4H, H)
    w_hh1 = native["weight_hh_l1"].astype(jnp.float32)     # (4H, H)
    b0 = (native["bias_ih_l0"] + native["bias_hh_l0"]).astype(jnp.float32)
    b1 = (native["bias_ih_l1"] + native["bias_hh_l1"]).astype(jnp.float32)

    w0row = jnp.zeros((1, GG), jnp.float32)
    b0row = jnp.zeros((1, GG), jnp.float32)
    b1row = jnp.zeros((1, GG), jnp.float32)
    wbig = jnp.zeros((2 * HP, GG), jnp.float32)

    # PyTorch gate row order [i, f, g, o] -> kernel column blocks [i, f, o, g]
    # so the three sigmoid gates are contiguous.
    newblock = (0, 1, 3, 2)
    for pg in range(4):
        rs = pg * H
        nb = newblock[pg]
        c0 = nb * GH                       # layer-0 column block for this gate
        c1 = nb * GH + HP                  # layer-1 column block for this gate
        w0row = w0row.at[0, c0:c0 + H].set(w_ih0[rs:rs + H, 0])
        b0row = b0row.at[0, c0:c0 + H].set(b0[rs:rs + H])
        b1row = b1row.at[0, c1:c1 + H].set(b1[rs:rs + H])
        wbig = wbig.at[0:H, c0:c0 + H].set(w_hh0[rs:rs + H, :].T)         # h0 -> layer-0
        wbig = wbig.at[0:H, c1:c1 + H].set(w_ih1[rs:rs + H, :].T)         # h0 -> layer-1
        wbig = wbig.at[HP:HP + H, c1:c1 + H].set(w_hh1[rs:rs + H, :].T)   # h1 -> layer-1

    wfc = jnp.zeros((HP, OUT_PAD), jnp.float32).at[0:H, 0:OUTPUT].set(
        native["fc_weight"].astype(jnp.float32).T)
    bfc = jnp.zeros((1, OUT_PAD), jnp.float32).at[0, 0:OUTPUT].set(
        native["fc_bias"].astype(jnp.float32))
    return dict(w0row=w0row, b0row=b0row, bsumrow=b0row + b1row,
                wbig=wbig.astype(jnp.bfloat16), wfc=wfc, bfc=bfc)


# ---------------------------------------------------------------------------
# Pure-JAX reference (PyTorch semantics) for validation
# ---------------------------------------------------------------------------
def reference_forward(x, native):
    B, T, _ = x.shape
    H = HIDDEN
    b0 = native["bias_ih_l0"] + native["bias_hh_l0"]
    b1 = native["bias_ih_l1"] + native["bias_hh_l1"]

    def cell(x_t, h, c, wih, whh, b):
        z = x_t @ wih.T + h @ whh.T + b
        i = jax.nn.sigmoid(z[:, :H])
        f = jax.nn.sigmoid(z[:, H:2 * H])
        g = jnp.tanh(z[:, 2 * H:3 * H])
        o = jax.nn.sigmoid(z[:, 3 * H:])
        c = f * c + i * g
        h = o * jnp.tanh(c)
        return h, c

    h0 = c0 = h1 = c1 = jnp.zeros((B, H), jnp.float32)
    for t in range(T):
        h0, c0 = cell(x[:, t, :], h0, c0, native["weight_ih_l0"], native["weight_hh_l0"], b0)
        h1, c1 = cell(h0, h1, c1, native["weight_ih_l1"], native["weight_hh_l1"], b1)
    return h1 @ native["fc_weight"].T + native["fc_bias"]


if __name__ == "__main__":
    key = jax.random.PRNGKey(0)
    k_param, k_x = jax.random.split(key)

    B, T = 2, 8
    x = jax.random.normal(k_x, (B, T, INPUT_SIZE), jnp.float32)
    native = init_params(k_param)
    kp = prepare_kernel_params(native)

    out = jax.block_until_ready(lstm_model_forward(x, kp))
    ref = reference_forward(x, native)

    assert out.shape == (B, OUTPUT), out.shape
    # bf16 recurrent matmul operands -> tolerance relaxed vs pure-f32 reference.
    assert jnp.allclose(out, ref, atol=3e-2, rtol=3e-2), (out, ref)

    print("KERNEL_OK")
</pallas_src>

<mosaic_0001>
module attributes {stable_mosaic.version = 11 : i64} {
  func.func @kernel(%arg0: i32, %arg1: memref<8x128xf32, #tpu.memory_space<vmem>>, %arg2: memref<1x1024xf32, #tpu.memory_space<vmem>>, %arg3: memref<1x1024xf32, #tpu.memory_space<vmem>>, %arg4: memref<1x1024xf32, #tpu.memory_space<vmem>>, %arg5: memref<256x1024xbf16, #tpu.memory_space<vmem>>, %arg6: memref<128x128xf32, #tpu.memory_space<vmem>>, %arg7: memref<1x128xf32, #tpu.memory_space<vmem>>, %arg8: memref<8x128xf32, #tpu.memory_space<vmem>>) attributes {dimension_semantics = [#tpu.dimension_semantics<arbitrary>], iteration_bounds = array<i64: 1>, scalar_prefetch = 0 : i64, scratch_operands = 0 : i64, tpu.core_type = #tpu.core_type<tc>, window_params = [{pipeline_mode = #tpu.pipeline_mode<synchronous>, transform_indices = @transform_0, window_bounds = array<i64: 8, 128>}, {pipeline_mode = #tpu.pipeline_mode<synchronous>, transform_indices = @transform_1, window_bounds = array<i64: 1, 1024>}, {pipeline_mode = #tpu.pipeline_mode<synchronous>, transform_indices = @transform_2, window_bounds = array<i64: 1, 1024>}, {pipeline_mode = #tpu.pipeline_mode<synchronous>, transform_indices = @transform_3, window_bounds = array<i64: 1, 1024>}, {pipeline_mode = #tpu.pipeline_mode<synchronous>, transform_indices = @transform_4, window_bounds = array<i64: 256, 1024>}, {pipeline_mode = #tpu.pipeline_mode<synchronous>, transform_indices = @transform_5, window_bounds = array<i64: 128, 128>}, {pipeline_mode = #tpu.pipeline_mode<synchronous>, transform_indices = @transform_6, window_bounds = array<i64: 1, 128>}, {pipeline_mode = #tpu.pipeline_mode<synchronous>, transform_indices = @transform_7, window_bounds = array<i64: 8, 128>}]} {
    %c0 = arith.constant 0 : index
    %c0_0 = arith.constant 0 : index
    %0 = vector.load %arg5[%c0, %c0_0] : memref<256x1024xbf16, #tpu.memory_space<vmem>>, vector<256x1024xbf16>
    %c0_1 = arith.constant 0 : index
    %c0_2 = arith.constant 0 : index
    %1 = vector.load %arg2[%c0_1, %c0_2] : memref<1x1024xf32, #tpu.memory_space<vmem>>, vector<1x1024xf32>
    %c0_3 = arith.constant 0 : index
    %c0_4 = arith.constant 0 : index
    %2 = vector.load %arg3[%c0_3, %c0_4] : memref<1x1024xf32, #tpu.memory_space<vmem>>, vector<1x1024xf32>
    %c0_5 = arith.constant 0 : index
    %c0_6 = arith.constant 0 : index
    %3 = vector.load %arg4[%c0_5, %c0_6] : memref<1x1024xf32, #tpu.memory_space<vmem>>, vector<1x1024xf32>
    %c0_7 = arith.constant 0 : index
    %c0_8 = arith.constant 0 : index
    %4 = vector.load %arg1[%c0_7, %c0_8] : memref<8x128xf32, #tpu.memory_space<vmem>>, vector<8x128xf32>
    %5 = vector.extract_strided_slice %4 {offsets = [0, 0], sizes = [8, 1], strides = [1, 1]} : vector<8x128xf32> to vector<8x1xf32>
    %6 = vector.broadcast %5 : vector<8x1xf32> to vector<8x1024xf32>
    %7 = vector.broadcast %1 : vector<1x1024xf32> to vector<8x1024xf32>
    %8 = arith.mulf %6, %7 : vector<8x1024xf32>
    %9 = vector.broadcast %2 : vector<1x1024xf32> to vector<8x1024xf32>
    %10 = arith.addf %8, %9 : vector<8x1024xf32>
    %cst = arith.constant 0.000000e+00 : f32
    %11 = vector.broadcast %cst : f32 to vector<8x256xf32>
    %12 = vector.extract_strided_slice %10 {offsets = [0, 0], sizes = [8, 768], strides = [1, 1]} : vector<8x1024xf32> to vector<8x768xf32>
    %13 = arith.negf %12 : vector<8x768xf32>
    %14 = math.exp %13 : vector<8x768xf32>
    %cst_9 = arith.constant 1.000000e+00 : f32
    %15 = vector.broadcast %cst_9 : f32 to vector<8x768xf32>
    %16 = arith.addf %15, %14 : vector<8x768xf32>
    %17 = arith.divf %15, %16 : vector<8x768xf32>
    %18 = vector.extract_strided_slice %10 {offsets = [0, 768], sizes = [8, 256], strides = [1, 1]} : vector<8x1024xf32> to vector<8x256xf32>
    %19 = math.tanh %18 : vector<8x256xf32>
    %20 = vector.extract_strided_slice %17 {offsets = [0, 0], sizes = [8, 256], strides = [1, 1]} : vector<8x768xf32> to vector<8x256xf32>
    %21 = vector.extract_strided_slice %17 {offsets = [0, 256], sizes = [8, 256], strides = [1, 1]} : vector<8x768xf32> to vector<8x256xf32>
    %22 = vector.extract_strided_slice %17 {offsets = [0, 512], sizes = [8, 256], strides = [1, 1]} : vector<8x768xf32> to vector<8x256xf32>
    %23 = arith.mulf %21, %11 : vector<8x256xf32>
    %24 = arith.mulf %20, %19 : vector<8x256xf32>
    %25 = arith.addf %23, %24 : vector<8x256xf32>
    %26 = math.tanh %25 : vector<8x256xf32>
    %27 = arith.mulf %22, %26 : vector<8x256xf32>
    %28 = vector.extract_strided_slice %4 {offsets = [0, 1], sizes = [8, 1], strides = [1, 1]} : vector<8x128xf32> to vector<8x1xf32>
    %29 = arith.truncf %27 : vector<8x256xf32> to vector<8x256xbf16>
    %cst_10 = arith.constant dense<0.000000e+00> : vector<8x1024xf32>
    %30 = tpu.matmul %29, %0, %cst_10 {dimension_numbers = #tpu.dot_dimension_numbers<[1], [0], [0], [1], [0, 0, 1, 1], [], []>} : vector<8x256xbf16>, vector<256x1024xbf16>, vector<8x1024xf32> -> vector<8x1024xf32>
    %31 = vector.broadcast %28 : vector<8x1xf32> to vector<8x1024xf32>
    %32 = vector.broadcast %1 : vector<1x1024xf32> to vector<8x1024xf32>
    %33 = arith.mulf %31, %32 : vector<8x1024xf32>
    %34 = arith.addf %30, %33 : vector<8x1024xf32>
    %35 = vector.broadcast %3 : vector<1x1024xf32> to vector<8x1024xf32>
    %36 = arith.addf %34, %35 : vector<8x1024xf32>
    %37 = vector.extract_strided_slice %36 {offsets = [0, 0], sizes = [8, 768], strides = [1, 1]} : vector<8x1024xf32> to vector<8x768xf32>
    %38 = arith.negf %37 : vector<8x768xf32>
    %39 = math.exp %38 : vector<8x768xf32>
    %cst_11 = arith.constant 1.000000e+00 : f32
    %40 = vector.broadcast %cst_11 : f32 to vector<8x768xf32>
    %41 = arith.addf %40, %39 : vector<8x768xf32>
    %42 = arith.divf %40, %41 : vector<8x768xf32>
    %43 = vector.extract_strided_slice %36 {offsets = [0, 768], sizes = [8, 256], strides = [1, 1]} : vector<8x1024xf32> to vector<8x256xf32>
    %44 = math.tanh %43 : vector<8x256xf32>
    %45 = vector.extract_strided_slice %42 {offsets = [0, 0], sizes = [8, 256], strides = [1, 1]} : vector<8x768xf32> to vector<8x256xf32>
    %46 = vector.extract_strided_slice %42 {offsets = [0, 256], sizes = [8, 256], strides = [1, 1]} : vector<8x768xf32> to vector<8x256xf32>
    %47 = vector.extract_strided_slice %42 {offsets = [0, 512], sizes = [8, 256], strides = [1, 1]} : vector<8x768xf32> to vector<8x256xf32>
    %48 = arith.mulf %46, %25 : vector<8x256xf32>
    %49 = arith.mulf %45, %44 : vector<8x256xf32>
    %50 = arith.addf %48, %49 : vector<8x256xf32>
    %51 = math.tanh %50 : vector<8x256xf32>
    %52 = arith.mulf %47, %51 : vector<8x256xf32>
    %53 = vector.extract_strided_slice %4 {offsets = [0, 2], sizes = [8, 1], strides = [1, 1]} : vector<8x128xf32> to vector<8x1xf32>
    %54 = arith.truncf %52 : vector<8x256xf32> to vector<8x256xbf16>
    %cst_12 = arith.constant dense<0.000000e+00> : vector<8x1024xf32>
    %55 = tpu.matmul %54, %0, %cst_12 {dimension_numbers = #tpu.dot_dimension_numbers<[1], [0], [0], [1], [0, 0, 1, 1], [], []>} : vector<8x256xbf16>, vector<256x1024xbf16>, vector<8x1024xf32> -> vector<8x1024xf32>
    %56 = vector.broadcast %53 : vector<8x1xf32> to vector<8x1024xf32>
    %57 = vector.broadcast %1 : vector<1x1024xf32> to vector<8x1024xf32>
    %58 = arith.mulf %56, %57 : vector<8x1024xf32>
    %59 = arith.addf %55, %58 : vector<8x1024xf32>
    %60 = vector.broadcast %3 : vector<1x1024xf32> to vector<8x1024xf32>
    %61 = arith.addf %59, %60 : vector<8x1024xf32>
    %62 = vector.extract_strided_slice %61 {offsets = [0, 0], sizes = [8, 768], strides = [1, 1]} : vector<8x1024xf32> to vector<8x768xf32>
    %63 = arith.negf %62 : vector<8x768xf32>
    %64 = math.exp %63 : vector<8x768xf32>
    %cst_13 = arith.constant 1.000000e+00 : f32
    %65 = vector.broadcast %cst_13 : f32 to vector<8x768xf32>
    %66 = arith.addf %65, %64 : vector<8x768xf32>
    %67 = arith.divf %65, %66 : vector<8x768xf32>
    %68 = vector.extract_strided_slice %61 {offsets = [0, 768], sizes = [8, 256], strides = [1, 1]} : vector<8x1024xf32> to vector<8x256xf32>
    %69 = math.tanh %68 : vector<8x256xf32>
    %70 = vector.extract_strided_slice %67 {offsets = [0, 0], sizes = [8, 256], strides = [1, 1]} : vector<8x768xf32> to vector<8x256xf32>
    %71 = vector.extract_strided_slice %67 {offsets = [0, 256], sizes = [8, 256], strides = [1, 1]} : vector<8x768xf32> to vector<8x256xf32>
    %72 = vector.extract_strided_slice %67 {offsets = [0, 512], sizes = [8, 256], strides = [1, 1]} : vector<8x768xf32> to vector<8x256xf32>
    %73 = arith.mulf %71, %50 : vector<8x256xf32>
    %74 = arith.mulf %70, %69 : vector<8x256xf32>
    %75 = arith.addf %73, %74 : vector<8x256xf32>
    %76 = math.tanh %75 : vector<8x256xf32>
    %77 = arith.mulf %72, %76 : vector<8x256xf32>
    %78 = vector.extract_strided_slice %4 {offsets = [0, 3], sizes = [8, 1], strides = [1, 1]} : vector<8x128xf32> to vector<8x1xf32>
    %79 = arith.truncf %77 : vector<8x256xf32> to vector<8x256xbf16>
    %cst_14 = arith.constant dense<0.000000e+00> : vector<8x1024xf32>
    %80 = tpu.matmul %79, %0, %cst_14 {dimension_numbers = #tpu.dot_dimension_numbers<[1], [0], [0], [1], [0, 0, 1, 1], [], []>} : vector<8x256xbf16>, vector<256x1024xbf16>, vector<8x1024xf32> -> vector<8x1024xf32>
    %81 = vector.broadcast %78 : vector<8x1xf32> to vector<8x1024xf32>
    %82 = vector.broadcast %1 : vector<1x1024xf32> to vector<8x1024xf32>
    %83 = arith.mulf %81, %82 : vector<8x1024xf32>
    %84 = arith.addf %80, %83 : vector<8x1024xf32>
    %85 = vector.broadcast %3 : vector<1x1024xf32> to vector<8x1024xf32>
    %86 = arith.addf %84, %85 : vector<8x1024xf32>
    %87 = vector.extract_strided_slice %86 {offsets = [0, 0], sizes = [8, 768], strides = [1, 1]} : vector<8x1024xf32> to vector<8x768xf32>
    %88 = arith.negf %87 : vector<8x768xf32>
    %89 = math.exp %88 : vector<8x768xf32>
    %cst_15 = arith.constant 1.000000e+00 : f32
    %90 = vector.broadcast %cst_15 : f32 to vector<8x768xf32>
    %91 = arith.addf %90, %89 : vector<8x768xf32>
    %92 = arith.divf %90, %91 : vector<8x768xf32>
    %93 = vector.extract_strided_slice %86 {offsets = [0, 768], sizes = [8, 256], strides = [1, 1]} : vector<8x1024xf32> to vector<8x256xf32>
    %94 = math.tanh %93 : vector<8x256xf32>
    %95 = vector.extract_strided_slice %92 {offsets = [0, 0], sizes = [8, 256], strides = [1, 1]} : vector<8x768xf32> to vector<8x256xf32>
    %96 = vector.extract_strided_slice %92 {offsets = [0, 256], sizes = [8, 256], strides = [1, 1]} : vector<8x768xf32> to vector<8x256xf32>
    %97 = vector.extract_strided_slice %92 {offsets = [0, 512], sizes = [8, 256], strides = [1, 1]} : vector<8x768xf32> to vector<8x256xf32>
    %98 = arith.mulf %96, %75 : vector<8x256xf32>
    %99 = arith.mulf %95, %94 : vector<8x256xf32>
    %100 = arith.addf %98, %99 : vector<8x256xf32>
    %101 = math.tanh %100 : vector<8x256xf32>
    %102 = arith.mulf %97, %101 : vector<8x256xf32>
    %103 = vector.extract_strided_slice %4 {offsets = [0, 4], sizes = [8, 1], strides = [1, 1]} : vector<8x128xf32> to vector<8x1xf32>
    %104 = arith.truncf %102 : vector<8x256xf32> to vector<8x256xbf16>
    %cst_16 = arith.constant dense<0.000000e+00> : vector<8x1024xf32>
    %105 = tpu.matmul %104, %0, %cst_16 {dimension_numbers = #tpu.dot_dimension_numbers<[1], [0], [0], [1], [0, 0, 1, 1], [], []>} : vector<8x256xbf16>, vector<256x1024xbf16>, vector<8x1024xf32> -> vector<8x1024xf32>
    %106 = vector.broadcast %103 : vector<8x1xf32> to vector<8x1024xf32>
    %107 = vector.broadcast %1 : vector<1x1024xf32> to vector<8x1024xf32>
    %108 = arith.mulf %106, %107 : vector<8x1024xf32>
    %109 = arith.addf %105, %108 : vector<8x1024xf32>
    %110 = vector.broadcast %3 : vector<1x1024xf32> to vector<8x1024xf32>
    %111 = arith.addf %109, %110 : vector<8x1024xf32>
    %112 = vector.extract_strided_slice %111 {offsets = [0, 0], sizes = [8, 768], strides = [1, 1]} : vector<8x1024xf32> to vector<8x768xf32>
    %113 = arith.negf %112 : vector<8x768xf32>
    %114 = math.exp %113 : vector<8x768xf32>
    %cst_17 = arith.constant 1.000000e+00 : f32
    %115 = vector.broadcast %cst_17 : f32 to vector<8x768xf32>
    %116 = arith.addf %115, %114 : vector<8x768xf32>
    %117 = arith.divf %115, %116 : vector<8x768xf32>
    %118 = vector.extract_strided_slice %111 {offsets = [0, 768], sizes = [8, 256], strides = [1, 1]} : vector<8x1024xf32> to vector<8x256xf32>
    %119 = math.tanh %118 : vector<8x256xf32>
    %120 = vector.extract_strided_slice %117 {offsets = [0, 0], sizes = [8, 256], strides = [1, 1]} : vector<8x768xf32> to vector<8x256xf32>
    %121 = vector.extract_strided_slice %117 {offsets = [0, 256], sizes = [8, 256], strides = [1, 1]} : vector<8x768xf32> to vector<8x256xf32>
    %122 = vector.extract_strided_slice %117 {offsets = [0, 512], sizes = [8, 256], strides = [1, 1]} : vector<8x768xf32> to vector<8x256xf32>
    %123 = arith.mulf %121, %100 : vector<8x256xf32>
    %124 = arith.mulf %120, %119 : vector<8x256xf32>
    %125 = arith.addf %123, %124 : vector<8x256xf32>
    %126 = math.tanh %125 : vector<8x256xf32>
    %127 = arith.mulf %122, %126 : vector<8x256xf32>
    %128 = vector.extract_strided_slice %4 {offsets = [0, 5], sizes = [8, 1], strides = [1, 1]} : vector<8x128xf32> to vector<8x1xf32>
    %129 = arith.truncf %127 : vector<8x256xf32> to vector<8x256xbf16>
    %cst_18 = arith.constant dense<0.000000e+00> : vector<8x1024xf32>
    %130 = tpu.matmul %129, %0, %cst_18 {dimension_numbers = #tpu.dot_dimension_numbers<[1], [0], [0], [1], [0, 0, 1, 1], [], []>} : vector<8x256xbf16>, vector<256x1024xbf16>, vector<8x1024xf32> -> vector<8x1024xf32>
    %131 = vector.broadcast %128 : vector<8x1xf32> to vector<8x1024xf32>
    %132 = vector.broadcast %1 : vector<1x1024xf32> to vector<8x1024xf32>
    %133 = arith.mulf %131, %132 : vector<8x1024xf32>
    %134 = arith.addf %130, %133 : vector<8x1024xf32>
    %135 = vector.broadcast %3 : vector<1x1024xf32> to vector<8x1024xf32>
    %136 = arith.addf %134, %135 : vector<8x1024xf32>
    %137 = vector.extract_strided_slice %136 {offsets = [0, 0], sizes = [8, 768], strides = [1, 1]} : vector<8x1024xf32> to vector<8x768xf32>
    %138 = arith.negf %137 : vector<8x768xf32>
    %139 = math.exp %138 : vector<8x768xf32>
    %cst_19 = arith.constant 1.000000e+00 : f32
    %140 = vector.broadcast %cst_19 : f32 to vector<8x768xf32>
    %141 = arith.addf %140, %139 : vector<8x768xf32>
    %142 = arith.divf %140, %141 : vector<8x768xf32>
    %143 = vector.extract_strided_slice %136 {offsets = [0, 768], sizes = [8, 256], strides = [1, 1]} : vector<8x1024xf32> to vector<8x256xf32>
    %144 = math.tanh %143 : vector<8x256xf32>
    %145 = vector.extract_strided_slice %142 {offsets = [0, 0], sizes = [8, 256], strides = [1, 1]} : vector<8x768xf32> to vector<8x256xf32>
    %146 = vector.extract_strided_slice %142 {offsets = [0, 256], sizes = [8, 256], strides = [1, 1]} : vector<8x768xf32> to vector<8x256xf32>
    %147 = vector.extract_strided_slice %142 {offsets = [0, 512], sizes = [8, 256], strides = [1, 1]} : vector<8x768xf32> to vector<8x256xf32>
    %148 = arith.mulf %146, %125 : vector<8x256xf32>
    %149 = arith.mulf %145, %144 : vector<8x256xf32>
    %150 = arith.addf %148, %149 : vector<8x256xf32>
    %151 = math.tanh %150 : vector<8x256xf32>
    %152 = arith.mulf %147, %151 : vector<8x256xf32>
    %153 = vector.extract_strided_slice %4 {offsets = [0, 6], sizes = [8, 1], strides = [1, 1]} : vector<8x128xf32> to vector<8x1xf32>
    %154 = arith.truncf %152 : vector<8x256xf32> to vector<8x256xbf16>
    %cst_20 = arith.constant dense<0.000000e+00> : vector<8x1024xf32>
    %155 = tpu.matmul %154, %0, %cst_20 {dimension_numbers = #tpu.dot_dimension_numbers<[1], [0], [0], [1], [0, 0, 1, 1], [], []>} : vector<8x256xbf16>, vector<256x1024xbf16>, vector<8x1024xf32> -> vector<8x1024xf32>
    %156 = vector.broadcast %153 : vector<8x1xf32> to vector<8x1024xf32>
    %157 = vector.broadcast %1 : vector<1x1024xf32> to vector<8x1024xf32>
    %158 = arith.mulf %156, %157 : vector<8x1024xf32>
    %159 = arith.addf %155, %158 : vector<8x1024xf32>
    %160 = vector.broadcast %3 : vector<1x1024xf32> to vector<8x1024xf32>
    %161 = arith.addf %159, %160 : vector<8x1024xf32>
    %162 = vector.extract_strided_slice %161 {offsets = [0, 0], sizes = [8, 768], strides = [1, 1]} : vector<8x1024xf32> to vector<8x768xf32>
    %163 = arith.negf %162 : vector<8x768xf32>
    %164 = math.exp %163 : vector<8x768xf32>
    %cst_21 = arith.constant 1.000000e+00 : f32
    %165 = vector.broadcast %cst_21 : f32 to vector<8x768xf32>
    %166 = arith.addf %165, %164 : vector<8x768xf32>
    %167 = arith.divf %165, %166 : vector<8x768xf32>
    %168 = vector.extract_strided_slice %161 {offsets = [0, 768], sizes = [8, 256], strides = [1, 1]} : vector<8x1024xf32> to vector<8x256xf32>
    %169 = math.tanh %168 : vector<8x256xf32>
    %170 = vector.extract_strided_slice %167 {offsets = [0, 0], sizes = [8, 256], strides = [1, 1]} : vector<8x768xf32> to vector<8x256xf32>
    %171 = vector.extract_strided_slice %167 {offsets = [0, 256], sizes = [8, 256], strides = [1, 1]} : vector<8x768xf32> to vector<8x256xf32>
    %172 = vector.extract_strided_slice %167 {offsets = [0, 512], sizes = [8, 256], strides = [1, 1]} : vector<8x768xf32> to vector<8x256xf32>
    %173 = arith.mulf %171, %150 : vector<8x256xf32>
    %174 = arith.mulf %170, %169 : vector<8x256xf32>
    %175 = arith.addf %173, %174 : vector<8x256xf32>
    %176 = math.tanh %175 : vector<8x256xf32>
    %177 = arith.mulf %172, %176 : vector<8x256xf32>
    %178 = vector.extract_strided_slice %4 {offsets = [0, 7], sizes = [8, 1], strides = [1, 1]} : vector<8x128xf32> to vector<8x1xf32>
    %179 = arith.truncf %177 : vector<8x256xf32> to vector<8x256xbf16>
    %cst_22 = arith.constant dense<0.000000e+00> : vector<8x1024xf32>
    %180 = tpu.matmul %179, %0, %cst_22 {dimension_numbers = #tpu.dot_dimension_numbers<[1], [0], [0], [1], [0, 0, 1, 1], [], []>} : vector<8x256xbf16>, vector<256x1024xbf16>, vector<8x1024xf32> -> vector<8x1024xf32>
    %181 = vector.broadcast %178 : vector<8x1xf32> to vector<8x1024xf32>
    %182 = vector.broadcast %1 : vector<1x1024xf32> to vector<8x1024xf32>
    %183 = arith.mulf %181, %182 : vector<8x1024xf32>
    %184 = arith.addf %180, %183 : vector<8x1024xf32>
    %185 = vector.broadcast %3 : vector<1x1024xf32> to vector<8x1024xf32>
    %186 = arith.addf %184, %185 : vector<8x1024xf32>
    %187 = vector.extract_strided_slice %186 {offsets = [0, 0], sizes = [8, 768], strides = [1, 1]} : vector<8x1024xf32> to vector<8x768xf32>
    %188 = arith.negf %187 : vector<8x768xf32>
    %189 = math.exp %188 : vector<8x768xf32>
    %cst_23 = arith.constant 1.000000e+00 : f32
    %190 = vector.broadcast %cst_23 : f32 to vector<8x768xf32>
    %191 = arith.addf %190, %189 : vector<8x768xf32>
    %192 = arith.divf %190, %191 : vector<8x768xf32>
    %193 = vector.extract_strided_slice %186 {offsets = [0, 768], sizes = [8, 256], strides = [1, 1]} : vector<8x1024xf32> to vector<8x256xf32>
    %194 = math.tanh %193 : vector<8x256xf32>
    %195 = vector.extract_strided_slice %192 {offsets = [0, 0], sizes = [8, 256], strides = [1, 1]} : vector<8x768xf32> to vector<8x256xf32>
    %196 = vector.extract_strided_slice %192 {offsets = [0, 256], sizes = [8, 256], strides = [1, 1]} : vector<8x768xf32> to vector<8x256xf32>
    %197 = vector.extract_strided_slice %192 {offsets = [0, 512], sizes = [8, 256], strides = [1, 1]} : vector<8x768xf32> to vector<8x256xf32>
    %198 = arith.mulf %196, %175 : vector<8x256xf32>
    %199 = arith.mulf %195, %194 : vector<8x256xf32>
    %200 = arith.addf %198, %199 : vector<8x256xf32>
    %201 = math.tanh %200 : vector<8x256xf32>
    %202 = arith.mulf %197, %201 : vector<8x256xf32>
    %203 = vector.extract_strided_slice %4 {offsets = [0, 8], sizes = [8, 1], strides = [1, 1]} : vector<8x128xf32> to vector<8x1xf32>
    %204 = arith.truncf %202 : vector<8x256xf32> to vector<8x256xbf16>
    %cst_24 = arith.constant dense<0.000000e+00> : vector<8x1024xf32>
    %205 = tpu.matmul %204, %0, %cst_24 {dimension_numbers = #tpu.dot_dimension_numbers<[1], [0], [0], [1], [0, 0, 1, 1], [], []>} : vector<8x256xbf16>, vector<256x1024xbf16>, vector<8x1024xf32> -> vector<8x1024xf32>
    %206 = vector.broadcast %203 : vector<8x1xf32> to vector<8x1024xf32>
    %207 = vector.broadcast %1 : vector<1x1024xf32> to vector<8x1024xf32>
    %208 = arith.mulf %206, %207 : vector<8x1024xf32>
    %209 = arith.addf %205, %208 : vector<8x1024xf32>
    %210 = vector.broadcast %3 : vector<1x1024xf32> to vector<8x1024xf32>
    %211 = arith.addf %209, %210 : vector<8x1024xf32>
    %212 = vector.extract_strided_slice %211 {offsets = [0, 0], sizes = [8, 768], strides = [1, 1]} : vector<8x1024xf32> to vector<8x768xf32>
    %213 = arith.negf %212 : vector<8x768xf32>
    %214 = math.exp %213 : vector<8x768xf32>
    %cst_25 = arith.constant 1.000000e+00 : f32
    %215 = vector.broadcast %cst_25 : f32 to vector<8x768xf32>
    %216 = arith.addf %215, %214 : vector<8x768xf32>
    %217 = arith.divf %215, %216 : vector<8x768xf32>
    %218 = vector.extract_strided_slice %211 {offsets = [0, 768], sizes = [8, 256], strides = [1, 1]} : vector<8x1024xf32> to vector<8x256xf32>
    %219 = math.tanh %218 : vector<8x256xf32>
    %220 = vector.extract_strided_slice %217 {offsets = [0, 0], sizes = [8, 256], strides = [1, 1]} : vector<8x768xf32> to vector<8x256xf32>
    %221 = vector.extract_strided_slice %217 {offsets = [0, 256], sizes = [8, 256], strides = [1, 1]} : vector<8x768xf32> to vector<8x256xf32>
    %222 = vector.extract_strided_slice %217 {offsets = [0, 512], sizes = [8, 256], strides = [1, 1]} : vector<8x768xf32> to vector<8x256xf32>
    %223 = arith.mulf %221, %200 : vector<8x256xf32>
    %224 = arith.mulf %220, %219 : vector<8x256xf32>
    %225 = arith.addf %223, %224 : vector<8x256xf32>
    %226 = math.tanh %225 : vector<8x256xf32>
    %227 = arith.mulf %222, %226 : vector<8x256xf32>
    %228 = vector.extract_strided_slice %227 {offsets = [0, 128], sizes = [8, 128], strides = [1, 1]} : vector<8x256xf32> to vector<8x128xf32>
    %c0_26 = arith.constant 0 : index
    %c0_27 = arith.constant 0 : index
    %229 = vector.load %arg6[%c0_26, %c0_27] : memref<128x128xf32, #tpu.memory_space<vmem>>, vector<128x128xf32>
    %cst_28 = arith.constant dense<0.000000e+00> : vector<8x128xf32>
    %230 = tpu.matmul %228, %229, %cst_28 {dimension_numbers = #tpu.dot_dimension_numbers<[1], [0], [0], [1], [0, 0, 1, 1], [], []>} : vector<8x128xf32>, vector<128x128xf32>, vector<8x128xf32> -> vector<8x128xf32>
    %c0_29 = arith.constant 0 : index
    %c0_30 = arith.constant 0 : index
    %231 = vector.load %arg7[%c0_29, %c0_30] : memref<1x128xf32, #tpu.memory_space<vmem>>, vector<1x128xf32>
    %232 = vector.broadcast %231 : vector<1x128xf32> to vector<8x128xf32>
    %233 = arith.addf %230, %232 : vector<8x128xf32>
    %c0_31 = arith.constant 0 : index
    %c0_32 = arith.constant 0 : index
    %234 = vector.load %arg8[%c0_31, %c0_32] : memref<8x128xf32, #tpu.memory_space<vmem>>, vector<8x128xf32>
    tpu.vector_store %arg8[%c0_31, %c0_32], %233 {strides = array<i32>} : memref<8x128xf32, #tpu.memory_space<vmem>>, vector<8x128xf32>,
    return
  }
  func.func @transform_0(%arg0: i32) -> (i32, i32) {
    %c0_i32 = arith.constant 0 : i32
    %c0_i32_0 = arith.constant 0 : i32
    %c0_i32_1 = arith.constant 0 : i32
    return %c0_i32, %c0_i32_0 : i32, i32
  }
  func.func @transform_1(%arg0: i32) -> (i32, i32) {
    %c0_i32 = arith.constant 0 : i32
    %c0_i32_0 = arith.constant 0 : i32
    %c0_i32_1 = arith.constant 0 : i32
    return %c0_i32, %c0_i32_0 : i32, i32
  }
  func.func @transform_2(%arg0: i32) -> (i32, i32) {
    %c0_i32 = arith.constant 0 : i32
    %c0_i32_0 = arith.constant 0 : i32
    %c0_i32_1 = arith.constant 0 : i32
    return %c0_i32, %c0_i32_0 : i32, i32
  }
  func.func @transform_3(%arg0: i32) -> (i32, i32) {
    %c0_i32 = arith.constant 0 : i32
    %c0_i32_0 = arith.constant 0 : i32
    %c0_i32_1 = arith.constant 0 : i32
    return %c0_i32, %c0_i32_0 : i32, i32
  }
  func.func @transform_4(%arg0: i32) -> (i32, i32) {
    %c0_i32 = arith.constant 0 : i32
    %c0_i32_0 = arith.constant 0 : i32
    %c0_i32_1 = arith.constant 0 : i32
    return %c0_i32, %c0_i32_0 : i32, i32
  }
  func.func @transform_5(%arg0: i32) -> (i32, i32) {
    %c0_i32 = arith.constant 0 : i32
    %c0_i32_0 = arith.constant 0 : i32
    %c0_i32_1 = arith.constant 0 : i32
    return %c0_i32, %c0_i32_0 : i32, i32
  }
  func.func @transform_6(%arg0: i32) -> (i32, i32) {
    %c0_i32 = arith.constant 0 : i32
    %c0_i32_0 = arith.constant 0 : i32
    %c0_i32_1 = arith.constant 0 : i32
    return %c0_i32, %c0_i32_0 : i32, i32
  }
  func.func @transform_7(%arg0: i32) -> (i32, i32) {
    %c0_i32 = arith.constant 0 : i32
    %c0_i32_0 = arith.constant 0 : i32
    %c0_i32_1 = arith.constant 0 : i32
    return %c0_i32, %c0_i32_0 : i32, i32
  }
}

</mosaic_0001>

<bundles_post_ra>
// kernel: tpu_custom_call.1
= control target key start
LH: loop header
LB: loop body
LE: loop exit
PB: predicated region body
PF: predicated region fallthrough
CT: control target
= control target key end

     0   :  { %12 = vsyncpa [#allocation3], 0  ;;  %s5389_s0 = inlined_call_operand.hbm [shape: f32[8,128], index: 0, kind: input, shape index: {}]   ;;  %s5390_s1 = inlined_call_operand.hbm [shape: f32[1,1024], index: 1, kind: input, shape index: {}]   ;;  %s5391_s2 = inlined_call_operand.hbm [shape: f32[1,1024], index: 2, kind: input, shape index: {}]   ;;  %s5392_s3 = inlined_call_operand.hbm [shape: f32[1,1024], index: 3, kind: input, shape index: {}]   ;;  %s5393_s4 = inlined_call_operand.hbm [shape: bf16[256,1024], index: 4, kind: input, shape index: {}]   ;;  %s5394_s5 = inlined_call_operand.hbm [shape: f32[128,128], index: 5, kind: input, shape index: {}]   ;;  %s5395_s6 = inlined_call_operand.vmem [shape: f32[1,128], index: 6, kind: input, shape index: {}]   ;;  %s5396_s7 = inlined_call_operand.hbm [shape: f32[8,128], index: 7, kind: output, shape index: {}]  }
   0x1   :  { %13 = vsyncpa [#allocation6], 0 }
   0x2   :  { %14 = vsyncpa [#allocation9], 0 }
   0x3   :  { %15 = vsyncpa [#allocation12], 0 }
   0x4   :  { %16 = vsyncpa [#allocation4], 0  ;;  %s3701_s24 = smov [#allocation5]   ;;  %s3702_s26 = smov [#allocation8]  }
   0x5   :  { %s33_s25 = sshll.u32 %s3701_s24, 4  ;;  %s53_s27 = sshll.u32 %s3702_s26, 4  ;;  %s34_s25 = int_to_ptr.vmem [resolvable:$true] %s33_s25  ;;  %s54_s27 = int_to_ptr.vmem [resolvable:$true] %s53_s27 }
   0x6   :  { %s3559_s28 = scalar_lea.vmem %s34_s25, 128  ;;  %p3564_p1 = scmp.lt.s32.totalorder %s34_s25, %s34_s25 }
   0x7   :  { %p3560_p0 = scmp.ne.s32.totalorder %s34_s25, %s3559_s28  ;;  %p3565_p2 = scmp.lt.s32.totalorder %s3559_s28, %s3559_s28 }
   0x9   :  { %p3566_p3 = por %p3565_p2, %p3564_p1 }
   0xb   :  { %p3567_p4 = pnand %p3566_p3, %p3560_p0 }
   0xd   :  { %3570 = shalt.err (!%p3567_p4)
}
   0xe   :  { %36 = dma.hbm_to_vmem [thread:$0]  %s5390_s1, 128, %s34_s25, [#allocation6]  }
   0xf   :  { %s3579_s8 = scalar_lea.vmem %s54_s27, 128  ;;  %p3584_p6 = scmp.lt.s32.totalorder %s54_s27, %s54_s27 }
  0x10   :  { %p3580_p5 = scmp.ne.s32.totalorder %s54_s27, %s3579_s8  ;;  %p3585_p7 = scmp.lt.s32.totalorder %s3579_s8, %s3579_s8 }
  0x12   :  { %p3586_p8 = por %p3585_p7, %p3584_p6 }
  0x14   :  { %p3587_p9 = pnand %p3586_p8, %p3580_p5 }
  0x16   :  { %3590 = shalt.err (!%p3587_p9)
}
  0x17   :  { %56 = dma.hbm_to_vmem [thread:$0]  %s5392_s3, 128, %s54_s27, [#allocation9]  }
  0x18   :  { %s3703_s11 = smov [#allocation2]   ;;  %s3704_s13 = smov [#allocation7]  }
  0x19   :  { %s23_s12 = sshll.u32 %s3703_s11, 4  ;;  %s43_s14 = sshll.u32 %s3704_s13, 4  ;;  %s24_s12 = int_to_ptr.vmem [resolvable:$true] %s23_s12  ;;  %s44_s14 = int_to_ptr.vmem [resolvable:$true] %s43_s14 }
  0x1a   :  { %s3599_s15 = scalar_lea.vmem %s24_s12, 128  ;;  %p3604_p11 = scmp.lt.s32.totalorder %s24_s12, %s24_s12 }
  0x1b   :  { %p3600_p10 = scmp.ne.s32.totalorder %s24_s12, %s3599_s15  ;;  %p3605_p12 = scmp.lt.s32.totalorder %s3599_s15, %s3599_s15 }
  0x1d   :  { %p3606_p13 = por %p3605_p12, %p3604_p11 }
  0x1f   :  { %p3607_p0 = pnand %p3606_p13, %p3600_p10 }
  0x21   :  { %3610 = shalt.err (!%p3607_p0)
}
  0x22   :  { %26 = dma.hbm_to_vmem [thread:$0]  %s5389_s0, 128, %s24_s12, [#allocation3]  }
  0x23   :  { %s3619_s17 = scalar_lea.vmem %s44_s14, 128  ;;  %p3624_p2 = scmp.lt.s32.totalorder %s44_s14, %s44_s14 }
  0x24   :  { %p3620_p1 = scmp.ne.s32.totalorder %s44_s14, %s3619_s17  ;;  %p3625_p3 = scmp.lt.s32.totalorder %s3619_s17, %s3619_s17 }
  0x26   :  { %p3626_p4 = por %p3625_p3, %p3624_p2 }
  0x28   :  { %p3627_p5 = pnand %p3626_p4, %p3620_p1 }
  0x2a   :  { %3630 = shalt.err (!%p3627_p5)
}
  0x2b   :  { %46 = dma.hbm_to_vmem [thread:$0]  %s5391_s2, 128, %s44_s14, [#allocation6]  }
  0x2c   :  { %s3705_s19 = smov [#allocation10]  }
  0x2d   :  { %s62_s20 = sshll.u32 %s3705_s19, 4  ;;  %s63_s20 = int_to_ptr.vmem [resolvable:$true] %s62_s20 }
  0x2e   :  { %s3639_s21 = scalar_lea.vmem %s63_s20, 16384  ;;  %p3644_p7 = scmp.lt.s32.totalorder %s63_s20, %s63_s20 }
  0x2f   :  { %p3640_p6 = scmp.ne.s32.totalorder %s63_s20, %s3639_s21  ;;  %p3645_p8 = scmp.lt.s32.totalorder %s3639_s21, %s3639_s21 }
  0x31   :  { %p3646_p9 = por %p3645_p8, %p3644_p7 }
  0x33   :  { %p3647_p10 = pnand %p3646_p9, %p3640_p6 }
  0x35   :  { %3650 = shalt.err (!%p3647_p10)
}
  0x36   :  { %s3706_s0 = smov 512   ;;  %s3707_s22 = smov 32  }
  0x37   :  { %68 = dma.hbm_to_vmem [thread:$0]  %s5393_s4, 16384, %s63_s20, [#allocation9], %s3706_s0, %s3706_s0, %s3707_s22  }
  0x38   :  { %s3708_s25 = smov [#allocation11]  }
  0x39   :  { %s74_s26 = sshll.u32 %s3708_s25, 4  ;;  %s75_s26 = int_to_ptr.vmem [resolvable:$true] %s74_s26 }
  0x3a   :  { %s3659_s2 = scalar_lea.vmem %s75_s26, 2048  ;;  %p3664_p12 = scmp.lt.s32.totalorder %s75_s26, %s75_s26 }
  0x3b   :  { %p3660_p11 = scmp.ne.s32.totalorder %s75_s26, %s3659_s2  ;;  %p3665_p13 = scmp.lt.s32.totalorder %s3659_s2, %s3659_s2 }
  0x3d   :  { %p3666_p0 = por %p3665_p13, %p3664_p12 }
  0x3f   :  { %p3667_p1 = pnand %p3666_p0, %p3660_p11 }
  0x41   :  { %3670 = shalt.err (!%p3667_p1)
}
  0x42   :  { %s3709_s27 = smov 128   ;;  %s3710_s28 = smov 8  }
  0x43   :  { %80 = dma.hbm_to_vmem [thread:$0]  %s5394_s5, 2048, %s75_s26, [#allocation12], %s3709_s27, %s3709_s27, %s3710_s28  }
  0x44   :  { %3691 = dma.done.wait [#allocation3], 128  }
  0x45   :  { %3692 = vsyncadd [#allocation3], 4294967168 }
  0x46   :  { %3693 = dma.done.wait [#allocation6], 256  }
  0x47   :  { %3694 = vsyncadd [#allocation6], 4294967040 }
  0x48   :  { %3695 = dma.done.wait [#allocation9], 16512  }
  0x49   :  { %3696 = vsyncadd [#allocation9], 4294950784 }
  0x4a   :  { %3697 = dma.done.wait [#allocation12], 2048  }
  0x4b   :  { %3698 = vsyncadd [#allocation12], 4294965248  ;;  %v3711_v0 = vmov 0   ;;  %v3781_v1 = vld [vmem:[#allocation2] sm:$0xff]  ;;  %v158_v5 = vld [vmem:[#allocation10 + $0x1c8] sm:$0xff]  ;;  %vm3721_vm0 = vmmov 0  }
  0x4c   :  { %3267 = vset.pattern.permute.xlu0 %v3711_v0  ;;  %v157_v2 = vld [vmem:[#allocation10 + $0x1c0] sm:$0xff]  ;;  %v162_v6 = vld [vmem:[#allocation10 + $0x1e8] sm:$0xff]  ;;  %s3722_s8 = smov [#allocation13]  }
  0x4d   :  { %v161_v3 = vld [vmem:[#allocation10 + $0x1e0] sm:$0xff]  ;;  %235 = vperm.xlu0 %3267, %v3781_v1   ;;  %v3788_v9 = vcombine.high %v158_v5, %v162_v6  ;;  %v3790_v10 = vcombine.low %v158_v5, %v162_v6  ;;  %v150_v12 = vld [vmem:[#allocation10 + $0x188] sm:$0xff]  ;;  %s3001_s9 = sshll.u32 %s3722_s8, 4  ;;  %s3002_s9 = int_to_ptr.vmem [resolvable:$true] %s3001_s9 }
  0x4e   :  { %v3784_v4 = vcombine.high %v157_v2, %v161_v3  ;;  %v3786_v7 = vcombine.low %v157_v2, %v161_v3  ;;  %v149_v8 = vld [vmem:[#allocation10 + $0x180] sm:$0xff]  ;;  %v154_v13 = vld [vmem:[#allocation10 + $0x1a8] sm:$0xff]  ;;  %s3671_s10 = scalar_lea.vmem %s3002_s9, 128  ;;  %p3676_p3 = scmp.lt.s32.totalorder %s3002_s9, %s3002_s9 }
  0x4f   :  { %5699 = vst [vmem:[#allocation21_spill] sm:$0xff] %v3788_v9  ;;  %5700 = vst [vmem:[#allocation22_spill] sm:$0xff] %v3790_v10  ;;  %v153_v11 = vld [vmem:[#allocation10 + $0x1a0] sm:$0xff]  ;;  %v3795_v15 = vcombine.high %v150_v12, %v154_v13  ;;  %1079 = vmatprep.subr.bf16.mxu1 %v3788_v9  ;;  %v3803_v18 = vcombine.low %v150_v12, %v154_v13  ;;  %v142_v20 = vld [vmem:[#allocation10 + $0x148] sm:$0xff]  ;;  %p3672_p2 = scmp.ne.s32.totalorder %s3002_s9, %s3671_s10  ;;  %p3677_p4 = scmp.lt.s32.totalorder %s3671_s10, %s3671_s10 }
  0x50   :  { %5697 = vst [vmem:[#allocation19_spill] sm:$0xff] %v3784_v4  ;;  %5698 = vst [vmem:[#allocation20_spill] sm:$0xff] %v3786_v7  ;;  %1038 = vmatprep.subr.bf16.mxu0 %v3784_v4  ;;  %v3793_v14 = vcombine.high %v149_v8, %v153_v11  ;;  %v3799_v16 = vcombine.low %v149_v8, %v153_v11  ;;  %v141_v17 = vld [vmem:[#allocation10 + $0x140] sm:$0xff]  ;;  %1080 = vmatpush1.bf16.msra.mxu1 %v3790_v10  ;;  %v146_v21 = vld [vmem:[#allocation10 + $0x168] sm:$0xff] }
  0x51   :  { %5702 = vst [vmem:[#allocation24_spill] sm:$0xff] %v3795_v15  ;;  %1039 = vmatpush1.bf16.msra.mxu0 %v3786_v7  ;;  %5704 = vst [vmem:[#allocation26_spill] sm:$0xff] %v3803_v18  ;;  %v145_v19 = vld [vmem:[#allocation10 + $0x160] sm:$0xff]  ;;  %1081 = vmatprep.subr.bf16.mxu1 %v3795_v15  ;;  %v3809_v23 = vcombine.high %v142_v20, %v146_v21  ;;  %v134_v26 = vld [vmem:[#allocation10 + $0x108] sm:$0xff]  ;;  %v3814_v28 = vcombine.low %v142_v20, %v146_v21  ;;  %p3678_p5 = por %p3677_p4, %p3676_p3 }
  0x52   :  { %5701 = vst [vmem:[#allocation23_spill] sm:$0xff] %v3793_v14  ;;  %5703 = vst [vmem:[#allocation25_spill] sm:$0xff] %v3799_v16  ;;  %1040 = vmatprep.subr.bf16.mxu0 %v3793_v14  ;;  %v3807_v22 = vcombine.high %v141_v17, %v145_v19  ;;  %v133_v24 = vld [vmem:[#allocation10 + $0x100] sm:$0xff]  ;;  %v3812_v27 = vcombine.low %v141_v17, %v145_v19  ;;  %v138_v30 = vld [vmem:[#allocation10 + $0x128] sm:$0xff] }
  0x53   :  { %5706 = vst [vmem:[#allocation28_spill] sm:$0xff] %v3809_v23  ;;  %v137_v25 = vld [vmem:[#allocation10 + $0x120] sm:$0xff]  ;;  %5708 = vst [vmem:[#allocation30_spill] sm:$0xff] %v3814_v28  ;;  %v3820_v31 = vcombine.high %v134_v26, %v138_v30  ;;  %v126_v35 = vld [vmem:[#allocation10 + $0xc8] sm:$0xff]  ;;  %v3827_v36 = vcombine.low %v134_v26, %v138_v30  ;;  %p3679_p6 = pnand %p3678_p5, %p3672_p2 }
  0x54   :  { %5705 = vst [vmem:[#allocation27_spill] sm:$0xff] %v3807_v22  ;;  %1082 = vmatpush1.bf16.msra.mxu1 %v3803_v18  ;;  %5707 = vst [vmem:[#allocation29_spill] sm:$0xff] %v3812_v27  ;;  %v3816_v29 = vcombine.high %v133_v24, %v137_v25  ;;  %v3823_v32 = vcombine.low %v133_v24, %v137_v25  ;;  %v125_v33 = vld [vmem:[#allocation10 + $0xc0] sm:$0xff]  ;;  %v130_v38 = vld [vmem:[#allocation10 + $0xe8] sm:$0xff] }
  0x55   :  { %1041 = vmatpush1.bf16.msra.mxu0 %v3799_v16  ;;  %1083 = vmatprep.subr.bf16.mxu1 %v3809_v23  ;;  %5710 = vst [vmem:[#allocation32_spill] sm:$0xff] %v3820_v31  ;;  %v129_v34 = vld [vmem:[#allocation10 + $0xe0] sm:$0xff]  ;;  %5712 = vst [vmem:[#allocation34_spill] sm:$0xff] %v3827_v36  ;;  %v3832_v39 = vcombine.high %v126_v35, %v130_v38  ;;  %v118_v43 = vld [vmem:[#allocation10 + $0x88] sm:$0xff]  ;;  %v3839_v44 = vcombine.low %v126_v35, %v130_v38 }
  0x56   :  { %5709 = vst [vmem:[#allocation31_spill] sm:$0xff] %v3816_v29  ;;  %1042 = vmatprep.subr.bf16.mxu0 %v3807_v22  ;;  %5711 = vst [vmem:[#allocation33_spill] sm:$0xff] %v3823_v32  ;;  %v3829_v37 = vcombine.high %v125_v33, %v129_v34  ;;  %v3835_v40 = vcombine.low %v125_v33, %v129_v34  ;;  %v117_v41 = vld [vmem:[#allocation10 + $0x80] sm:$0xff]  ;;  %v122_v46 = vld [vmem:[#allocation10 + $0xa8] sm:$0xff] }
  0x57   :  { %5714 = vst [vmem:[#allocation36_spill] sm:$0xff] %v3832_v39  ;;  %v121_v42 = vld [vmem:[#allocation10 + $0xa0] sm:$0xff]  ;;  %5716 = vst [vmem:[#allocation38_spill] sm:$0xff] %v3839_v44  ;;  %v3844_v47 = vcombine.high %v118_v43, %v122_v46  ;;  %v110_v51 = vld [vmem:[#allocation10 + $0x48] sm:$0xff]  ;;  %v3851_v52 = vcombine.low %v118_v43, %v122_v46 }
  0x58   :  { %1084 = vmatpush1.bf16.msra.mxu1 %v3814_v28  ;;  %5713 = vst [vmem:[#allocation35_spill] sm:$0xff] %v3829_v37  ;;  %5715 = vst [vmem:[#allocation37_spill] sm:$0xff] %v3835_v40  ;;  %v3841_v45 = vcombine.high %v117_v41, %v121_v42  ;;  %v3847_v48 = vcombine.low %v117_v41, %v121_v42  ;;  %v109_v49 = vld [vmem:[#allocation10 + $0x40] sm:$0xff]  ;;  %v114_v54 = vld [vmem:[#allocation10 + $0x68] sm:$0xff] }
  0x59   :  { %1043 = vmatpush1.bf16.msra.mxu0 %v3812_v27  ;;  %1085 = vmatprep.subr.bf16.mxu1 %v3820_v31  ;;  %5718 = vst [vmem:[#allocation40_spill] sm:$0xff] %v3844_v47  ;;  %v113_v50 = vld [vmem:[#allocation10 + $0x60] sm:$0xff]  ;;  %5720 = vst [vmem:[#allocation42_spill] sm:$0xff] %v3851_v52  ;;  %v3856_v57 = vcombine.high %v110_v51, %v114_v54  ;;  %v102_v58 = vld [vmem:[#allocation10 + $0x8] sm:$0xff]  ;;  %v3863_v61 = vcombine.low %v110_v51, %v114_v54 }
  0x5a   :  { %1044 = vmatprep.subr.bf16.mxu0 %v3816_v29  ;;  %5717 = vst [vmem:[#allocation39_spill] sm:$0xff] %v3841_v45  ;;  %5719 = vst [vmem:[#allocation41_spill] sm:$0xff] %v3847_v48  ;;  %v3853_v53 = vcombine.high %v109_v49, %v113_v50  ;;  %v101_v55 = vld [vmem:[#allocation10] sm:$0xff]  ;;  %v106_v59 = vld [vmem:[#allocation10 + $0x28] sm:$0xff]  ;;  %v3859_v60 = vcombine.low %v109_v49, %v113_v50 }
  0x5b   :  { %v105_v56 = vld [vmem:[#allocation10 + $0x20] sm:$0xff]  ;;  %5722 = vst [vmem:[#allocation44_spill] sm:$0xff] %v3856_v57  ;;  %5724 = vst [vmem:[#allocation46_spill] sm:$0xff] %v3863_v61  ;;  %v3868_v63 = vcombine.high %v102_v58, %v106_v59  ;;  %v222_v3 = vld [vmem:[#allocation10 + $0x3c8] sm:$0xff]  ;;  %v3875_v8 = vcombine.low %v102_v58, %v106_v59 }
  0x5c   :  { %1086 = vmatpush1.bf16.msra.mxu1 %v3827_v36  ;;  %5721 = vst [vmem:[#allocation43_spill] sm:$0xff] %v3853_v53  ;;  %5723 = vst [vmem:[#allocation45_spill] sm:$0xff] %v3859_v60  ;;  %v3865_v62 = vcombine.high %v101_v55, %v105_v56  ;;  %v221_v0 = vld [vmem:[#allocation10 + $0x3c0] sm:$0xff]  ;;  %v226_v5 = vld [vmem:[#allocation10 + $0x3e8] sm:$0xff]  ;;  %v3871_v6 = vcombine.low %v101_v55, %v105_v56 }
  0x5d   :  { %1045 = vmatpush1.bf16.msra.mxu0 %v3823_v32  ;;  %1087 = vmatprep.subr.bf16.mxu1 %v3832_v39  ;;  %5726 = vst [vmem:[#allocation48_spill] sm:$0xff] %v3868_v63  ;;  %v225_v2 = vld [vmem:[#allocation10 + $0x3e0] sm:$0xff]  ;;  %5728 = vst [vmem:[#allocation50_spill] sm:$0xff] %v3875_v8  ;;  %v3880_v12 = vcombine.high %v222_v3, %v226_v5  ;;  %v214_v19 = vld [vmem:[#allocation10 + $0x388] sm:$0xff]  ;;  %v3887_v24 = vcombine.low %v222_v3, %v226_v5 }
  0x5e   :  { %1046 = vmatprep.subr.bf16.mxu0 %v3829_v37  ;;  %5725 = vst [vmem:[#allocation47_spill] sm:$0xff] %v3865_v62  ;;  %5727 = vst [vmem:[#allocation49_spill] sm:$0xff] %v3871_v6  ;;  %v3877_v11 = vcombine.high %v221_v0, %v225_v2  ;;  %v213_v13 = vld [vmem:[#allocation10 + $0x380] sm:$0xff]  ;;  %v218_v20 = vld [vmem:[#allocation10 + $0x3a8] sm:$0xff]  ;;  %v3883_v21 = vcombine.low %v221_v0, %v225_v2 }
  0x5f   :  { %5730 = vst [vmem:[#allocation52_spill] sm:$0xff] %v3880_v12  ;;  %v217_v17 = vld [vmem:[#allocation10 + $0x3a0] sm:$0xff]  ;;  %5732 = vst [vmem:[#allocation54_spill] sm:$0xff] %v3887_v24  ;;  %v3892_v26 = vcombine.high %v214_v19, %v218_v20  ;;  %v206_v34 = vld [vmem:[#allocation10 + $0x348] sm:$0xff]  ;;  %v3899_v41 = vcombine.low %v214_v19, %v218_v20 }
  0x60   :  { %1088 = vmatpush1.bf16.msra.mxu1 %v3839_v44  ;;  %5729 = vst [vmem:[#allocation51_spill] sm:$0xff] %v3877_v11  ;;  %5731 = vst [vmem:[#allocation53_spill] sm:$0xff] %v3883_v21  ;;  %v3889_v25 = vcombine.high %v213_v13, %v217_v17  ;;  %v205_v30 = vld [vmem:[#allocation10 + $0x340] sm:$0xff]  ;;  %v210_v35 = vld [vmem:[#allocation10 + $0x368] sm:$0xff]  ;;  %v3895_v38 = vcombine.low %v213_v13, %v217_v17 }
  0x61   :  { %1047 = vmatpush1.bf16.msra.mxu0 %v3835_v40  ;;  %1089 = vmatprep.subr.bf16.mxu1 %v3844_v47  ;;  %5734 = vst [vmem:[#allocation56_spill] sm:$0xff] %v3892_v26  ;;  %v209_v33 = vld [vmem:[#allocation10 + $0x360] sm:$0xff]  ;;  %5736 = vst [vmem:[#allocation58_spill] sm:$0xff] %v3899_v41  ;;  %v3904_v43 = vcombine.high %v206_v34, %v210_v35  ;;  %v198_v50 = vld [vmem:[#allocation10 + $0x308] sm:$0xff]  ;;  %v3911_v55 = vcombine.low %v206_v34, %v210_v35 }
  0x62   :  { %1048 = vmatprep.subr.bf16.mxu0 %v3841_v45  ;;  %5733 = vst [vmem:[#allocation55_spill] sm:$0xff] %v3889_v25  ;;  %5735 = vst [vmem:[#allocation57_spill] sm:$0xff] %v3895_v38  ;;  %v3901_v42 = vcombine.high %v205_v30, %v209_v33  ;;  %v197_v46 = vld [vmem:[#allocation10 + $0x300] sm:$0xff]  ;;  %v202_v51 = vld [vmem:[#allocation10 + $0x328] sm:$0xff]  ;;  %v3907_v54 = vcombine.low %v205_v30, %v209_v33 }
  0x63   :  { %5738 = vst [vmem:[#allocation60_spill] sm:$0xff] %v3904_v43  ;;  %v201_v49 = vld [vmem:[#allocation10 + $0x320] sm:$0xff]  ;;  %5740 = vst [vmem:[#allocation62_spill] sm:$0xff] %v3911_v55  ;;  %v3916_v58 = vcombine.high %v198_v50, %v202_v51  ;;  %v190_v2 = vld [vmem:[#allocation10 + $0x2c8] sm:$0xff]  ;;  %v3923_v13 = vcombine.low %v198_v50, %v202_v51 }
  0x64   :  { %1090 = vmatpush1.bf16.msra.mxu1 %v3851_v52  ;;  %5737 = vst [vmem:[#allocation59_spill] sm:$0xff] %v3901_v42  ;;  %5739 = vst [vmem:[#allocation61_spill] sm:$0xff] %v3907_v54  ;;  %v3913_v56 = vcombine.high %v197_v46, %v201_v49  ;;  %v189_v59 = vld [vmem:[#allocation10 + $0x2c0] sm:$0xff]  ;;  %v194_v3 = vld [vmem:[#allocation10 + $0x2e8] sm:$0xff]  ;;  %v3919_v5 = vcombine.low %v197_v46, %v201_v49 }
  0x65   :  { %1049 = vmatpush1.bf16.msra.mxu0 %v3847_v48  ;;  %1091 = vmatprep.subr.bf16.mxu1 %v3856_v57  ;;  %5742 = vst [vmem:[#allocation64_spill] sm:$0xff] %v3916_v58  ;;  %v193_v0 = vld [vmem:[#allocation10 + $0x2e0] sm:$0xff]  ;;  %5744 = vst [vmem:[#allocation66_spill] sm:$0xff] %v3923_v13  ;;  %v3928_v19 = vcombine.high %v190_v2, %v194_v3  ;;  %v182_v33 = vld [vmem:[#allocation10 + $0x288] sm:$0xff]  ;;  %v3935_v46 = vcombine.low %v190_v2, %v194_v3 }
  0x66   :  { %1050 = vmatprep.subr.bf16.mxu0 %v3853_v53  ;;  %5741 = vst [vmem:[#allocation63_spill] sm:$0xff] %v3913_v56  ;;  %5743 = vst [vmem:[#allocation65_spill] sm:$0xff] %v3919_v5  ;;  %v3925_v17 = vcombine.high %v189_v59, %v193_v0  ;;  %v181_v20 = vld [vmem:[#allocation10 + $0x280] sm:$0xff]  ;;  %v186_v34 = vld [vmem:[#allocation10 + $0x2a8] sm:$0xff]  ;;  %v3931_v35 = vcombine.low %v189_v59, %v193_v0 }
  0x67   :  { %5746 = vst [vmem:[#allocation68_spill] sm:$0xff] %v3928_v19  ;;  %v185_v30 = vld [vmem:[#allocation10 + $0x2a0] sm:$0xff]  ;;  %5748 = vst [vmem:[#allocation70_spill] sm:$0xff] %v3935_v46  ;;  %v3940_v50 = vcombine.high %v182_v33, %v186_v34  ;;  %v3947_v0 = vcombine.low %v182_v33, %v186_v34 }
  0x68   :  { %1092 = vmatpush1.bf16.msra.mxu1 %v3863_v61  ;;  %5745 = vst [vmem:[#allocation67_spill] sm:$0xff] %v3925_v17  ;;  %5747 = vst [vmem:[#allocation69_spill] sm:$0xff] %v3931_v35  ;;  %v3937_v49 = vcombine.high %v181_v20, %v185_v30  ;;  %v173_v51 = vld [vmem:[#allocation10 + $0x240] sm:$0xff]  ;;  %v3943_v59 = vcombine.low %v181_v20, %v185_v30 }
  0x69   :  { %1051 = vmatpush1.bf16.msra.mxu0 %v3859_v60  ;;  %1093 = vmatprep.subr.bf16.mxu1 %v3868_v63  ;;  %5750 = vst [vmem:[#allocation72_spill] sm:$0xff] %v3940_v50  ;;  %5752 = vst [vmem:[#allocation74_spill] sm:$0xff] %v3947_v0 }
  0x6a   :  { %1052 = vmatprep.subr.bf16.mxu0 %v3865_v62  ;;  %5749 = vst [vmem:[#allocation71_spill] sm:$0xff] %v3937_v49  ;;  %5751 = vst [vmem:[#allocation73_spill] sm:$0xff] %v3943_v59 }
  0x6c   :  { %1094 = vmatpush1.bf16.msra.mxu1 %v3875_v8 }
  0x6d   :  { %1053 = vmatpush1.bf16.msra.mxu0 %v3871_v6  ;;  %1095 = vmatprep.subr.bf16.mxu1 %v3880_v12 }
  0x6e   :  { %1054 = vmatprep.subr.bf16.mxu0 %v3877_v11 }
  0x70   :  { %1096 = vmatpush2.bf16.msra.mxu1 %v3887_v24 }
  0x71   :  { %1055 = vmatpush2.bf16.msra.mxu0 %v3883_v21  ;;  %1097 = vmatprep.subr.bf16.mxu1 %v3892_v26 }
  0x72   :  { %1056 = vmatprep.subr.bf16.mxu0 %v3889_v25 }
  0x74   :  { %1098 = vmatpush2.bf16.msra.mxu1 %v3899_v41 }
  0x75   :  { %1057 = vmatpush2.bf16.msra.mxu0 %v3895_v38  ;;  %1099 = vmatprep.subr.bf16.mxu1 %v3904_v43 }
  0x76   :  { %1058 = vmatprep.subr.bf16.mxu0 %v3901_v42 }
  0x78   :  { %1100 = vmatpush2.bf16.msra.mxu1 %v3911_v55  ;;  %v178_v55 = vld [vmem:[#allocation10 + $0x268] sm:$0xff] }
  0x79   :  { %1059 = vmatpush2.bf16.msra.mxu0 %v3907_v54  ;;  %1101 = vmatprep.subr.bf16.mxu1 %v3916_v58  ;;  %v177_v58 = vld [vmem:[#allocation10 + $0x260] sm:$0xff] }
  0x7a   :  { %1060 = vmatprep.subr.bf16.mxu0 %v3913_v56  ;;  %v174_v56 = vld [vmem:[#allocation10 + $0x248] sm:$0xff]  ;;  %v3949_v2 = vcombine.high %v173_v51, %v177_v58  ;;  %v3955_v20 = vcombine.low %v173_v51, %v177_v58 }
  0x7b   :  { %v3952_v3 = vcombine.high %v174_v56, %v178_v55  ;;  %v3959_v30 = vcombine.low %v174_v56, %v178_v55 }
  0x7c   :  { %1102 = vmatpush2.bf16.msra.mxu1 %v3923_v13  ;;  %5753 = vst [vmem:[#allocation75_spill] sm:$0xff] %v3949_v2  ;;  %v166_v13 = vld [vmem:[#allocation10 + $0x208] sm:$0xff]  ;;  %5755 = vst [vmem:[#allocation77_spill] sm:$0xff] %v3955_v20 }
  0x7d   :  { %1061 = vmatpush2.bf16.msra.mxu0 %v3919_v5  ;;  %1103 = vmatprep.subr.bf16.mxu1 %v3928_v19  ;;  %5754 = vst [vmem:[#allocation76_spill] sm:$0xff] %v3952_v3  ;;  %v165_v19 = vld [vmem:[#allocation10 + $0x200] sm:$0xff]  ;;  %v170_v5 = vld [vmem:[#allocation10 + $0x228] sm:$0xff]  ;;  %5756 = vst [vmem:[#allocation78_spill] sm:$0xff] %v3959_v30 }
  0x7e   :  { %1062 = vmatprep.subr.bf16.mxu0 %v3925_v17  ;;  %v169_v17 = vld [vmem:[#allocation10 + $0x220] sm:$0xff]  ;;  %v3964_v34 = vcombine.high %v166_v13, %v170_v5  ;;  %v3975_v55 = vcombine.low %v166_v13, %v170_v5 }
  0x7f   :  { %v3961_v33 = vcombine.high %v165_v19, %v169_v17  ;;  %v3969_v58 = vcombine.low %v165_v19, %v169_v17  ;;  %v239_v17 = vlaneseq }
  0x80   :  { %1104 = vmatpush2.bf16.msra.mxu1 %v3935_v46  ;;  %5758 = vst [vmem:[#allocation80_spill] sm:$0xff] %v3964_v34  ;;  %v160_v46 = vld [vmem:[#allocation10 + $0x1d8] sm:$0xff]  ;;  %5761 = vst [vmem:[#allocation83_spill] sm:$0xff] %v3975_v55 }
  0x81   :  { %1063 = vmatpush2.bf16.msra.mxu0 %v3931_v35  ;;  %1105 = vmatprep.subr.bf16.mxu1 %v3940_v50  ;;  %5757 = vst [vmem:[#allocation79_spill] sm:$0xff] %v3961_v33  ;;  %v159_v50 = vld [vmem:[#allocation10 + $0x1d0] sm:$0xff]  ;;  %v164_v35 = vld [vmem:[#allocation10 + $0x1f8] sm:$0xff]  ;;  %5759 = vst [vmem:[#allocation81_spill] sm:$0xff] %v3969_v58  ;;  %v240_v19 = vshrl.u32 %v239_v17, 7 }
  0x82   :  { %1064 = vmatprep.subr.bf16.mxu0 %v3937_v49  ;;  %v163_v49 = vld [vmem:[#allocation10 + $0x1f0] sm:$0xff]  ;;  %v3971_v51 = vcombine.low %v160_v46, %v164_v35 }
  0x83   :  { %v3966_v54 = vcombine.low %v159_v50, %v163_v49  ;;  %v3977_v56 = vcombine.high %v159_v50, %v163_v49  ;;  %v3988_v5 = vsub.s32 1, %v240_v19  ;;  %v3990_v13 = vsub.s32 2, %v240_v19 }
  0x84   :  { %1106 = vmatpush2.bf16.msra.mxu1 %v3947_v0  ;;  %5760 = vst [vmem:[#allocation82_spill] sm:$0xff] %v3971_v51  ;;  %v3992_v49 = vsub.s32 3, %v240_v19 }
  0x85   :  { %1065 = vmatpush2.bf16.msra.mxu0 %v3943_v59  ;;  %1107 = vmatprep.subr.bf16.mxu1 %v3952_v3  ;;  %5762 = vst [vmem:[#allocation84_spill] sm:$0xff] %v3977_v56  ;;  %v3980_v3 = vcombine.high %v160_v46, %v164_v35  ;;  %5765 = vst [vmem:[#allocation87_spill] sm:$0xff] %v3988_v5  ;;  %v229_v35 = vld [vmem:[#allocation5] sm:$0xff]  ;;  %v230_v46 = vld [vmem:[#allocation7] sm:$0xff]  ;;  %v3712_v59 = vmov 1  }
  0x86   :  { %1066 = vmatprep.subr.bf16.mxu0 %v3949_v2  ;;  %5766 = vst [vmem:[#allocation88_spill] sm:$0xff] %v3990_v13  ;;  %5767 = vst [vmem:[#allocation89_spill] sm:$0xff] %v3992_v49  ;;  %v4004_v17 = vrot.slane %v229_v35, %v3992_v49  ;;  %v4012_v2 = vsub.s32 5, %v240_v19  ;;  %3268 = vset.pattern.permute.xlu0 %v3712_v59 }
  0x87   :  { %5763 = vst [vmem:[#allocation85_spill] sm:$0xff] %v3980_v3  ;;  %387 = vperm.xlu0 %3268, %v3781_v1  }
  0x88   :  { %1108 = vmatpush2.bf16.msra.mxu1 %v3959_v30  ;;  %v3986_v30 = vsub.s32 0, %v240_v19  ;;  %5771 = vst [vmem:[#allocation93_spill] sm:$0xff] %v4004_v17  ;;  %5772 = vst [vmem:[#allocation94_spill] sm:$0xff] %v4012_v2  ;;  %v4025_v59 = vrot.slane %v229_v35, %v4012_v2 }
  0x89   :  { %1067 = vmatpush2.bf16.msra.mxu0 %v3955_v20  ;;  %1109 = vmatprep.subr.bf16.mxu1 %v3964_v34  ;;  %v299_v34 = vrot.slane %v230_v46, %v3990_v13  ;;  %v4010_v20 = vsub.s32 4, %v240_v19 }
  0x8a   :  { %1068 = vmatprep.subr.bf16.mxu0 %v3961_v33  ;;  %5764 = vst [vmem:[#allocation86_spill] sm:$0xff] %v3986_v30  ;;  %v3995_v50 = vrot.slane %v229_v35, %v3986_v30  ;;  %v303_v33 = vrot.slane %v230_v46, %v3992_v49  ;;  %5775 = vst [vmem:[#allocation97_spill] sm:$0xff] %v4025_v59 }
  0x8b   :  { %v4022_v25 = vrot.slane %v229_v35, %v4010_v20 }
  0x8c   :  { %1110 = vmatpush2.bf16.msra.mxu1 %v3975_v55  ;;  %5768 = vst [vmem:[#allocation90_spill] sm:$0xff] %v3995_v50  ;;  %v3998_v55 = vrot.slane %v229_v35, %v3988_v5 }
  0x8d   :  { %1069 = vmatpush2.bf16.msra.mxu0 %v3969_v58  ;;  %1161 = vmatprep.subr.bf16.mxu1 %v3980_v3  ;;  %v4001_v3 = vrot.slane %v229_v35, %v3990_v13  ;;  %v295_v58 = vrot.slane %v230_v46, %v3988_v5  ;;  %v4019_v5 = vsub.s32 6, %v240_v19  ;;  %5774 = vst [vmem:[#allocation96_spill] sm:$0xff] %v4022_v25 }
  0x8e   :  { %1120 = vmatprep.subr.bf16.mxu0 %v3977_v56  ;;  %5769 = vst [vmem:[#allocation91_spill] sm:$0xff] %v3998_v55  ;;  %v291_v56 = vrot.slane %v230_v46, %v3986_v30 }
  0x8f   :  { %5770 = vst [vmem:[#allocation92_spill] sm:$0xff] %v4001_v3  ;;  %5773 = vst [vmem:[#allocation95_spill] sm:$0xff] %v4019_v5  ;;  %v4030_v1 = vrot.slane %v229_v35, %v4019_v5 }
  0x91   :  { %5776 = vst [vmem:[#allocation98_spill] sm:$0xff] %v4030_v1 }
  0xc8   :  { %v236_v0 = vpop.permute.xlu0 %235 }
  0xc9   :  { %v279_v43 = vmul.f32 %v3995_v50, %v236_v0  ;;  %v280_v42 = vmul.f32 %v3998_v55, %v236_v0  ;;  %v281_v41 = vmul.f32 %v4001_v3, %v236_v0  ;;  %v282_v30 = vmul.f32 %v4004_v17, %v236_v0 }
  0xca   :  { %v4027_v3 = vsub.s32 7, %v240_v19 }
  0xcb   :  { %v328_v49 = vadd.f32 %v291_v56, %v279_v43  ;;  %v329_v13 = vadd.f32 %v295_v58, %v280_v42  ;;  %v330_v38 = vadd.f32 %v299_v34, %v281_v41  ;;  %v331_v26 = vadd.f32 %v303_v33, %v282_v30 }
  0xcc   :  { %v283_v42 = vmul.f32 %v4022_v25, %v236_v0  ;;  %v307_v41 = vrot.slane %v230_v46, %v4010_v20  ;;  %v284_v43 = vmul.f32 %v4025_v59, %v236_v0  ;;  %v311_v30 = vrot.slane %v230_v46, %v4012_v2 }
  0xcd   :  { %v3013_v50 = vmul.f32 -1.442695, %v328_v49  ;;  %v3014_v55 = vmul.f32 -1.442695, %v329_v13  ;;  %v3015_v24 = vmul.f32 -1.442695, %v330_v38  ;;  %v4037_v33 = vrot.slane %v229_v35, %v4027_v3 }
  0xce   :  { %v3016_v17 = vmul.f32 -1.442695, %v331_v26  ;;  %v285_v26 = vmul.f32 %v4030_v1, %v236_v0  ;;  %v315_v38 = vrot.slane %v230_v46, %v4019_v5  ;;  %v332_v34 = vadd.f32 %v307_v41, %v283_v42 }
  0xcf   :  { %3276 = vpow2.f32 %v3013_v50  ;;  %v333_v58 = vadd.f32 %v311_v30, %v284_v43  ;;  %v286_v56 = vmul.f32 %v4037_v33, %v236_v0  ;;  %v319_v19 = vrot.slane %v230_v46, %v4027_v3 }
  0xd0   :  { %3278 = vpow2.f32 %v3014_v55  ;;  %v334_v55 = vadd.f32 %v315_v38, %v285_v26  ;;  %v3017_v13 = vmul.f32 -1.442695, %v332_v34 }
  0xd1   :  { %3280 = vpow2.f32 %v3015_v24  ;;  %v3018_v49 = vmul.f32 -1.442695, %v333_v58  ;;  %v335_v50 = vadd.f32 %v319_v19, %v286_v56 }
  0xd2   :  { %3282 = vpow2.f32 %v3016_v17 }
  0xd3   :  { %3284 = vtanh.f32 %v334_v55 }
  0xd4   :  { %3286 = vpow2.f32 %v3017_v13 }
  0xd5   :  { %3288 = vpow2.f32 %v3018_v49 }
  0xd6   :  { %3290 = vtanh.f32 %v335_v50 }
  0xdc   :  { %v3277_v24 = vpop.eup %3276 }
  0xdd   :  { %v3279_v35 = vpop.eup %3278  ;;  %v354_v17 = vadd.f32 1.0, %v3277_v24 }
  0xde   :  { %v3281_v59 = vpop.eup %3280  ;;  %v355_v2 = vadd.f32 1.0, %v3279_v35 }
  0xdf   :  { %v3283_v5 = vpop.eup %3282  ;;  %v356_v42 = vadd.f32 1.0, %v3281_v59  ;;  %3292 = vrcp.f32 %v354_v17 }
  0xe0   :  { %v357_v41 = vadd.f32 1.0, %v3283_v5  ;;  %3294 = vrcp.f32 %v355_v2  ;;  %v3285_v0 = vpop.eup %3284 }
  0xe1   :  { %3296 = vrcp.f32 %v356_v42  ;;  %v3287_v46 = vpop.eup %3286 }
  0xe2   :  { %3298 = vrcp.f32 %v357_v41  ;;  %v3289_v43 = vpop.eup %3288  ;;  %v358_v34 = vadd.f32 1.0, %v3287_v46 }
  0xe3   :  { %v3291_v30 = vpop.eup %3290  ;;  %v359_v19 = vadd.f32 1.0, %v3289_v43  ;;  %v155_v43 = vld [vmem:[#allocation10 + $0x1b0] sm:$0xff] }
  0xe4   :  { %3300 = vrcp.f32 %v358_v34  ;;  %v143_v34 = vld [vmem:[#allocation10 + $0x150] sm:$0xff] }
  0xe5   :  { %3302 = vrcp.f32 %v359_v19  ;;  %v147_v19 = vld [vmem:[#allocation10 + $0x170] sm:$0xff] }
  0xec   :  { %v3293_v26 = vpop.eup %3292 }
  0xed   :  { %v3295_v38 = vpop.eup %3294  ;;  %v376_v58 = vmul.f32 %v3293_v26, %v3285_v0  ;;  %v151_v0 = vld [vmem:[#allocation10 + $0x190] sm:$0xff]  ;;  %v156_v26 = vld [vmem:[#allocation10 + $0x1b8] sm:$0xff] }
  0xee   :  { %v3297_v56 = vpop.eup %3296  ;;  %v377_v55 = vmul.f32 %v3295_v38, %v3291_v30  ;;  %v152_v30 = vld [vmem:[#allocation10 + $0x198] sm:$0xff] }
  0xef   :  { %v3299_v13 = vpop.eup %3298  ;;  %v374_v49 = vmul.f32 0.0, %v3297_v56  ;;  %v4053_v56 = vcombine.high %v152_v30, %v156_v26 }
  0xf0   :  { %v375_v50 = vmul.f32 0.0, %v3299_v13  ;;  %v148_v13 = vld [vmem:[#allocation10 + $0x178] sm:$0xff] }
  0xf1   :  { %v4043_v59 = vadd.f32 %v376_v58, %v374_v49  ;;  %v3301_v5 = vpop.eup %3300  ;;  %v4051_v58 = vcombine.high %v151_v0, %v155_v43  ;;  %5778 = vst [vmem:[#allocation100_spill] sm:$0xff] %v4053_v56  ;;  %v4059_v49 = vcombine.low %v151_v0, %v155_v43  ;;  %v4071_v0 = vcombine.low %v143_v34, %v147_v19 }
  0xf2   :  { %v4045_v2 = vadd.f32 %v377_v55, %v375_v50  ;;  %v3303_v24 = vpop.eup %3302  ;;  %v144_v55 = vld [vmem:[#allocation10 + $0x158] sm:$0xff]  ;;  %v4061_v50 = vcombine.low %v152_v30, %v156_v26 }
  0xf3   :  { %3304 = vtanh.f32 %v4043_v59  ;;  %5777 = vst [vmem:[#allocation99_spill] sm:$0xff] %v4051_v58  ;;  %5779 = vst [vmem:[#allocation101_spill] sm:$0xff] %v4059_v49  ;;  %v4073_v43 = vcombine.low %v144_v55, %v148_v13 }
  0xf4   :  { %3306 = vtanh.f32 %v4045_v2  ;;  %5780 = vst [vmem:[#allocation102_spill] sm:$0xff] %v4061_v50  ;;  %5783 = vst [vmem:[#allocation105_spill] sm:$0xff] %v4071_v0 }
  0xf5   :  { %5784 = vst [vmem:[#allocation106_spill] sm:$0xff] %v4073_v43 }
 0x100   :  { %v3305_v35 = vpop.eup %3304 }
 0x101   :  { %v3307_v17 = vpop.eup %3306  ;;  %v382_v42 = vmul.f32 %v3305_v35, %v3301_v5  ;;  %v4063_v5 = vcombine.high %v143_v34, %v147_v19  ;;  %v135_v35 = vld [vmem:[#allocation10 + $0x110] sm:$0xff] }
 0x102   :  { %v383_v41 = vmul.f32 %v3307_v17, %v3303_v24  ;;  %v4065_v24 = vcombine.high %v144_v55, %v148_v13  ;;  %v139_v17 = vld [vmem:[#allocation10 + $0x130] sm:$0xff] }
 0x103   :  { %v4049_v46 = vpack.c.bf16 %v382_v42, %v382_v42  ;;  %5781 = vst [vmem:[#allocation103_spill] sm:$0xff] %v4063_v5  ;;  %v136_v42 = vld [vmem:[#allocation10 + $0x118] sm:$0xff]  ;;  %v4077_v30 = vcombine.high %v135_v35, %v139_v17  ;;  %v4083_v34 = vcombine.low %v135_v35, %v139_v17 }
 0x104   :  { %v385_v38 = vpack.c.bf16 %v383_v41, %v383_v41  ;;  %5782 = vst [vmem:[#allocation104_spill] sm:$0xff] %v4065_v24  ;;  %v140_v41 = vld [vmem:[#allocation10 + $0x138] sm:$0xff] }
 0x105   :  { %5785 = vst [vmem:[#allocation107_spill] sm:$0xff] %v4077_v30  ;;  %v4079_v26 = vcombine.high %v136_v42, %v140_v41  ;;  %5787 = vst [vmem:[#allocation109_spill] sm:$0xff] %v4083_v34  ;;  %v4085_v19 = vcombine.low %v136_v42, %v140_v41 }
 0x106   :  { %1070 = vmatprep.mubr.bf16.mxu0 %v385_v38  ;;  %1111 = vmatprep.mubr.bf16.mxu1 %v385_v38 }
 0x107   :  { %1071 = vmatmul.mubr.bf16.vlgmr.msra.gmra.mxu0 %v4049_v46  ;;  %1112 = vmatmul.mubr.bf16.vlgmr.msra.gmra.mxu1 %v4049_v46  ;;  %5786 = vst [vmem:[#allocation108_spill] sm:$0xff] %v4079_v26  ;;  %5788 = vst [vmem:[#allocation110_spill] sm:$0xff] %v4085_v19 }
 0x108   :  { %1121 = vmatpush1.bf16.msra.mxu0 %v3966_v54  ;;  %1162 = vmatpush1.bf16.msra.mxu1 %v3971_v51  ;;  %v132_v51 = vld [vmem:[#allocation10 + $0xf8] sm:$0xff] }
 0x109   :  { %1152 = vmatprep.mubr.bf16.mxu0 %v385_v38  ;;  %1193 = vmatprep.mubr.bf16.mxu1 %v385_v38  ;;  %v127_v38 = vld [vmem:[#allocation10 + $0xd0] sm:$0xff] }
 0x10a   :  { %1122 = vmatprep.subr.bf16.mxu0 %v4051_v58  ;;  %1163 = vmatprep.subr.bf16.mxu1 %v4053_v56  ;;  %v131_v56 = vld [vmem:[#allocation10 + $0xf0] sm:$0xff]  ;;  %v128_v58 = vld [vmem:[#allocation10 + $0xd8] sm:$0xff] }
 0x10b   :  { %v4089_v55 = vcombine.high %v127_v38, %v131_v56  ;;  %v4091_v13 = vcombine.high %v128_v58, %v132_v51  ;;  %v4095_v35 = vcombine.low %v127_v38, %v131_v56  ;;  %v4097_v17 = vcombine.low %v128_v58, %v132_v51 }
 0x10c   :  { %1123 = vmatpush1.bf16.msra.mxu0 %v4059_v49  ;;  %1164 = vmatpush1.bf16.msra.mxu1 %v4061_v50  ;;  %v120_v50 = vld [vmem:[#allocation10 + $0x98] sm:$0xff] }
 0x10d   :  { %1124 = vmatprep.subr.bf16.mxu0 %v4063_v5  ;;  %1165 = vmatprep.subr.bf16.mxu1 %v4065_v24  ;;  %5789 = vst [vmem:[#allocation111_spill] sm:$0xff] %v4089_v55  ;;  %5790 = vst [vmem:[#allocation112_spill] sm:$0xff] %v4091_v13  ;;  %v119_v24 = vld [vmem:[#allocation10 + $0x90] sm:$0xff]  ;;  %v124_v49 = vld [vmem:[#allocation10 + $0xb8] sm:$0xff] }
 0x10e   :  { %v123_v5 = vld [vmem:[#allocation10 + $0xb0] sm:$0xff]  ;;  %5791 = vst [vmem:[#allocation113_spill] sm:$0xff] %v4095_v35  ;;  %5792 = vst [vmem:[#allocation114_spill] sm:$0xff] %v4097_v17  ;;  %v4103_v41 = vcombine.high %v120_v50, %v124_v49  ;;  %v4109_v51 = vcombine.low %v120_v50, %v124_v49 }
 0x10f   :  { %v4101_v42 = vcombine.high %v119_v24, %v123_v5  ;;  %v4107_v56 = vcombine.low %v119_v24, %v123_v5 }
 0x110   :  { %1125 = vmatpush1.bf16.msra.mxu0 %v4071_v0  ;;  %1166 = vmatpush1.bf16.msra.mxu1 %v4073_v43  ;;  %5794 = vst [vmem:[#allocation116_spill] sm:$0xff] %v4103_v41  ;;  %v112_v43 = vld [vmem:[#allocation10 + $0x58] sm:$0xff]  ;;  %5796 = vst [vmem:[#allocation118_spill] sm:$0xff] %v4109_v51 }
 0x111   :  { %1126 = vmatprep.subr.bf16.mxu0 %v4077_v30  ;;  %1167 = vmatprep.subr.bf16.mxu1 %v4079_v26  ;;  %5793 = vst [vmem:[#allocation115_spill] sm:$0xff] %v4101_v42  ;;  %v111_v26 = vld [vmem:[#allocation10 + $0x50] sm:$0xff]  ;;  %v116_v0 = vld [vmem:[#allocation10 + $0x78] sm:$0xff]  ;;  %5795 = vst [vmem:[#allocation117_spill] sm:$0xff] %v4107_v56 }
 0x112   :  { %v115_v30 = vld [vmem:[#allocation10 + $0x70] sm:$0xff]  ;;  %v4115_v38 = vcombine.high %v112_v43, %v116_v0  ;;  %v4121_v49 = vcombine.low %v112_v43, %v116_v0 }
 0x113   :  { %v4113_v58 = vcombine.high %v111_v26, %v115_v30  ;;  %v4119_v5 = vcombine.low %v111_v26, %v115_v30 }
 0x114   :  { %1127 = vmatpush1.bf16.msra.mxu0 %v4083_v34  ;;  %1168 = vmatpush1.bf16.msra.mxu1 %v4085_v19  ;;  %5798 = vst [vmem:[#allocation120_spill] sm:$0xff] %v4115_v38  ;;  %v104_v19 = vld [vmem:[#allocation10 + $0x18] sm:$0xff]  ;;  %5800 = vst [vmem:[#allocation122_spill] sm:$0xff] %v4121_v49 }
 0x115   :  { %1128 = vmatprep.subr.bf16.mxu0 %v4089_v55  ;;  %1169 = vmatprep.subr.bf16.mxu1 %v4091_v13  ;;  %5797 = vst [vmem:[#allocation119_spill] sm:$0xff] %v4113_v58  ;;  %v103_v13 = vld [vmem:[#allocation10 + $0x10] sm:$0xff]  ;;  %v108_v34 = vld [vmem:[#allocation10 + $0x38] sm:$0xff]  ;;  %5799 = vst [vmem:[#allocation121_spill] sm:$0xff] %v4119_v5 }
 0x116   :  { %v107_v55 = vld [vmem:[#allocation10 + $0x30] sm:$0xff]  ;;  %v4127_v24 = vcombine.high %v104_v19, %v108_v34  ;;  %v4133_v0 = vcombine.low %v104_v19, %v108_v34 }
 0x117   :  { %v4125_v50 = vcombine.high %v103_v13, %v107_v55  ;;  %v4131_v30 = vcombine.low %v103_v13, %v107_v55 }
 0x118   :  { %1129 = vmatpush1.bf16.msra.mxu0 %v4095_v35  ;;  %1170 = vmatpush1.bf16.msra.mxu1 %v4097_v17  ;;  %5802 = vst [vmem:[#allocation124_spill] sm:$0xff] %v4127_v24  ;;  %v224_v17 = vld [vmem:[#allocation10 + $0x3d8] sm:$0xff]  ;;  %5804 = vst [vmem:[#allocation126_spill] sm:$0xff] %v4133_v0 }
 0x119   :  { %1130 = vmatprep.subr.bf16.mxu0 %v4101_v42  ;;  %1171 = vmatprep.subr.bf16.mxu1 %v4103_v41  ;;  %5801 = vst [vmem:[#allocation123_spill] sm:$0xff] %v4125_v50  ;;  %v223_v41 = vld [vmem:[#allocation10 + $0x3d0] sm:$0xff]  ;;  %v228_v35 = vld [vmem:[#allocation10 + $0x3f8] sm:$0xff]  ;;  %5803 = vst [vmem:[#allocation125_spill] sm:$0xff] %v4131_v30 }
 0x11a   :  { %v227_v42 = vld [vmem:[#allocation10 + $0x3f0] sm:$0xff]  ;;  %v4139_v26 = vcombine.high %v224_v17, %v228_v35  ;;  %v4145_v34 = vcombine.low %v224_v17, %v228_v35 }
 0x11b   :  { %v4137_v43 = vcombine.high %v223_v41, %v227_v42  ;;  %v4143_v55 = vcombine.low %v223_v41, %v227_v42 }
 0x11c   :  { %1131 = vmatpush1.bf16.msra.mxu0 %v4107_v56  ;;  %1172 = vmatpush1.bf16.msra.mxu1 %v4109_v51  ;;  %5806 = vst [vmem:[#allocation128_spill] sm:$0xff] %v4139_v26  ;;  %v216_v51 = vld [vmem:[#allocation10 + $0x398] sm:$0xff]  ;;  %5808 = vst [vmem:[#allocation130_spill] sm:$0xff] %v4145_v34 }
 0x11d   :  { %1132 = vmatprep.subr.bf16.mxu0 %v4113_v58  ;;  %1173 = vmatprep.subr.bf16.mxu1 %v4115_v38  ;;  %5805 = vst [vmem:[#allocation127_spill] sm:$0xff] %v4137_v43  ;;  %v215_v38 = vld [vmem:[#allocation10 + $0x390] sm:$0xff]  ;;  %v220_v56 = vld [vmem:[#allocation10 + $0x3b8] sm:$0xff]  ;;  %5807 = vst [vmem:[#allocation129_spill] sm:$0xff] %v4143_v55 }
 0x11e   :  { %v219_v58 = vld [vmem:[#allocation10 + $0x3b0] sm:$0xff]  ;;  %v4151_v13 = vcombine.high %v216_v51, %v220_v56  ;;  %v4157_v35 = vcombine.low %v216_v51, %v220_v56 }
 0x11f   :  { %v4149_v19 = vcombine.high %v215_v38, %v219_v58  ;;  %v4155_v42 = vcombine.low %v215_v38, %v219_v58 }
 0x120   :  { %1133 = vmatpush1.bf16.msra.mxu0 %v4119_v5  ;;  %1174 = vmatpush1.bf16.msra.mxu1 %v4121_v49  ;;  %5810 = vst [vmem:[#allocation132_spill] sm:$0xff] %v4151_v13  ;;  %v208_v49 = vld [vmem:[#allocation10 + $0x358] sm:$0xff]  ;;  %5812 = vst [vmem:[#allocation134_spill] sm:$0xff] %v4157_v35 }
 0x121   :  { %1134 = vmatprep.subr.bf16.mxu0 %v4125_v50  ;;  %1175 = vmatprep.subr.bf16.mxu1 %v4127_v24  ;;  %5809 = vst [vmem:[#allocation131_spill] sm:$0xff] %v4149_v19  ;;  %v207_v24 = vld [vmem:[#allocation10 + $0x350] sm:$0xff]  ;;  %v212_v5 = vld [vmem:[#allocation10 + $0x378] sm:$0xff]  ;;  %5811 = vst [vmem:[#allocation133_spill] sm:$0xff] %v4155_v42 }
 0x122   :  { %v211_v50 = vld [vmem:[#allocation10 + $0x370] sm:$0xff]  ;;  %v4163_v41 = vcombine.high %v208_v49, %v212_v5  ;;  %v4169_v56 = vcombine.low %v208_v49, %v212_v5 }
 0x123   :  { %v4161_v17 = vcombine.high %v207_v24, %v211_v50  ;;  %v4167_v58 = vcombine.low %v207_v24, %v211_v50 }
 0x124   :  { %1135 = vmatpush1.bf16.msra.mxu0 %v4131_v30  ;;  %1176 = vmatpush1.bf16.msra.mxu1 %v4133_v0  ;;  %5814 = vst [vmem:[#allocation136_spill] sm:$0xff] %v4163_v41  ;;  %v200_v0 = vld [vmem:[#allocation10 + $0x318] sm:$0xff]  ;;  %5816 = vst [vmem:[#allocation138_spill] sm:$0xff] %v4169_v56 }
 0x125   :  { %1136 = vmatprep.subr.bf16.mxu0 %v4137_v43  ;;  %1177 = vmatprep.subr.bf16.mxu1 %v4139_v26  ;;  %5813 = vst [vmem:[#allocation135_spill] sm:$0xff] %v4161_v17  ;;  %v199_v26 = vld [vmem:[#allocation10 + $0x310] sm:$0xff]  ;;  %v204_v30 = vld [vmem:[#allocation10 + $0x338] sm:$0xff]  ;;  %5815 = vst [vmem:[#allocation137_spill] sm:$0xff] %v4167_v58 }
 0x126   :  { %v203_v43 = vld [vmem:[#allocation10 + $0x330] sm:$0xff]  ;;  %v4175_v38 = vcombine.high %v200_v0, %v204_v30  ;;  %v4181_v5 = vcombine.low %v200_v0, %v204_v30 }
 0x127   :  { %v4173_v51 = vcombine.high %v199_v26, %v203_v43  ;;  %v4179_v50 = vcombine.low %v199_v26, %v203_v43 }
 0x128   :  { %1137 = vmatpush2.bf16.msra.mxu0 %v4143_v55  ;;  %1178 = vmatpush2.bf16.msra.mxu1 %v4145_v34  ;;  %5818 = vst [vmem:[#allocation140_spill] sm:$0xff] %v4175_v38  ;;  %v192_v34 = vld [vmem:[#allocation10 + $0x2d8] sm:$0xff]  ;;  %5820 = vst [vmem:[#allocation142_spill] sm:$0xff] %v4181_v5 }
 0x129   :  { %1138 = vmatprep.subr.bf16.mxu0 %v4149_v19  ;;  %1179 = vmatprep.subr.bf16.mxu1 %v4151_v13  ;;  %5817 = vst [vmem:[#allocation139_spill] sm:$0xff] %v4173_v51  ;;  %v191_v13 = vld [vmem:[#allocation10 + $0x2d0] sm:$0xff]  ;;  %v196_v55 = vld [vmem:[#allocation10 + $0x2f8] sm:$0xff]  ;;  %5819 = vst [vmem:[#allocation141_spill] sm:$0xff] %v4179_v50 }
 0x12a   :  { %v195_v19 = vld [vmem:[#allocation10 + $0x2f0] sm:$0xff]  ;;  %v4187_v24 = vcombine.high %v192_v34, %v196_v55  ;;  %v4193_v30 = vcombine.low %v192_v34, %v196_v55 }
 0x12b   :  { %v4185_v49 = vcombine.high %v191_v13, %v195_v19  ;;  %v4191_v43 = vcombine.low %v191_v13, %v195_v19 }
 0x12c   :  { %1139 = vmatpush2.bf16.msra.mxu0 %v4155_v42  ;;  %1180 = vmatpush2.bf16.msra.mxu1 %v4157_v35  ;;  %5822 = vst [vmem:[#allocation144_spill] sm:$0xff] %v4187_v24  ;;  %v184_v35 = vld [vmem:[#allocation10 + $0x298] sm:$0xff]  ;;  %5824 = vst [vmem:[#allocation146_spill] sm:$0xff] %v4193_v30 }
 0x12d   :  { %1140 = vmatprep.subr.bf16.mxu0 %v4161_v17  ;;  %1181 = vmatprep.subr.bf16.mxu1 %v4163_v41  ;;  %5821 = vst [vmem:[#allocation143_spill] sm:$0xff] %v4185_v49  ;;  %v183_v41 = vld [vmem:[#allocation10 + $0x290] sm:$0xff]  ;;  %v188_v42 = vld [vmem:[#allocation10 + $0x2b8] sm:$0xff]  ;;  %5823 = vst [vmem:[#allocation145_spill] sm:$0xff] %v4191_v43 }
 0x12e   :  { %v187_v17 = vld [vmem:[#allocation10 + $0x2b0] sm:$0xff]  ;;  %v4199_v26 = vcombine.high %v184_v35, %v188_v42  ;;  %v4205_v55 = vcombine.low %v184_v35, %v188_v42 }
 0x12f   :  { %v4197_v0 = vcombine.high %v183_v41, %v187_v17  ;;  %v4203_v19 = vcombine.low %v183_v41, %v187_v17 }
 0x130   :  { %1141 = vmatpush2.bf16.msra.mxu0 %v4167_v58  ;;  %1182 = vmatpush2.bf16.msra.mxu1 %v4169_v56  ;;  %5826 = vst [vmem:[#allocation148_spill] sm:$0xff] %v4199_v26  ;;  %v176_v56 = vld [vmem:[#allocation10 + $0x258] sm:$0xff]  ;;  %5828 = vst [vmem:[#allocation150_spill] sm:$0xff] %v4205_v55 }
 0x131   :  { %1142 = vmatprep.subr.bf16.mxu0 %v4173_v51  ;;  %1183 = vmatprep.subr.bf16.mxu1 %v4175_v38  ;;  %5825 = vst [vmem:[#allocation147_spill] sm:$0xff] %v4197_v0  ;;  %v175_v38 = vld [vmem:[#allocation10 + $0x250] sm:$0xff]  ;;  %v180_v58 = vld [vmem:[#allocation10 + $0x278] sm:$0xff]  ;;  %5827 = vst [vmem:[#allocation149_spill] sm:$0xff] %v4203_v19 }
 0x132   :  { %v179_v51 = vld [vmem:[#allocation10 + $0x270] sm:$0xff]  ;;  %v4211_v13 = vcombine.high %v176_v56, %v180_v58  ;;  %v4217_v42 = vcombine.low %v176_v56, %v180_v58  ;;  %v5838_v58 = vld [vmem:[#allocation55_spill] sm:$0xff] }
 0x133   :  { %v4209_v34 = vcombine.high %v175_v38, %v179_v51  ;;  %v4215_v17 = vcombine.low %v175_v38, %v179_v51  ;;  %v5839_v56 = vld [vmem:[#allocation56_spill] sm:$0xff]  ;;  %v5840_v51 = vld [vmem:[#allocation57_spill] sm:$0xff]  ;;  %v5841_v38 = vld [vmem:[#allocation58_spill] sm:$0xff] }
 0x134   :  { %1143 = vmatpush2.bf16.msra.mxu0 %v4179_v50  ;;  %1184 = vmatpush2.bf16.msra.mxu1 %v4181_v5  ;;  %5830 = vst [vmem:[#allocation152_spill] sm:$0xff] %v4211_v13  ;;  %v168_v5 = vld [vmem:[#allocation10 + $0x218] sm:$0xff]  ;;  %5832 = vst [vmem:[#allocation154_spill] sm:$0xff] %v4217_v42 }
 0x135   :  { %1144 = vmatprep.subr.bf16.mxu0 %v4185_v49  ;;  %1185 = vmatprep.subr.bf16.mxu1 %v4187_v24  ;;  %5829 = vst [vmem:[#allocation151_spill] sm:$0xff] %v4209_v34  ;;  %v167_v24 = vld [vmem:[#allocation10 + $0x210] sm:$0xff]  ;;  %v172_v50 = vld [vmem:[#allocation10 + $0x238] sm:$0xff]  ;;  %5831 = vst [vmem:[#allocation153_spill] sm:$0xff] %v4215_v17 }
 0x136   :  { %v171_v49 = vld [vmem:[#allocation10 + $0x230] sm:$0xff]  ;;  %v4223_v41 = vcombine.high %v168_v5, %v172_v50 }
 0x137   :  { %v4221_v35 = vcombine.high %v167_v24, %v171_v49 }
 0x138   :  { %1145 = vmatpush2.bf16.msra.mxu0 %v4191_v43  ;;  %1186 = vmatpush2.bf16.msra.mxu1 %v4193_v30  ;;  %5834 = vst [vmem:[#allocation156_spill] sm:$0xff] %v4223_v41 }
 0x139   :  { %1146 = vmatprep.subr.bf16.mxu0 %v4197_v0  ;;  %1187 = vmatprep.subr.bf16.mxu1 %v4199_v26  ;;  %5833 = vst [vmem:[#allocation155_spill] sm:$0xff] %v4221_v35  ;;  %v4227_v26 = vcombine.low %v167_v24, %v171_v49  ;;  %v5844_v49 = vld [vmem:[#allocation61_spill] sm:$0xff]  ;;  %v5845_v24 = vld [vmem:[#allocation62_spill] sm:$0xff] }
 0x13b   :  { %5835 = vst [vmem:[#allocation157_spill] sm:$0xff] %v4227_v26 }
 0x13c   :  { %1147 = vmatpush2.bf16.msra.mxu0 %v4203_v19  ;;  %1188 = vmatpush2.bf16.msra.mxu1 %v4205_v55  ;;  %v4229_v19 = vcombine.low %v168_v5, %v172_v50  ;;  %v5842_v50 = vld [vmem:[#allocation59_spill] sm:$0xff]  ;;  %v5843_v5 = vld [vmem:[#allocation60_spill] sm:$0xff] }
 0x13d   :  { %1148 = vmatprep.subr.bf16.mxu0 %v4209_v34  ;;  %1189 = vmatprep.subr.bf16.mxu1 %v4211_v13 }
 0x13e   :  { %5836 = vst [vmem:[#allocation158_spill] sm:$0xff] %v4229_v19 }
 0x140   :  { %1149 = vmatpush2.bf16.msra.mxu0 %v4215_v17  ;;  %1190 = vmatpush2.bf16.msra.mxu1 %v4217_v42 }
 0x141   :  { %1150 = vmatprep.subr.bf16.mxu0 %v4221_v35  ;;  %1191 = vmatprep.subr.bf16.mxu1 %v4223_v41 }
 0x144   :  { %1151 = vmatpush2.bf16.msra.mxu0 %v4227_v26  ;;  %1192 = vmatpush2.bf16.msra.mxu1 %v4229_v19 }
 0x145   :  { %1313 = vmatprep.subr.bf16.mxu0 %v3784_v4  ;;  %1354 = vmatprep.subr.bf16.mxu1 %v3788_v9 }
 0x147   :  { %1153 = vmatmul.mubr.bf16.vlgmr.msra.gmra.mxu0 %v4049_v46  ;;  %1194 = vmatmul.mubr.bf16.vlgmr.msra.gmra.mxu1 %v4049_v46  ;;  %v5837_v46 = vld [vmem:[#allocation54_spill] sm:$0xff] }
 0x148   :  { %1314 = vmatpush1.bf16.msra.mxu0 %v3786_v7  ;;  %1355 = vmatpush1.bf16.msra.mxu1 %v3790_v10 }
 0x149   :  { %1315 = vmatprep.subr.bf16.mxu0 %v3793_v14  ;;  %1356 = vmatprep.subr.bf16.mxu1 %v3795_v15 }
 0x14c   :  { %1316 = vmatpush1.bf16.msra.mxu0 %v3799_v16  ;;  %1357 = vmatpush1.bf16.msra.mxu1 %v3803_v18 }
 0x14d   :  { %1317 = vmatprep.subr.bf16.mxu0 %v3807_v22  ;;  %1358 = vmatprep.subr.bf16.mxu1 %v3809_v23 }
 0x150   :  { %1318 = vmatpush1.bf16.msra.mxu0 %v3812_v27  ;;  %1359 = vmatpush1.bf16.msra.mxu1 %v3814_v28 }
 0x151   :  { %1319 = vmatprep.subr.bf16.mxu0 %v3816_v29  ;;  %1360 = vmatprep.subr.bf16.mxu1 %v3820_v31 }
 0x154   :  { %1320 = vmatpush1.bf16.msra.mxu0 %v3823_v32  ;;  %1361 = vmatpush1.bf16.msra.mxu1 %v3827_v36 }
 0x155   :  { %1321 = vmatprep.subr.bf16.mxu0 %v3829_v37  ;;  %1362 = vmatprep.subr.bf16.mxu1 %v3832_v39 }
 0x158   :  { %1322 = vmatpush1.bf16.msra.mxu0 %v3835_v40  ;;  %1363 = vmatpush1.bf16.msra.mxu1 %v3839_v44 }
 0x159   :  { %1323 = vmatprep.subr.bf16.mxu0 %v3841_v45  ;;  %1364 = vmatprep.subr.bf16.mxu1 %v3844_v47  ;;  %v5878_v45 = vld [vmem:[#allocation89_spill] sm:$0xff] }
 0x15c   :  { %1324 = vmatpush1.bf16.msra.mxu0 %v3847_v48  ;;  %1365 = vmatpush1.bf16.msra.mxu1 %v3851_v52  ;;  %v5873_v52 = vld [vmem:[#allocation88_spill] sm:$0xff] }
 0x15d   :  { %1325 = vmatprep.subr.bf16.mxu0 %v3853_v53  ;;  %1366 = vmatprep.subr.bf16.mxu1 %v3856_v57 }
 0x160   :  { %1326 = vmatpush1.bf16.msra.mxu0 %v3859_v60  ;;  %1367 = vmatpush1.bf16.msra.mxu1 %v3863_v61  ;;  %v5869_v61 = vld [vmem:[#allocation92_spill] sm:$0xff]  ;;  %v5870_v60 = vld [vmem:[#allocation91_spill] sm:$0xff] }
 0x161   :  { %1327 = vmatprep.subr.bf16.mxu0 %v3865_v62  ;;  %1368 = vmatprep.subr.bf16.mxu1 %v3868_v63  ;;  %v388_v63 = vpop.permute.xlu0 %387 }
 0x164   :  { %1328 = vmatpush1.bf16.msra.mxu0 %v3871_v6  ;;  %1369 = vmatpush1.bf16.msra.mxu1 %v3875_v8 }
 0x165   :  { %1329 = vmatprep.subr.bf16.mxu0 %v3877_v11  ;;  %1370 = vmatprep.subr.bf16.mxu1 %v3880_v12  ;;  %v5846_v12 = vld [vmem:[#allocation63_spill] sm:$0xff] }
 0x168   :  { %1330 = vmatpush2.bf16.msra.mxu0 %v3883_v21  ;;  %1371 = vmatpush2.bf16.msra.mxu1 %v5837_v46  ;;  %v5847_v21 = vld [vmem:[#allocation64_spill] sm:$0xff]  ;;  %v5848_v46 = vld [vmem:[#allocation65_spill] sm:$0xff] }
 0x169   :  { %1331 = vmatprep.subr.bf16.mxu0 %v5838_v58  ;;  %1372 = vmatprep.subr.bf16.mxu1 %v5839_v56  ;;  %v5849_v58 = vld [vmem:[#allocation66_spill] sm:$0xff]  ;;  %v5850_v56 = vld [vmem:[#allocation67_spill] sm:$0xff] }
 0x16c   :  { %1332 = vmatpush2.bf16.msra.mxu0 %v5840_v51  ;;  %1373 = vmatpush2.bf16.msra.mxu1 %v5841_v38  ;;  %v5851_v51 = vld [vmem:[#allocation68_spill] sm:$0xff]  ;;  %v5852_v38 = vld [vmem:[#allocation69_spill] sm:$0xff] }
 0x16d   :  { %1333 = vmatprep.subr.bf16.mxu0 %v5842_v50  ;;  %1374 = vmatprep.subr.bf16.mxu1 %v5843_v5  ;;  %v5853_v50 = vld [vmem:[#allocation70_spill] sm:$0xff]  ;;  %v5854_v5 = vld [vmem:[#allocation71_spill] sm:$0xff] }
 0x170   :  { %1334 = vmatpush2.bf16.msra.mxu0 %v5844_v49  ;;  %1375 = vmatpush2.bf16.msra.mxu1 %v5845_v24  ;;  %v5855_v49 = vld [vmem:[#allocation72_spill] sm:$0xff]  ;;  %v5856_v24 = vld [vmem:[#allocation73_spill] sm:$0xff] }
 0x171   :  { %1335 = vmatprep.subr.bf16.mxu0 %v5846_v12  ;;  %1376 = vmatprep.subr.bf16.mxu1 %v5847_v21  ;;  %v5857_v12 = vld [vmem:[#allocation74_spill] sm:$0xff]  ;;  %v5858_v21 = vld [vmem:[#allocation75_spill] sm:$0xff] }
 0x174   :  { %1336 = vmatpush2.bf16.msra.mxu0 %v5848_v46  ;;  %1377 = vmatpush2.bf16.msra.mxu1 %v5849_v58  ;;  %v5859_v46 = vld [vmem:[#allocation76_spill] sm:$0xff]  ;;  %v5860_v58 = vld [vmem:[#allocation77_spill] sm:$0xff] }
 0x175   :  { %1337 = vmatprep.subr.bf16.mxu0 %v5850_v56  ;;  %1378 = vmatprep.subr.bf16.mxu1 %v5851_v51  ;;  %v5861_v56 = vld [vmem:[#allocation78_spill] sm:$0xff]  ;;  %v5862_v51 = vld [vmem:[#allocation79_spill] sm:$0xff] }
 0x178   :  { %1338 = vmatpush2.bf16.msra.mxu0 %v5852_v38  ;;  %1379 = vmatpush2.bf16.msra.mxu1 %v5853_v50  ;;  %v5863_v38 = vld [vmem:[#allocation80_spill] sm:$0xff]  ;;  %v5864_v50 = vld [vmem:[#allocation81_spill] sm:$0xff] }
 0x179   :  { %1339 = vmatprep.subr.bf16.mxu0 %v5854_v5  ;;  %1380 = vmatprep.subr.bf16.mxu1 %v5855_v49  ;;  %v5865_v5 = vld [vmem:[#allocation83_spill] sm:$0xff]  ;;  %v5866_v49 = vld [vmem:[#allocation84_spill] sm:$0xff] }
 0x17c   :  { %1340 = vmatpush2.bf16.msra.mxu0 %v5856_v24  ;;  %1381 = vmatpush2.bf16.msra.mxu1 %v5857_v12  ;;  %v5867_v24 = vld [vmem:[#allocation85_spill] sm:$0xff] }
 0x17d   :  { %1341 = vmatprep.subr.bf16.mxu0 %v5858_v21  ;;  %1382 = vmatprep.subr.bf16.mxu1 %v5859_v46 }
 0x180   :  { %1342 = vmatpush2.bf16.msra.mxu0 %v5860_v58  ;;  %1383 = vmatpush2.bf16.msra.mxu1 %v5861_v56 }
 0x181   :  { %1343 = vmatprep.subr.bf16.mxu0 %v5862_v51  ;;  %1384 = vmatprep.subr.bf16.mxu1 %v5863_v38  ;;  %v5868_v51 = vld [vmem:[#allocation90_spill] sm:$0xff]  ;;  %v231_v38 = vld [vmem:[#allocation8] sm:$0xff] }
 0x182   :  { %v390_v62 = vmul.f32 %v388_v63, %v5868_v51  ;;  %v4310_v48 = vrot.slane %v231_v38, %v5873_v52 }
 0x184   :  { %1344 = vmatpush2.bf16.msra.mxu0 %v5864_v50  ;;  %1385 = vmatpush2.bf16.msra.mxu1 %v5865_v5  ;;  %v392_v50 = vmul.f32 %v388_v63, %v5869_v61  ;;  %v391_v5 = vmul.f32 %v388_v63, %v5870_v60  ;;  %5874 = vst [vmem:[#allocation88_spill] sm:$0xff] %v4310_v48 }
 0x185   :  { %1395 = vmatprep.subr.bf16.mxu0 %v5866_v49  ;;  %1436 = vmatprep.subr.bf16.mxu1 %v5867_v24  ;;  %v5871_v49 = vld [vmem:[#allocation86_spill] sm:$0xff]  ;;  %v4318_v61 = vrot.slane %v231_v38, %v5878_v45 }
 0x186   :  { %v4307_v53 = vrot.slane %v231_v38, %v5871_v49 }
 0x187   :  { %5879 = vst [vmem:[#allocation89_spill] sm:$0xff] %v4318_v61 }
 0x188   :  { %5872 = vst [vmem:[#allocation86_spill] sm:$0xff] %v4307_v53 }
 0x1c7   :  { %v1072_v12 = vpop.f32.mrf.mxu0  ;;  %v1113_v21 = vpop.f32.mrf.mxu1 }
 0x1c8   :  { %v1073_v57 = vadd.f32 %v1072_v12, %v390_v62  ;;  %v1114_v24 = vadd.f32 %v1113_v21, %v392_v50 }
 0x1c9   :  { %v1074_v11 = vpop.f32.mrf.mxu0  ;;  %v1115_v46 = vpop.f32.mrf.mxu1 }
 0x1ca   :  { %v1075_v47 = vadd.f32 %v1074_v11, %v391_v5  ;;  %v1243_v51 = vadd.f32 %v4307_v53, %v1073_v57  ;;  %v1245_v62 = vadd.f32 %v4310_v48, %v1114_v24  ;;  %v4323_v11 = vld [vmem:[#allocation2] sm:$0xff]  ;;  %v394_v24 = vmul.f32 %v388_v63, %v4022_v25 }
 0x1cb   :  { %v1076_v8 = vpop.f32.mrf.mxu0  ;;  %v1117_v58 = vpop.f32.mrf.mxu1  ;;  %5880 = vst [vmem:[#allocation159_spill] sm:$0xff] %v4323_v11 }
 0x1cc   :  { %v5875_v8 = vld [vmem:[#allocation93_spill] sm:$0xff]  ;;  %v3147_v21 = vmul.f32 -1.442695, %v1243_v51  ;;  %v3149_v50 = vmul.f32 -1.442695, %v1245_v62  ;;  %v396_v62 = vmul.f32 %v388_v63, %v4030_v1 }
 0x1cd   :  { %v1077_v6 = vpop.f32.mrf.mxu0  ;;  %v1118_v56 = vpop.f32.mrf.mxu1  ;;  %v393_v58 = vmul.f32 %v388_v63, %v5875_v8  ;;  %v3713_v8 = vmov 2  }
 0x1ce   :  { %v5876_v6 = vld [vmem:[#allocation87_spill] sm:$0xff]  ;;  %3308 = vpow2.f32 %v3147_v21  ;;  %3269 = vset.pattern.permute.xlu1 %v3713_v8 }
 0x1cf   :  { %v4314_v56 = vrot.slane %v231_v38, %v5876_v6  ;;  %v1116_v12 = vadd.f32 %v1115_v46, %v393_v58  ;;  %3310 = vpow2.f32 %v3149_v50  ;;  %1302 = vperm.xlu1 %3269, %v4323_v11   ;;  %v4328_v58 = vrot.slane %v231_v38, %v4010_v20  ;;  %v5881_v8 = vld [vmem:[#allocation95_spill] sm:$0xff] }
 0x1d0   :  { %v397_v11 = vmul.f32 %v388_v63, %v4037_v33 }
 0x1d1   :  { %5877 = vst [vmem:[#allocation87_spill] sm:$0xff] %v4314_v56  ;;  %v1244_v49 = vadd.f32 %v4314_v56, %v1075_v47  ;;  %v1246_v52 = vadd.f32 %v4318_v61, %v1116_v12  ;;  %v4332_v12 = vrot.slane %v231_v38, %v5881_v8 }
 0x1d3   :  { %v3148_v60 = vmul.f32 -1.442695, %v1244_v49  ;;  %v3150_v6 = vmul.f32 -1.442695, %v1246_v52  ;;  %v5882_v49 = vld [vmem:[#allocation94_spill] sm:$0xff] }
 0x1d4   :  { %v4335_v21 = vrot.slane %v231_v38, %v5882_v49 }
 0x1d5   :  { %3312 = vpow2.f32 %v3148_v60  ;;  %v4338_v60 = vrot.slane %v231_v38, %v4027_v3 }
 0x1d6   :  { %3314 = vpow2.f32 %v3150_v6 }
 0x1db   :  { %v3309_v45 = vpop.eup %3308 }
 0x1dc   :  { %v3311_v57 = vpop.eup %3310  ;;  %v1269_v47 = vadd.f32 1.0, %v3309_v45  ;;  %v5883_v45 = vld [vmem:[#allocation97_spill] sm:$0xff] }
 0x1dd   :  { %v1271_v51 = vadd.f32 1.0, %v3311_v57  ;;  %v395_v57 = vmul.f32 %v388_v63, %v5883_v45 }
 0x1de   :  { %3316 = vrcp.f32 %v1269_v47 }
 0x1df   :  { %3318 = vrcp.f32 %v1271_v51 }
 0x1e2   :  { %v3313_v46 = vpop.eup %3312 }
 0x1e3   :  { %v3315_v5 = vpop.eup %3314  ;;  %v1270_v50 = vadd.f32 1.0, %v3313_v46 }
 0x1e4   :  { %v1272_v1 = vadd.f32 1.0, %v3315_v5 }
 0x1e5   :  { %3320 = vrcp.f32 %v1270_v50 }
 0x207   :  { %v1154_v52 = vpop.f32.mrf.mxu0  ;;  %v1195_v6 = vpop.f32.mrf.mxu1 }
 0x208   :  { %v1155_v25 = vadd.f32 %v1154_v52, %v394_v24  ;;  %v1196_v20 = vadd.f32 %v1195_v6, %v396_v62 }
 0x209   :  { %v1156_v8 = vpop.f32.mrf.mxu0  ;;  %v1197_v61 = vpop.f32.mrf.mxu1 }
 0x20a   :  { %v1247_v49 = vadd.f32 %v4328_v58, %v1155_v25  ;;  %v1249_v56 = vadd.f32 %v4332_v12, %v1196_v20  ;;  %v1157_v3 = vadd.f32 %v1156_v8, %v395_v57  ;;  %v1198_v38 = vadd.f32 %v1197_v61, %v397_v11  ;;  %v3317_v25 = vpop.eup %3316 }
 0x20b   :  { %v1158_v46 = vpop.f32.mrf.mxu0  ;;  %v1199_v48 = vpop.f32.mrf.mxu1 }
 0x20c   :  { %v3151_v53 = vmul.f32 -1.442695, %v1247_v49  ;;  %3322 = vtanh.f32 %v1249_v56  ;;  %v1248_v47 = vadd.f32 %v4335_v21, %v1157_v3  ;;  %v1250_v24 = vadd.f32 %v4338_v60, %v1198_v38  ;;  %v3319_v62 = vpop.eup %3318 }
 0x20d   :  { %3324 = vrcp.f32 %v1272_v1  ;;  %v1159_v63 = vpop.f32.mrf.mxu0  ;;  %v1200_v51 = vpop.f32.mrf.mxu1  ;;  %v1289_v48 = vmul.f32 %v3319_v62, %v4043_v59  ;;  %v5886_v62 = vld [vmem:[#allocation100_spill] sm:$0xff] }
 0x20e   :  { %3326 = vpow2.f32 %v3151_v53  ;;  %v3152_v5 = vmul.f32 -1.442695, %v1248_v47  ;;  %v3321_v52 = vpop.eup %3320 }
 0x20f   :  { %3328 = vtanh.f32 %v1250_v24 }
 0x210   :  { %3330 = vpow2.f32 %v3152_v5 }
 0x219   :  { %v3323_v61 = vpop.eup %3322 }
 0x21a   :  { %v3325_v11 = vpop.eup %3324  ;;  %v1291_v50 = vmul.f32 %v3323_v61, %v3317_v25  ;;  %v5885_v25 = vld [vmem:[#allocation99_spill] sm:$0xff]  ;;  %v5888_v61 = vld [vmem:[#allocation102_spill] sm:$0xff] }
 0x21b   :  { %v3327_v56 = vpop.eup %3326  ;;  %v1290_v8 = vmul.f32 %v3325_v11, %v4045_v2  ;;  %v5884_v2 = vld [vmem:[#allocation82_spill] sm:$0xff]  ;;  %v5889_v11 = vld [vmem:[#allocation103_spill] sm:$0xff] }
 0x21c   :  { %v3329_v6 = vpop.eup %3328  ;;  %v1273_v57 = vadd.f32 1.0, %v3327_v56  ;;  %v4347_v20 = vadd.f32 %v1291_v50, %v1289_v48  ;;  %v5890_v48 = vld [vmem:[#allocation104_spill] sm:$0xff]  ;;  %v5891_v50 = vld [vmem:[#allocation105_spill] sm:$0xff]  ;;  %v5892_v56 = vld [vmem:[#allocation106_spill] sm:$0xff] }
 0x21d   :  { %v3331_v1 = vpop.eup %3330  ;;  %v1292_v53 = vmul.f32 %v3329_v6, %v3321_v52  ;;  %v5887_v52 = vld [vmem:[#allocation101_spill] sm:$0xff]  ;;  %v5893_v6 = vld [vmem:[#allocation107_spill] sm:$0xff] }
 0x21e   :  { %3332 = vrcp.f32 %v1273_v57  ;;  %v1274_v49 = vadd.f32 1.0, %v3331_v1  ;;  %v5894_v57 = vld [vmem:[#allocation108_spill] sm:$0xff]  ;;  %v5895_v1 = vld [vmem:[#allocation109_spill] sm:$0xff] }
 0x21f   :  { %3334 = vtanh.f32 %v4347_v20  ;;  %v4351_v3 = vadd.f32 %v1292_v53, %v1290_v8  ;;  %v5896_v8 = vld [vmem:[#allocation110_spill] sm:$0xff]  ;;  %v5897_v53 = vld [vmem:[#allocation111_spill] sm:$0xff] }
 0x220   :  { %3336 = vrcp.f32 %v1274_v49  ;;  %v5898_v49 = vld [vmem:[#allocation112_spill] sm:$0xff] }
 0x221   :  { %3338 = vtanh.f32 %v4351_v3 }
 0x22b   :  { %v3333_v59 = vpop.eup %3332 }
 0x22c   :  { %v3335_v38 = vpop.eup %3334 }
 0x22d   :  { %v3337_v46 = vpop.eup %3336  ;;  %v1297_v24 = vmul.f32 %v3335_v38, %v3333_v59  ;;  %v5899_v59 = vld [vmem:[#allocation113_spill] sm:$0xff]  ;;  %v5900_v38 = vld [vmem:[#allocation114_spill] sm:$0xff] }
 0x22e   :  { %v3339_v47 = vpop.eup %3338 }
 0x22f   :  { %v1298_v63 = vmul.f32 %v3339_v47, %v3337_v46  ;;  %v4354_v5 = vpack.c.bf16 %v1297_v24, %v1297_v24  ;;  %v5901_v46 = vld [vmem:[#allocation115_spill] sm:$0xff]  ;;  %v5902_v47 = vld [vmem:[#allocation116_spill] sm:$0xff]  ;;  %v5903_v24 = vld [vmem:[#allocation117_spill] sm:$0xff] }
 0x231   :  { %v1300_v51 = vpack.c.bf16 %v1298_v63, %v1298_v63  ;;  %v5904_v63 = vld [vmem:[#allocation118_spill] sm:$0xff] }
 0x233   :  { %1345 = vmatprep.mubr.bf16.mxu0 %v1300_v51  ;;  %1386 = vmatprep.mubr.bf16.mxu1 %v1300_v51 }
 0x234   :  { %1346 = vmatmul.mubr.bf16.vlgmr.msra.gmra.mxu0 %v4354_v5  ;;  %1387 = vmatmul.mubr.bf16.vlgmr.msra.gmra.mxu1 %v4354_v5 }
 0x235   :  { %1396 = vmatpush1.bf16.msra.mxu0 %v3966_v54  ;;  %1437 = vmatpush1.bf16.msra.mxu1 %v5884_v2 }
 0x236   :  { %1427 = vmatprep.mubr.bf16.mxu0 %v1300_v51  ;;  %1468 = vmatprep.mubr.bf16.mxu1 %v1300_v51  ;;  %v5905_v51 = vld [vmem:[#allocation119_spill] sm:$0xff] }
 0x237   :  { %1397 = vmatprep.subr.bf16.mxu0 %v5885_v25  ;;  %1438 = vmatprep.subr.bf16.mxu1 %v5886_v62 }
 0x239   :  { %1398 = vmatpush1.bf16.msra.mxu0 %v5887_v52  ;;  %1439 = vmatpush1.bf16.msra.mxu1 %v5888_v61 }
 0x23a   :  { %1399 = vmatprep.subr.bf16.mxu0 %v5889_v11  ;;  %1440 = vmatprep.subr.bf16.mxu1 %v5890_v48 }
 0x23d   :  { %1400 = vmatpush1.bf16.msra.mxu0 %v5891_v50  ;;  %1441 = vmatpush1.bf16.msra.mxu1 %v5892_v56 }
 0x23e   :  { %1401 = vmatprep.subr.bf16.mxu0 %v5893_v6  ;;  %1442 = vmatprep.subr.bf16.mxu1 %v5894_v57 }
 0x241   :  { %1402 = vmatpush1.bf16.msra.mxu0 %v5895_v1  ;;  %1443 = vmatpush1.bf16.msra.mxu1 %v5896_v8  ;;  %v5906_v1 = vld [vmem:[#allocation120_spill] sm:$0xff]  ;;  %v5907_v8 = vld [vmem:[#allocation121_spill] sm:$0xff] }
 0x242   :  { %1403 = vmatprep.subr.bf16.mxu0 %v5897_v53  ;;  %1444 = vmatprep.subr.bf16.mxu1 %v5898_v49  ;;  %v5908_v53 = vld [vmem:[#allocation122_spill] sm:$0xff]  ;;  %v5909_v49 = vld [vmem:[#allocation123_spill] sm:$0xff] }
 0x245   :  { %1404 = vmatpush1.bf16.msra.mxu0 %v5899_v59  ;;  %1445 = vmatpush1.bf16.msra.mxu1 %v5900_v38  ;;  %v5910_v59 = vld [vmem:[#allocation124_spill] sm:$0xff]  ;;  %v5911_v38 = vld [vmem:[#allocation125_spill] sm:$0xff] }
 0x246   :  { %1405 = vmatprep.subr.bf16.mxu0 %v5901_v46  ;;  %1446 = vmatprep.subr.bf16.mxu1 %v5902_v47  ;;  %v5912_v46 = vld [vmem:[#allocation126_spill] sm:$0xff]  ;;  %v5913_v47 = vld [vmem:[#allocation127_spill] sm:$0xff] }
 0x249   :  { %1406 = vmatpush1.bf16.msra.mxu0 %v5903_v24  ;;  %1447 = vmatpush1.bf16.msra.mxu1 %v5904_v63  ;;  %v5914_v24 = vld [vmem:[#allocation128_spill] sm:$0xff]  ;;  %v5915_v63 = vld [vmem:[#allocation129_spill] sm:$0xff] }
 0x24a   :  { %1407 = vmatprep.subr.bf16.mxu0 %v5905_v51  ;;  %1448 = vmatprep.subr.bf16.mxu1 %v5906_v1  ;;  %v5916_v51 = vld [vmem:[#allocation130_spill] sm:$0xff]  ;;  %v5917_v1 = vld [vmem:[#allocation131_spill] sm:$0xff] }
 0x24d   :  { %1408 = vmatpush1.bf16.msra.mxu0 %v5907_v8  ;;  %1449 = vmatpush1.bf16.msra.mxu1 %v5908_v53  ;;  %v5918_v8 = vld [vmem:[#allocation132_spill] sm:$0xff]  ;;  %v5919_v53 = vld [vmem:[#allocation133_spill] sm:$0xff] }
 0x24e   :  { %1409 = vmatprep.subr.bf16.mxu0 %v5909_v49  ;;  %1450 = vmatprep.subr.bf16.mxu1 %v5910_v59  ;;  %v5920_v49 = vld [vmem:[#allocation134_spill] sm:$0xff]  ;;  %v5921_v59 = vld [vmem:[#allocation135_spill] sm:$0xff] }
 0x251   :  { %1410 = vmatpush1.bf16.msra.mxu0 %v5911_v38  ;;  %1451 = vmatpush1.bf16.msra.mxu1 %v5912_v46  ;;  %v5922_v38 = vld [vmem:[#allocation136_spill] sm:$0xff]  ;;  %v5923_v46 = vld [vmem:[#allocation137_spill] sm:$0xff] }
 0x252   :  { %1411 = vmatprep.subr.bf16.mxu0 %v5913_v47  ;;  %1452 = vmatprep.subr.bf16.mxu1 %v5914_v24  ;;  %v5924_v47 = vld [vmem:[#allocation138_spill] sm:$0xff]  ;;  %v5925_v24 = vld [vmem:[#allocation139_spill] sm:$0xff] }
 0x255   :  { %1412 = vmatpush2.bf16.msra.mxu0 %v5915_v63  ;;  %1453 = vmatpush2.bf16.msra.mxu1 %v5916_v51  ;;  %v5926_v63 = vld [vmem:[#allocation140_spill] sm:$0xff]  ;;  %v5927_v51 = vld [vmem:[#allocation141_spill] sm:$0xff] }
 0x256   :  { %1413 = vmatprep.subr.bf16.mxu0 %v5917_v1  ;;  %1454 = vmatprep.subr.bf16.mxu1 %v5918_v8  ;;  %v5928_v1 = vld [vmem:[#allocation142_spill] sm:$0xff]  ;;  %v5929_v8 = vld [vmem:[#allocation143_spill] sm:$0xff] }
 0x259   :  { %1414 = vmatpush2.bf16.msra.mxu0 %v5919_v53  ;;  %1455 = vmatpush2.bf16.msra.mxu1 %v5920_v49  ;;  %v5930_v53 = vld [vmem:[#allocation144_spill] sm:$0xff] }
 0x25a   :  { %1415 = vmatprep.subr.bf16.mxu0 %v5921_v59  ;;  %1456 = vmatprep.subr.bf16.mxu1 %v5922_v38 }
 0x25d   :  { %1416 = vmatpush2.bf16.msra.mxu0 %v5923_v46  ;;  %1457 = vmatpush2.bf16.msra.mxu1 %v5924_v47  ;;  %v5931_v46 = vld [vmem:[#allocation148_spill] sm:$0xff]  ;;  %v5932_v47 = vld [vmem:[#allocation149_spill] sm:$0xff] }
 0x25e   :  { %1417 = vmatprep.subr.bf16.mxu0 %v5925_v24  ;;  %1458 = vmatprep.subr.bf16.mxu1 %v5926_v63 }
 0x261   :  { %1418 = vmatpush2.bf16.msra.mxu0 %v5927_v51  ;;  %1459 = vmatpush2.bf16.msra.mxu1 %v5928_v1 }
 0x262   :  { %1419 = vmatprep.subr.bf16.mxu0 %v5929_v8  ;;  %1460 = vmatprep.subr.bf16.mxu1 %v5930_v53 }
 0x265   :  { %1420 = vmatpush2.bf16.msra.mxu0 %v4191_v43  ;;  %1461 = vmatpush2.bf16.msra.mxu1 %v4193_v30 }
 0x266   :  { %1421 = vmatprep.subr.bf16.mxu0 %v4197_v0  ;;  %1462 = vmatprep.subr.bf16.mxu1 %v5931_v46 }
 0x269   :  { %1422 = vmatpush2.bf16.msra.mxu0 %v5932_v47  ;;  %1463 = vmatpush2.bf16.msra.mxu1 %v4205_v55 }
 0x26a   :  { %1423 = vmatprep.subr.bf16.mxu0 %v4209_v34  ;;  %1464 = vmatprep.subr.bf16.mxu1 %v4211_v13 }
 0x26d   :  { %1424 = vmatpush2.bf16.msra.mxu0 %v4215_v17  ;;  %1465 = vmatpush2.bf16.msra.mxu1 %v4217_v42  ;;  %v5986_v42 = vld [vmem:[#allocation89_spill] sm:$0xff] }
 0x26e   :  { %1425 = vmatprep.subr.bf16.mxu0 %v4221_v35  ;;  %1466 = vmatprep.subr.bf16.mxu1 %v4223_v41 }
 0x271   :  { %1426 = vmatpush2.bf16.msra.mxu0 %v4227_v26  ;;  %1467 = vmatpush2.bf16.msra.mxu1 %v4229_v19  ;;  %v5984_v26 = vld [vmem:[#allocation88_spill] sm:$0xff] }
 0x272   :  { %1547 = vmatprep.subr.bf16.mxu0 %v3784_v4  ;;  %1588 = vmatprep.subr.bf16.mxu1 %v3788_v9  ;;  %v5983_v4 = vld [vmem:[#allocation86_spill] sm:$0xff] }
 0x274   :  { %1428 = vmatmul.mubr.bf16.vlgmr.msra.gmra.mxu0 %v4354_v5  ;;  %1469 = vmatmul.mubr.bf16.vlgmr.msra.gmra.mxu1 %v4354_v5  ;;  %v5933_v5 = vld [vmem:[#allocation39_spill] sm:$0xff] }
 0x275   :  { %1548 = vmatpush1.bf16.msra.mxu0 %v3786_v7  ;;  %1589 = vmatpush1.bf16.msra.mxu1 %v3790_v10 }
 0x276   :  { %1549 = vmatprep.subr.bf16.mxu0 %v3793_v14  ;;  %1590 = vmatprep.subr.bf16.mxu1 %v3795_v15 }
 0x279   :  { %1550 = vmatpush1.bf16.msra.mxu0 %v3799_v16  ;;  %1591 = vmatpush1.bf16.msra.mxu1 %v3803_v18  ;;  %v1303_v16 = vpop.permute.xlu1 %1302 }
 0x27a   :  { %1551 = vmatprep.subr.bf16.mxu0 %v3807_v22  ;;  %1592 = vmatprep.subr.bf16.mxu1 %v3809_v23 }
 0x27d   :  { %1552 = vmatpush1.bf16.msra.mxu0 %v3812_v27  ;;  %1593 = vmatpush1.bf16.msra.mxu1 %v3814_v28  ;;  %v5934_v27 = vld [vmem:[#allocation40_spill] sm:$0xff]  ;;  %v5935_v28 = vld [vmem:[#allocation41_spill] sm:$0xff] }
 0x27e   :  { %1553 = vmatprep.subr.bf16.mxu0 %v3816_v29  ;;  %1594 = vmatprep.subr.bf16.mxu1 %v3820_v31  ;;  %v5936_v29 = vld [vmem:[#allocation42_spill] sm:$0xff]  ;;  %v5937_v31 = vld [vmem:[#allocation43_spill] sm:$0xff] }
 0x281   :  { %1554 = vmatpush1.bf16.msra.mxu0 %v3823_v32  ;;  %1595 = vmatpush1.bf16.msra.mxu1 %v3827_v36  ;;  %v5938_v32 = vld [vmem:[#allocation44_spill] sm:$0xff]  ;;  %v5939_v36 = vld [vmem:[#allocation45_spill] sm:$0xff] }
 0x282   :  { %1555 = vmatprep.subr.bf16.mxu0 %v3829_v37  ;;  %1596 = vmatprep.subr.bf16.mxu1 %v3832_v39  ;;  %v5940_v37 = vld [vmem:[#allocation46_spill] sm:$0xff]  ;;  %v5941_v39 = vld [vmem:[#allocation47_spill] sm:$0xff] }
 0x285   :  { %1556 = vmatpush1.bf16.msra.mxu0 %v3835_v40  ;;  %1597 = vmatpush1.bf16.msra.mxu1 %v3839_v44  ;;  %v5942_v40 = vld [vmem:[#allocation48_spill] sm:$0xff]  ;;  %v5943_v44 = vld [vmem:[#allocation49_spill] sm:$0xff] }
 0x286   :  { %1557 = vmatprep.subr.bf16.mxu0 %v5933_v5  ;;  %1598 = vmatprep.subr.bf16.mxu1 %v5934_v27  ;;  %v5944_v5 = vld [vmem:[#allocation50_spill] sm:$0xff]  ;;  %v5945_v27 = vld [vmem:[#allocation51_spill] sm:$0xff] }
 0x289   :  { %1558 = vmatpush1.bf16.msra.mxu0 %v5935_v28  ;;  %1599 = vmatpush1.bf16.msra.mxu1 %v5936_v29  ;;  %v5946_v28 = vld [vmem:[#allocation52_spill] sm:$0xff]  ;;  %v5947_v29 = vld [vmem:[#allocation53_spill] sm:$0xff] }
 0x28a   :  { %1559 = vmatprep.subr.bf16.mxu0 %v5937_v31  ;;  %1600 = vmatprep.subr.bf16.mxu1 %v5938_v32  ;;  %v5948_v31 = vld [vmem:[#allocation54_spill] sm:$0xff]  ;;  %v5949_v32 = vld [vmem:[#allocation55_spill] sm:$0xff] }
 0x28d   :  { %1560 = vmatpush1.bf16.msra.mxu0 %v5939_v36  ;;  %1601 = vmatpush1.bf16.msra.mxu1 %v5940_v37  ;;  %v5950_v36 = vld [vmem:[#allocation56_spill] sm:$0xff]  ;;  %v5951_v37 = vld [vmem:[#allocation57_spill] sm:$0xff] }
 0x28e   :  { %1561 = vmatprep.subr.bf16.mxu0 %v5941_v39  ;;  %1602 = vmatprep.subr.bf16.mxu1 %v5942_v40  ;;  %v5952_v39 = vld [vmem:[#allocation58_spill] sm:$0xff]  ;;  %v5953_v40 = vld [vmem:[#allocation59_spill] sm:$0xff] }
 0x291   :  { %1562 = vmatpush1.bf16.msra.mxu0 %v5943_v44  ;;  %1603 = vmatpush1.bf16.msra.mxu1 %v5944_v5  ;;  %v5954_v44 = vld [vmem:[#allocation60_spill] sm:$0xff]  ;;  %v5955_v5 = vld [vmem:[#allocation61_spill] sm:$0xff] }
 0x292   :  { %1563 = vmatprep.subr.bf16.mxu0 %v5945_v27  ;;  %1604 = vmatprep.subr.bf16.mxu1 %v5946_v28  ;;  %v5956_v27 = vld [vmem:[#allocation62_spill] sm:$0xff]  ;;  %v5957_v28 = vld [vmem:[#allocation63_spill] sm:$0xff] }
 0x295   :  { %1564 = vmatpush2.bf16.msra.mxu0 %v5947_v29  ;;  %1605 = vmatpush2.bf16.msra.mxu1 %v5948_v31  ;;  %v5958_v29 = vld [vmem:[#allocation64_spill] sm:$0xff]  ;;  %v5959_v31 = vld [vmem:[#allocation65_spill] sm:$0xff] }
 0x296   :  { %1565 = vmatprep.subr.bf16.mxu0 %v5949_v32  ;;  %1606 = vmatprep.subr.bf16.mxu1 %v5950_v36  ;;  %v5960_v32 = vld [vmem:[#allocation66_spill] sm:$0xff]  ;;  %v5961_v36 = vld [vmem:[#allocation67_spill] sm:$0xff] }
 0x299   :  { %1566 = vmatpush2.bf16.msra.mxu0 %v5951_v37  ;;  %1607 = vmatpush2.bf16.msra.mxu1 %v5952_v39  ;;  %v5962_v37 = vld [vmem:[#allocation68_spill] sm:$0xff]  ;;  %v5963_v39 = vld [vmem:[#allocation69_spill] sm:$0xff] }
 0x29a   :  { %1567 = vmatprep.subr.bf16.mxu0 %v5953_v40  ;;  %1608 = vmatprep.subr.bf16.mxu1 %v5954_v44  ;;  %v5964_v40 = vld [vmem:[#allocation70_spill] sm:$0xff]  ;;  %v5965_v44 = vld [vmem:[#allocation71_spill] sm:$0xff] }
 0x29d   :  { %1568 = vmatpush2.bf16.msra.mxu0 %v5955_v5  ;;  %1609 = vmatpush2.bf16.msra.mxu1 %v5956_v27  ;;  %v5966_v5 = vld [vmem:[#allocation72_spill] sm:$0xff]  ;;  %v5967_v27 = vld [vmem:[#allocation73_spill] sm:$0xff] }
 0x29e   :  { %1569 = vmatprep.subr.bf16.mxu0 %v5957_v28  ;;  %1610 = vmatprep.subr.bf16.mxu1 %v5958_v29  ;;  %v5968_v28 = vld [vmem:[#allocation74_spill] sm:$0xff]  ;;  %v5969_v29 = vld [vmem:[#allocation75_spill] sm:$0xff] }
 0x2a1   :  { %1570 = vmatpush2.bf16.msra.mxu0 %v5959_v31  ;;  %1611 = vmatpush2.bf16.msra.mxu1 %v5960_v32  ;;  %v5970_v31 = vld [vmem:[#allocation76_spill] sm:$0xff]  ;;  %v5971_v32 = vld [vmem:[#allocation77_spill] sm:$0xff] }
 0x2a2   :  { %1571 = vmatprep.subr.bf16.mxu0 %v5961_v36  ;;  %1612 = vmatprep.subr.bf16.mxu1 %v5962_v37  ;;  %v5972_v36 = vld [vmem:[#allocation78_spill] sm:$0xff]  ;;  %v5973_v37 = vld [vmem:[#allocation79_spill] sm:$0xff] }
 0x2a5   :  { %1572 = vmatpush2.bf16.msra.mxu0 %v5963_v39  ;;  %1613 = vmatpush2.bf16.msra.mxu1 %v5964_v40  ;;  %v5974_v39 = vld [vmem:[#allocation80_spill] sm:$0xff]  ;;  %v5975_v40 = vld [vmem:[#allocation81_spill] sm:$0xff] }
 0x2a6   :  { %1573 = vmatprep.subr.bf16.mxu0 %v5965_v44  ;;  %1614 = vmatprep.subr.bf16.mxu1 %v5966_v5  ;;  %v5976_v44 = vld [vmem:[#allocation83_spill] sm:$0xff]  ;;  %v5977_v5 = vld [vmem:[#allocation84_spill] sm:$0xff] }
 0x2a9   :  { %1574 = vmatpush2.bf16.msra.mxu0 %v5967_v27  ;;  %1615 = vmatpush2.bf16.msra.mxu1 %v5968_v28  ;;  %v5978_v27 = vld [vmem:[#allocation85_spill] sm:$0xff] }
 0x2aa   :  { %1575 = vmatprep.subr.bf16.mxu0 %v5969_v29  ;;  %1616 = vmatprep.subr.bf16.mxu1 %v5970_v31 }
 0x2ad   :  { %1576 = vmatpush2.bf16.msra.mxu0 %v5971_v32  ;;  %1617 = vmatpush2.bf16.msra.mxu1 %v5972_v36 }
 0x2ae   :  { %1577 = vmatprep.subr.bf16.mxu0 %v5973_v37  ;;  %1618 = vmatprep.subr.bf16.mxu1 %v5974_v39  ;;  %v5979_v37 = vld [vmem:[#allocation90_spill] sm:$0xff]  ;;  %v5980_v39 = vld [vmem:[#allocation92_spill] sm:$0xff] }
 0x2af   :  { %v1305_v15 = vmul.f32 %v1303_v16, %v5979_v37  ;;  %v1307_v14 = vmul.f32 %v1303_v16, %v5980_v39 }
 0x2b1   :  { %1578 = vmatpush2.bf16.msra.mxu0 %v5975_v40  ;;  %1619 = vmatpush2.bf16.msra.mxu1 %v5976_v44  ;;  %v5981_v40 = vld [vmem:[#allocation91_spill] sm:$0xff] }
 0x2b2   :  { %1629 = vmatprep.subr.bf16.mxu0 %v5977_v5  ;;  %1670 = vmatprep.subr.bf16.mxu1 %v5978_v27  ;;  %v1306_v10 = vmul.f32 %v1303_v16, %v5981_v40  ;;  %v5982_v5 = vld [vmem:[#allocation93_spill] sm:$0xff] }
 0x2b3   :  { %v1308_v9 = vmul.f32 %v1303_v16, %v5982_v5 }
 0x2f4   :  { %v1347_v28 = vpop.f32.mrf.mxu0  ;;  %v1388_v29 = vpop.f32.mrf.mxu1 }
 0x2f5   :  { %v1348_v44 = vadd.f32 %v1347_v28, %v1305_v15  ;;  %v1389_v7 = vadd.f32 %v1388_v29, %v1307_v14  ;;  %v3714_v15 = vmov 3   ;;  %v5987_v14 = vld [vmem:[#allocation159_spill] sm:$0xff]  ;;  %v5988_v29 = vld [vmem:[#allocation96_spill] sm:$0xff] }
 0x2f6   :  { %v1349_v23 = vpop.f32.mrf.mxu0  ;;  %v1390_v31 = vpop.f32.mrf.mxu1  ;;  %3270 = vset.pattern.permute.xlu1 %v3714_v15 }
 0x2f7   :  { %v1350_v27 = vadd.f32 %v1349_v23, %v1306_v10  ;;  %v1477_v19 = vadd.f32 %v1348_v44, %v5983_v4  ;;  %v1479_v41 = vadd.f32 %v1389_v7, %v5984_v26  ;;  %1536 = vperm.xlu1 %3270, %v5987_v14   ;;  %v5989_v44 = vld [vmem:[#allocation98_spill] sm:$0xff] }
 0x2f8   :  { %v1351_v22 = vpop.f32.mrf.mxu0  ;;  %v1392_v32 = vpop.f32.mrf.mxu1 }
 0x2f9   :  { %v1391_v22 = vadd.f32 %v1390_v31, %v1308_v9  ;;  %v5985_v32 = vld [vmem:[#allocation87_spill] sm:$0xff]  ;;  %v3155_v35 = vmul.f32 -1.442695, %v1479_v41  ;;  %v1309_v31 = vmul.f32 %v1303_v16, %v5988_v29 }
 0x2fa   :  { %v1352_v18 = vpop.f32.mrf.mxu0  ;;  %v1393_v36 = vpop.f32.mrf.mxu1 }
 0x2fb   :  { %v1478_v18 = vadd.f32 %v1350_v27, %v5985_v32  ;;  %v3153_v36 = vmul.f32 -1.442695, %v1477_v19  ;;  %v1480_v37 = vadd.f32 %v1391_v22, %v5986_v42  ;;  %v1311_v19 = vmul.f32 %v1303_v16, %v5989_v44 }
 0x2fd   :  { %v3154_v17 = vmul.f32 -1.442695, %v1478_v18  ;;  %3340 = vpow2.f32 %v3153_v36  ;;  %v3156_v40 = vmul.f32 -1.442695, %v1480_v37  ;;  %v1310_v37 = vmul.f32 %v1303_v16, %v5883_v45 }
 0x2fe   :  { %3342 = vpow2.f32 %v3155_v35 }
 0x2ff   :  { %3344 = vpow2.f32 %v3154_v17 }
 0x300   :  { %3346 = vpow2.f32 %v3156_v40  ;;  %v1312_v40 = vmul.f32 %v1303_v16, %v4037_v33 }
 0x30a   :  { %v3341_v10 = vpop.eup %3340 }
 0x30b   :  { %v3343_v23 = vpop.eup %3342  ;;  %v1503_v9 = vadd.f32 1.0, %v3341_v10 }
 0x30c   :  { %v3345_v7 = vpop.eup %3344  ;;  %v1505_v28 = vadd.f32 1.0, %v3343_v23 }
 0x30d   :  { %v3347_v27 = vpop.eup %3346  ;;  %v1504_v41 = vadd.f32 1.0, %v3345_v7  ;;  %3348 = vrcp.f32 %v1503_v9 }
 0x30e   :  { %3350 = vrcp.f32 %v1505_v28  ;;  %v1506_v17 = vadd.f32 1.0, %v3347_v27 }
 0x30f   :  { %3352 = vrcp.f32 %v1504_v41 }
 0x334   :  { %v1429_v22 = vpop.f32.mrf.mxu0  ;;  %v1470_v35 = vpop.f32.mrf.mxu1 }
 0x335   :  { %v1430_v18 = vadd.f32 %v1429_v22, %v1309_v31  ;;  %v1471_v36 = vadd.f32 %v1470_v35, %v1311_v19  ;;  %v3349_v19 = vpop.eup %3348 }
 0x336   :  { %v1431_v15 = vpop.f32.mrf.mxu0  ;;  %v1472_v10 = vpop.f32.mrf.mxu1 }
 0x337   :  { %v1481_v23 = vadd.f32 %v1430_v18, %v4328_v58  ;;  %v1483_v29 = vadd.f32 %v1471_v36, %v4332_v12  ;;  %v1432_v14 = vadd.f32 %v1431_v15, %v1310_v37  ;;  %v1473_v44 = vadd.f32 %v1472_v10, %v1312_v40  ;;  %v3351_v22 = vpop.eup %3350 }
 0x338   :  { %v1433_v7 = vpop.f32.mrf.mxu0  ;;  %v1474_v42 = vpop.f32.mrf.mxu1 }
 0x339   :  { %v3157_v32 = vmul.f32 -1.442695, %v1481_v23  ;;  %3354 = vtanh.f32 %v1483_v29  ;;  %v1482_v9 = vadd.f32 %v1432_v14, %v4335_v21  ;;  %v1484_v31 = vadd.f32 %v1473_v44, %v4338_v60  ;;  %v3353_v35 = vpop.eup %3352 }
 0x33a   :  { %3356 = vrcp.f32 %v1506_v17  ;;  %v1434_v16 = vpop.f32.mrf.mxu0  ;;  %v1475_v28 = vpop.f32.mrf.mxu1  ;;  %v1523_v42 = vmul.f32 %v3351_v22, %v4347_v20  ;;  %v5992_v22 = vld [vmem:[#allocation111_spill] sm:$0xff] }
 0x33b   :  { %3358 = vpow2.f32 %v3157_v32  ;;  %v3158_v27 = vmul.f32 -1.442695, %v1482_v9 }
 0x33c   :  { %3360 = vtanh.f32 %v1484_v31 }
 0x33d   :  { %3362 = vpow2.f32 %v3158_v27 }
 0x346   :  { %v3355_v37 = vpop.eup %3354 }
 0x347   :  { %v3357_v41 = vpop.eup %3356  ;;  %v1525_v18 = vmul.f32 %v3355_v37, %v3349_v19  ;;  %v5991_v19 = vld [vmem:[#allocation110_spill] sm:$0xff]  ;;  %v5994_v37 = vld [vmem:[#allocation113_spill] sm:$0xff] }
 0x348   :  { %v3359_v29 = vpop.eup %3358  ;;  %v1524_v17 = vmul.f32 %v3357_v41, %v4351_v3  ;;  %v5990_v3 = vld [vmem:[#allocation109_spill] sm:$0xff]  ;;  %v5995_v41 = vld [vmem:[#allocation114_spill] sm:$0xff] }
 0x349   :  { %v3361_v36 = vpop.eup %3360  ;;  %v1507_v14 = vadd.f32 1.0, %v3359_v29  ;;  %v4506_v40 = vadd.f32 %v1525_v18, %v1523_v42  ;;  %v5996_v42 = vld [vmem:[#allocation115_spill] sm:$0xff]  ;;  %v5997_v18 = vld [vmem:[#allocation116_spill] sm:$0xff]  ;;  %v5998_v29 = vld [vmem:[#allocation117_spill] sm:$0xff] }
 0x34a   :  { %v3363_v44 = vpop.eup %3362  ;;  %v1526_v32 = vmul.f32 %v3361_v36, %v3353_v35  ;;  %v5993_v35 = vld [vmem:[#allocation112_spill] sm:$0xff]  ;;  %v5999_v36 = vld [vmem:[#allocation118_spill] sm:$0xff] }
 0x34b   :  { %3364 = vrcp.f32 %v1507_v14  ;;  %v1508_v15 = vadd.f32 1.0, %v3363_v44  ;;  %v6000_v14 = vld [vmem:[#allocation119_spill] sm:$0xff]  ;;  %v6001_v44 = vld [vmem:[#allocation120_spill] sm:$0xff] }
 0x34c   :  { %3366 = vtanh.f32 %v4506_v40  ;;  %v4510_v10 = vadd.f32 %v1526_v32, %v1524_v17  ;;  %v6002_v17 = vld [vmem:[#allocation121_spill] sm:$0xff]  ;;  %v6003_v32 = vld [vmem:[#allocation122_spill] sm:$0xff] }
 0x34d   :  { %3368 = vrcp.f32 %v1508_v15  ;;  %v6004_v15 = vld [vmem:[#allocation123_spill] sm:$0xff] }
 0x34e   :  { %3370 = vtanh.f32 %v4510_v10 }
 0x358   :  { %v3365_v20 = vpop.eup %3364 }
 0x359   :  { %v3367_v23 = vpop.eup %3366 }
 0x35a   :  { %v3369_v7 = vpop.eup %3368  ;;  %v1531_v31 = vmul.f32 %v3367_v23, %v3365_v20  ;;  %v6005_v20 = vld [vmem:[#allocation124_spill] sm:$0xff]  ;;  %v6006_v23 = vld [vmem:[#allocation125_spill] sm:$0xff] }
 0x35b   :  { %v3371_v9 = vpop.eup %3370 }
 0x35c   :  { %v1532_v16 = vmul.f32 %v3371_v9, %v3369_v7  ;;  %v4513_v27 = vpack.c.bf16 %v1531_v31, %v1531_v31  ;;  %v6007_v7 = vld [vmem:[#allocation126_spill] sm:$0xff]  ;;  %v6008_v9 = vld [vmem:[#allocation127_spill] sm:$0xff]  ;;  %v6009_v31 = vld [vmem:[#allocation128_spill] sm:$0xff] }
 0x35e   :  { %v1534_v28 = vpack.c.bf16 %v1532_v16, %v1532_v16  ;;  %v6010_v16 = vld [vmem:[#allocation129_spill] sm:$0xff] }
 0x360   :  { %1579 = vmatprep.mubr.bf16.mxu0 %v1534_v28  ;;  %1620 = vmatprep.mubr.bf16.mxu1 %v1534_v28 }
 0x361   :  { %1580 = vmatmul.mubr.bf16.vlgmr.msra.gmra.mxu0 %v4513_v27  ;;  %1621 = vmatmul.mubr.bf16.vlgmr.msra.gmra.mxu1 %v4513_v27 }
 0x362   :  { %1630 = vmatpush1.bf16.msra.mxu0 %v3966_v54  ;;  %1671 = vmatpush1.bf16.msra.mxu1 %v5884_v2 }
 0x363   :  { %1661 = vmatprep.mubr.bf16.mxu0 %v1534_v28  ;;  %1702 = vmatprep.mubr.bf16.mxu1 %v1534_v28  ;;  %v6011_v28 = vld [vmem:[#allocation130_spill] sm:$0xff] }
 0x364   :  { %1631 = vmatprep.subr.bf16.mxu0 %v5885_v25  ;;  %1672 = vmatprep.subr.bf16.mxu1 %v5886_v62 }
 0x366   :  { %1632 = vmatpush1.bf16.msra.mxu0 %v5887_v52  ;;  %1673 = vmatpush1.bf16.msra.mxu1 %v5888_v61 }
 0x367   :  { %1633 = vmatprep.subr.bf16.mxu0 %v5889_v11  ;;  %1674 = vmatprep.subr.bf16.mxu1 %v5890_v48 }
 0x36a   :  { %1634 = vmatpush1.bf16.msra.mxu0 %v5891_v50  ;;  %1675 = vmatpush1.bf16.msra.mxu1 %v5892_v56 }
 0x36b   :  { %1635 = vmatprep.subr.bf16.mxu0 %v5893_v6  ;;  %1676 = vmatprep.subr.bf16.mxu1 %v5894_v57 }
 0x36e   :  { %1636 = vmatpush1.bf16.msra.mxu0 %v5990_v3  ;;  %1677 = vmatpush1.bf16.msra.mxu1 %v5991_v19 }
 0x36f   :  { %1637 = vmatprep.subr.bf16.mxu0 %v5992_v22  ;;  %1678 = vmatprep.subr.bf16.mxu1 %v5993_v35 }
 0x372   :  { %1638 = vmatpush1.bf16.msra.mxu0 %v5994_v37  ;;  %1679 = vmatpush1.bf16.msra.mxu1 %v5995_v41 }
 0x373   :  { %1639 = vmatprep.subr.bf16.mxu0 %v5996_v42  ;;  %1680 = vmatprep.subr.bf16.mxu1 %v5997_v18 }
 0x376   :  { %1640 = vmatpush1.bf16.msra.mxu0 %v5998_v29  ;;  %1681 = vmatpush1.bf16.msra.mxu1 %v5999_v36 }
 0x377   :  { %1641 = vmatprep.subr.bf16.mxu0 %v6000_v14  ;;  %1682 = vmatprep.subr.bf16.mxu1 %v6001_v44  ;;  %v6012_v44 = vld [vmem:[#allocation131_spill] sm:$0xff] }
 0x37a   :  { %1642 = vmatpush1.bf16.msra.mxu0 %v6002_v17  ;;  %1683 = vmatpush1.bf16.msra.mxu1 %v6003_v32  ;;  %v6013_v17 = vld [vmem:[#allocation132_spill] sm:$0xff]  ;;  %v6014_v32 = vld [vmem:[#allocation133_spill] sm:$0xff] }
 0x37b   :  { %1643 = vmatprep.subr.bf16.mxu0 %v6004_v15  ;;  %1684 = vmatprep.subr.bf16.mxu1 %v6005_v20 }
 0x37e   :  { %1644 = vmatpush1.bf16.msra.mxu0 %v6006_v23  ;;  %1685 = vmatpush1.bf16.msra.mxu1 %v6007_v7  ;;  %v6015_v7 = vld [vmem:[#allocation137_spill] sm:$0xff] }
 0x37f   :  { %1645 = vmatprep.subr.bf16.mxu0 %v6008_v9  ;;  %1686 = vmatprep.subr.bf16.mxu1 %v6009_v31  ;;  %v6016_v9 = vld [vmem:[#allocation138_spill] sm:$0xff] }
 0x382   :  { %1646 = vmatpush2.bf16.msra.mxu0 %v6010_v16  ;;  %1687 = vmatpush2.bf16.msra.mxu1 %v6011_v28 }
 0x383   :  { %1647 = vmatprep.subr.bf16.mxu0 %v6012_v44  ;;  %1688 = vmatprep.subr.bf16.mxu1 %v6013_v17  ;;  %v6092_v17 = vld [vmem:[#allocation89_spill] sm:$0xff] }
 0x386   :  { %1648 = vmatpush2.bf16.msra.mxu0 %v6014_v32  ;;  %1689 = vmatpush2.bf16.msra.mxu1 %v5920_v49 }
 0x387   :  { %1649 = vmatprep.subr.bf16.mxu0 %v5921_v59  ;;  %1690 = vmatprep.subr.bf16.mxu1 %v5922_v38 }
 0x38a   :  { %1650 = vmatpush2.bf16.msra.mxu0 %v6015_v7  ;;  %1691 = vmatpush2.bf16.msra.mxu1 %v6016_v9 }
 0x38b   :  { %1651 = vmatprep.subr.bf16.mxu0 %v5925_v24  ;;  %1692 = vmatprep.subr.bf16.mxu1 %v5926_v63  ;;  %v1537_v24 = vpop.permute.xlu1 %1536 }
 0x38e   :  { %1652 = vmatpush2.bf16.msra.mxu0 %v5927_v51  ;;  %1693 = vmatpush2.bf16.msra.mxu1 %v5928_v1  ;;  %v6017_v1 = vld [vmem:[#allocation153_spill] sm:$0xff] }
 0x38f   :  { %1653 = vmatprep.subr.bf16.mxu0 %v5929_v8  ;;  %1694 = vmatprep.subr.bf16.mxu1 %v5930_v53  ;;  %v6018_v8 = vld [vmem:[#allocation154_spill] sm:$0xff]  ;;  %v6019_v53 = vld [vmem:[#allocation155_spill] sm:$0xff] }
 0x392   :  { %1654 = vmatpush2.bf16.msra.mxu0 %v4191_v43  ;;  %1695 = vmatpush2.bf16.msra.mxu1 %v4193_v30  ;;  %v6020_v43 = vld [vmem:[#allocation156_spill] sm:$0xff]  ;;  %v6021_v30 = vld [vmem:[#allocation157_spill] sm:$0xff] }
 0x393   :  { %1655 = vmatprep.subr.bf16.mxu0 %v4197_v0  ;;  %1696 = vmatprep.subr.bf16.mxu1 %v5931_v46  ;;  %v6022_v0 = vld [vmem:[#allocation158_spill] sm:$0xff]  ;;  %v6023_v46 = vld [vmem:[#allocation19_spill] sm:$0xff] }
 0x396   :  { %1656 = vmatpush2.bf16.msra.mxu0 %v5932_v47  ;;  %1697 = vmatpush2.bf16.msra.mxu1 %v4205_v55  ;;  %v6024_v47 = vld [vmem:[#allocation21_spill] sm:$0xff] }
 0x397   :  { %1657 = vmatprep.subr.bf16.mxu0 %v4209_v34  ;;  %1698 = vmatprep.subr.bf16.mxu1 %v4211_v13  ;;  %v6025_v13 = vld [vmem:[#allocation20_spill] sm:$0xff]  ;;  %v6034_v34 = vld [vmem:[#allocation30_spill] sm:$0xff] }
 0x39a   :  { %1658 = vmatpush2.bf16.msra.mxu0 %v6017_v1  ;;  %1699 = vmatpush2.bf16.msra.mxu1 %v6018_v8  ;;  %v6026_v1 = vld [vmem:[#allocation22_spill] sm:$0xff]  ;;  %v6027_v8 = vld [vmem:[#allocation23_spill] sm:$0xff] }
 0x39b   :  { %1659 = vmatprep.subr.bf16.mxu0 %v6019_v53  ;;  %1700 = vmatprep.subr.bf16.mxu1 %v6020_v43  ;;  %v6028_v53 = vld [vmem:[#allocation24_spill] sm:$0xff]  ;;  %v6029_v43 = vld [vmem:[#allocation25_spill] sm:$0xff] }
 0x39e   :  { %1660 = vmatpush2.bf16.msra.mxu0 %v6021_v30  ;;  %1701 = vmatpush2.bf16.msra.mxu1 %v6022_v0  ;;  %v6030_v30 = vld [vmem:[#allocation26_spill] sm:$0xff]  ;;  %v6031_v0 = vld [vmem:[#allocation27_spill] sm:$0xff] }
 0x39f   :  { %1781 = vmatprep.subr.bf16.mxu0 %v6023_v46  ;;  %1822 = vmatprep.subr.bf16.mxu1 %v6024_v47  ;;  %v6032_v46 = vld [vmem:[#allocation28_spill] sm:$0xff]  ;;  %v6033_v47 = vld [vmem:[#allocation29_spill] sm:$0xff] }
 0x3a1   :  { %1662 = vmatmul.mubr.bf16.vlgmr.msra.gmra.mxu0 %v4513_v27  ;;  %1703 = vmatmul.mubr.bf16.vlgmr.msra.gmra.mxu1 %v4513_v27  ;;  %v6035_v27 = vld [vmem:[#allocation31_spill] sm:$0xff] }
 0x3a2   :  { %1782 = vmatpush1.bf16.msra.mxu0 %v6025_v13  ;;  %1823 = vmatpush1.bf16.msra.mxu1 %v6026_v1  ;;  %v6036_v13 = vld [vmem:[#allocation32_spill] sm:$0xff]  ;;  %v6037_v1 = vld [vmem:[#allocation33_spill] sm:$0xff] }
 0x3a3   :  { %1783 = vmatprep.subr.bf16.mxu0 %v6027_v8  ;;  %1824 = vmatprep.subr.bf16.mxu1 %v6028_v53  ;;  %v6038_v8 = vld [vmem:[#allocation34_spill] sm:$0xff]  ;;  %v6039_v53 = vld [vmem:[#allocation35_spill] sm:$0xff] }
 0x3a6   :  { %1784 = vmatpush1.bf16.msra.mxu0 %v6029_v43  ;;  %1825 = vmatpush1.bf16.msra.mxu1 %v6030_v30  ;;  %v6040_v43 = vld [vmem:[#allocation36_spill] sm:$0xff]  ;;  %v6041_v30 = vld [vmem:[#allocation37_spill] sm:$0xff] }
 0x3a7   :  { %1785 = vmatprep.subr.bf16.mxu0 %v6031_v0  ;;  %1826 = vmatprep.subr.bf16.mxu1 %v6032_v46  ;;  %v6042_v0 = vld [vmem:[#allocation38_spill] sm:$0xff]  ;;  %v6043_v46 = vld [vmem:[#allocation39_spill] sm:$0xff] }
 0x3aa   :  { %1786 = vmatpush1.bf16.msra.mxu0 %v6033_v47  ;;  %1827 = vmatpush1.bf16.msra.mxu1 %v6034_v34  ;;  %v6044_v47 = vld [vmem:[#allocation40_spill] sm:$0xff]  ;;  %v6045_v34 = vld [vmem:[#allocation41_spill] sm:$0xff] }
 0x3ab   :  { %1787 = vmatprep.subr.bf16.mxu0 %v6035_v27  ;;  %1828 = vmatprep.subr.bf16.mxu1 %v6036_v13  ;;  %v6046_v27 = vld [vmem:[#allocation42_spill] sm:$0xff]  ;;  %v6047_v13 = vld [vmem:[#allocation43_spill] sm:$0xff] }
 0x3ae   :  { %1788 = vmatpush1.bf16.msra.mxu0 %v6037_v1  ;;  %1829 = vmatpush1.bf16.msra.mxu1 %v6038_v8  ;;  %v6048_v1 = vld [vmem:[#allocation44_spill] sm:$0xff]  ;;  %v6049_v8 = vld [vmem:[#allocation45_spill] sm:$0xff] }
 0x3af   :  { %1789 = vmatprep.subr.bf16.mxu0 %v6039_v53  ;;  %1830 = vmatprep.subr.bf16.mxu1 %v6040_v43  ;;  %v6050_v53 = vld [vmem:[#allocation46_spill] sm:$0xff]  ;;  %v6051_v43 = vld [vmem:[#allocation47_spill] sm:$0xff] }
 0x3b2   :  { %1790 = vmatpush1.bf16.msra.mxu0 %v6041_v30  ;;  %1831 = vmatpush1.bf16.msra.mxu1 %v6042_v0  ;;  %v6052_v30 = vld [vmem:[#allocation48_spill] sm:$0xff]  ;;  %v6053_v0 = vld [vmem:[#allocation49_spill] sm:$0xff] }
 0x3b3   :  { %1791 = vmatprep.subr.bf16.mxu0 %v6043_v46  ;;  %1832 = vmatprep.subr.bf16.mxu1 %v6044_v47  ;;  %v6054_v46 = vld [vmem:[#allocation50_spill] sm:$0xff]  ;;  %v6055_v47 = vld [vmem:[#allocation51_spill] sm:$0xff] }
 0x3b6   :  { %1792 = vmatpush1.bf16.msra.mxu0 %v6045_v34  ;;  %1833 = vmatpush1.bf16.msra.mxu1 %v6046_v27  ;;  %v6056_v34 = vld [vmem:[#allocation52_spill] sm:$0xff]  ;;  %v6057_v27 = vld [vmem:[#allocation53_spill] sm:$0xff] }
 0x3b7   :  { %1793 = vmatprep.subr.bf16.mxu0 %v6047_v13  ;;  %1834 = vmatprep.subr.bf16.mxu1 %v6048_v1  ;;  %v6058_v13 = vld [vmem:[#allocation54_spill] sm:$0xff]  ;;  %v6059_v1 = vld [vmem:[#allocation55_spill] sm:$0xff] }
 0x3ba   :  { %1794 = vmatpush1.bf16.msra.mxu0 %v6049_v8  ;;  %1835 = vmatpush1.bf16.msra.mxu1 %v6050_v53  ;;  %v6060_v8 = vld [vmem:[#allocation56_spill] sm:$0xff]  ;;  %v6061_v53 = vld [vmem:[#allocation57_spill] sm:$0xff] }
 0x3bb   :  { %1795 = vmatprep.subr.bf16.mxu0 %v6051_v43  ;;  %1836 = vmatprep.subr.bf16.mxu1 %v6052_v30  ;;  %v6062_v43 = vld [vmem:[#allocation58_spill] sm:$0xff]  ;;  %v6063_v30 = vld [vmem:[#allocation59_spill] sm:$0xff] }
 0x3be   :  { %1796 = vmatpush1.bf16.msra.mxu0 %v6053_v0  ;;  %1837 = vmatpush1.bf16.msra.mxu1 %v6054_v46  ;;  %v6064_v0 = vld [vmem:[#allocation60_spill] sm:$0xff]  ;;  %v6065_v46 = vld [vmem:[#allocation61_spill] sm:$0xff] }
 0x3bf   :  { %1797 = vmatprep.subr.bf16.mxu0 %v6055_v47  ;;  %1838 = vmatprep.subr.bf16.mxu1 %v6056_v34  ;;  %v6066_v47 = vld [vmem:[#allocation62_spill] sm:$0xff]  ;;  %v6067_v34 = vld [vmem:[#allocation63_spill] sm:$0xff] }
 0x3c2   :  { %1798 = vmatpush2.bf16.msra.mxu0 %v6057_v27  ;;  %1839 = vmatpush2.bf16.msra.mxu1 %v6058_v13  ;;  %v6068_v27 = vld [vmem:[#allocation64_spill] sm:$0xff]  ;;  %v6069_v13 = vld [vmem:[#allocation65_spill] sm:$0xff] }
 0x3c3   :  { %1799 = vmatprep.subr.bf16.mxu0 %v6059_v1  ;;  %1840 = vmatprep.subr.bf16.mxu1 %v6060_v8  ;;  %v6070_v1 = vld [vmem:[#allocation66_spill] sm:$0xff]  ;;  %v6071_v8 = vld [vmem:[#allocation67_spill] sm:$0xff] }
 0x3c6   :  { %1800 = vmatpush2.bf16.msra.mxu0 %v6061_v53  ;;  %1841 = vmatpush2.bf16.msra.mxu1 %v6062_v43  ;;  %v6072_v53 = vld [vmem:[#allocation68_spill] sm:$0xff]  ;;  %v6073_v43 = vld [vmem:[#allocation69_spill] sm:$0xff] }
 0x3c7   :  { %1801 = vmatprep.subr.bf16.mxu0 %v6063_v30  ;;  %1842 = vmatprep.subr.bf16.mxu1 %v6064_v0  ;;  %v6074_v30 = vld [vmem:[#allocation70_spill] sm:$0xff]  ;;  %v6075_v0 = vld [vmem:[#allocation71_spill] sm:$0xff] }
 0x3ca   :  { %1802 = vmatpush2.bf16.msra.mxu0 %v6065_v46  ;;  %1843 = vmatpush2.bf16.msra.mxu1 %v6066_v47  ;;  %v6076_v46 = vld [vmem:[#allocation72_spill] sm:$0xff]  ;;  %v6077_v47 = vld [vmem:[#allocation73_spill] sm:$0xff] }
 0x3cb   :  { %1803 = vmatprep.subr.bf16.mxu0 %v6067_v34  ;;  %1844 = vmatprep.subr.bf16.mxu1 %v6068_v27  ;;  %v6078_v34 = vld [vmem:[#allocation74_spill] sm:$0xff]  ;;  %v6079_v27 = vld [vmem:[#allocation75_spill] sm:$0xff] }
 0x3ce   :  { %1804 = vmatpush2.bf16.msra.mxu0 %v6069_v13  ;;  %1845 = vmatpush2.bf16.msra.mxu1 %v6070_v1  ;;  %v6080_v13 = vld [vmem:[#allocation76_spill] sm:$0xff]  ;;  %v6081_v1 = vld [vmem:[#allocation77_spill] sm:$0xff] }
 0x3cf   :  { %1805 = vmatprep.subr.bf16.mxu0 %v6071_v8  ;;  %1846 = vmatprep.subr.bf16.mxu1 %v6072_v53  ;;  %v6082_v8 = vld [vmem:[#allocation78_spill] sm:$0xff]  ;;  %v6083_v53 = vld [vmem:[#allocation79_spill] sm:$0xff] }
 0x3d2   :  { %1806 = vmatpush2.bf16.msra.mxu0 %v6073_v43  ;;  %1847 = vmatpush2.bf16.msra.mxu1 %v6074_v30  ;;  %v6084_v43 = vld [vmem:[#allocation80_spill] sm:$0xff]  ;;  %v6085_v30 = vld [vmem:[#allocation81_spill] sm:$0xff] }
 0x3d3   :  { %1807 = vmatprep.subr.bf16.mxu0 %v6075_v0  ;;  %1848 = vmatprep.subr.bf16.mxu1 %v6076_v46  ;;  %v6086_v0 = vld [vmem:[#allocation83_spill] sm:$0xff]  ;;  %v6087_v46 = vld [vmem:[#allocation84_spill] sm:$0xff] }
 0x3d6   :  { %1808 = vmatpush2.bf16.msra.mxu0 %v6077_v47  ;;  %1849 = vmatpush2.bf16.msra.mxu1 %v6078_v34  ;;  %v6088_v47 = vld [vmem:[#allocation85_spill] sm:$0xff] }
 0x3d7   :  { %1809 = vmatprep.subr.bf16.mxu0 %v6079_v27  ;;  %1850 = vmatprep.subr.bf16.mxu1 %v6080_v13 }
 0x3da   :  { %1810 = vmatpush2.bf16.msra.mxu0 %v6081_v1  ;;  %1851 = vmatpush2.bf16.msra.mxu1 %v6082_v8 }
 0x3db   :  { %1811 = vmatprep.subr.bf16.mxu0 %v6083_v53  ;;  %1852 = vmatprep.subr.bf16.mxu1 %v6084_v43  ;;  %v6089_v53 = vld [vmem:[#allocation90_spill] sm:$0xff]  ;;  %v1541_v43 = vmul.f32 %v1537_v24, %v5980_v39 }
 0x3dc   :  { %v1539_v9 = vmul.f32 %v1537_v24, %v6089_v53 }
 0x3de   :  { %1812 = vmatpush2.bf16.msra.mxu0 %v6085_v30  ;;  %1853 = vmatpush2.bf16.msra.mxu1 %v6086_v0  ;;  %v6090_v30 = vld [vmem:[#allocation91_spill] sm:$0xff] }
 0x3df   :  { %1863 = vmatprep.subr.bf16.mxu0 %v6087_v46  ;;  %1904 = vmatprep.subr.bf16.mxu1 %v6088_v47  ;;  %v1540_v7 = vmul.f32 %v1537_v24, %v6090_v30  ;;  %v1542_v46 = vmul.f32 %v1537_v24, %v5982_v5 }
 0x421   :  { %v1581_v34 = vpop.f32.mrf.mxu0  ;;  %v1622_v27 = vpop.f32.mrf.mxu1 }
 0x422   :  { %v1582_v0 = vadd.f32 %v1581_v34, %v1539_v9  ;;  %v1623_v38 = vadd.f32 %v1622_v27, %v1541_v43  ;;  %v3715_v34 = vmov 4   ;;  %v6093_v43 = vld [vmem:[#allocation159_spill] sm:$0xff] }
 0x423   :  { %v1583_v55 = vpop.f32.mrf.mxu0  ;;  %v1624_v13 = vpop.f32.mrf.mxu1  ;;  %3271 = vset.pattern.permute.xlu1 %v3715_v34 }
 0x424   :  { %v1584_v47 = vadd.f32 %v1583_v55, %v1540_v7  ;;  %v1711_v59 = vadd.f32 %v1582_v0, %v5983_v4  ;;  %v1713_v49 = vadd.f32 %v1623_v38, %v5984_v26  ;;  %1770 = vperm.xlu1 %3271, %v6093_v43   ;;  %v6095_v7 = vld [vmem:[#allocation98_spill] sm:$0xff] }
 0x425   :  { %v1585_v51 = vpop.f32.mrf.mxu0  ;;  %v1626_v1 = vpop.f32.mrf.mxu1  ;;  %v1545_v9 = vmul.f32 %v1537_v24, %v6095_v7 }
 0x426   :  { %v1625_v51 = vadd.f32 %v1624_v13, %v1542_v46  ;;  %v6091_v1 = vld [vmem:[#allocation87_spill] sm:$0xff]  ;;  %v3161_v32 = vmul.f32 -1.442695, %v1713_v49 }
 0x427   :  { %v1586_v63 = vpop.f32.mrf.mxu0  ;;  %v1627_v8 = vpop.f32.mrf.mxu1 }
 0x428   :  { %v1712_v63 = vadd.f32 %v1584_v47, %v6091_v1  ;;  %v3159_v8 = vmul.f32 -1.442695, %v1711_v59  ;;  %v1714_v53 = vadd.f32 %v1625_v51, %v6092_v17  ;;  %v6094_v59 = vld [vmem:[#allocation96_spill] sm:$0xff] }
 0x429   :  { %v1543_v49 = vmul.f32 %v1537_v24, %v6094_v59 }
 0x42a   :  { %v3160_v44 = vmul.f32 -1.442695, %v1712_v63  ;;  %3372 = vpow2.f32 %v3159_v8  ;;  %v3162_v30 = vmul.f32 -1.442695, %v1714_v53  ;;  %v1544_v53 = vmul.f32 %v1537_v24, %v5883_v45 }
 0x42b   :  { %3374 = vpow2.f32 %v3161_v32 }
 0x42c   :  { %3376 = vpow2.f32 %v3160_v44 }
 0x42d   :  { %3378 = vpow2.f32 %v3162_v30  ;;  %v1546_v30 = vmul.f32 %v1537_v24, %v4037_v33 }
 0x437   :  { %v3373_v0 = vpop.eup %3372 }
 0x438   :  { %v3375_v55 = vpop.eup %3374  ;;  %v1737_v13 = vadd.f32 1.0, %v3373_v0 }
 0x439   :  { %v3377_v38 = vpop.eup %3376  ;;  %v1739_v46 = vadd.f32 1.0, %v3375_v55 }
 0x43a   :  { %v3379_v47 = vpop.eup %3378  ;;  %v1738_v27 = vadd.f32 1.0, %v3377_v38  ;;  %3380 = vrcp.f32 %v1737_v13 }
 0x43b   :  { %3382 = vrcp.f32 %v1739_v46  ;;  %v1740_v44 = vadd.f32 1.0, %v3379_v47 }
 0x43c   :  { %3384 = vrcp.f32 %v1738_v27 }
 0x461   :  { %v1663_v51 = vpop.f32.mrf.mxu0  ;;  %v1704_v32 = vpop.f32.mrf.mxu1 }
 0x462   :  { %v1664_v63 = vadd.f32 %v1663_v51, %v1543_v49  ;;  %v1705_v8 = vadd.f32 %v1704_v32, %v1545_v9  ;;  %v3381_v9 = vpop.eup %3380 }
 0x463   :  { %v1665_v34 = vpop.f32.mrf.mxu0  ;;  %v1706_v43 = vpop.f32.mrf.mxu1 }
 0x464   :  { %v1715_v0 = vadd.f32 %v1664_v63, %v4328_v58  ;;  %v1717_v55 = vadd.f32 %v1705_v8, %v4332_v12  ;;  %v1666_v59 = vadd.f32 %v1665_v34, %v1544_v53  ;;  %v1707_v7 = vadd.f32 %v1706_v43, %v1546_v30  ;;  %v3383_v51 = vpop.eup %3382 }
 0x465   :  { %v1667_v38 = vpop.f32.mrf.mxu0  ;;  %v1708_v17 = vpop.f32.mrf.mxu1 }
 0x466   :  { %v3163_v1 = vmul.f32 -1.442695, %v1715_v0  ;;  %3386 = vtanh.f32 %v1717_v55  ;;  %v1716_v13 = vadd.f32 %v1666_v59, %v4335_v21  ;;  %v1718_v49 = vadd.f32 %v1707_v7, %v4338_v60  ;;  %v3385_v32 = vpop.eup %3384 }
 0x467   :  { %3388 = vrcp.f32 %v1740_v44  ;;  %v1668_v24 = vpop.f32.mrf.mxu0  ;;  %v1709_v46 = vpop.f32.mrf.mxu1  ;;  %v1757_v17 = vmul.f32 %v3383_v51, %v4506_v40  ;;  %v6098_v51 = vld [vmem:[#allocation122_spill] sm:$0xff] }
 0x468   :  { %3390 = vpow2.f32 %v3163_v1  ;;  %v3164_v47 = vmul.f32 -1.442695, %v1716_v13 }
 0x469   :  { %3392 = vtanh.f32 %v1718_v49 }
 0x46a   :  { %3394 = vpow2.f32 %v3164_v47 }
 0x473   :  { %v3387_v53 = vpop.eup %3386 }
 0x474   :  { %v3389_v27 = vpop.eup %3388  ;;  %v1759_v63 = vmul.f32 %v3387_v53, %v3381_v9  ;;  %v6097_v9 = vld [vmem:[#allocation121_spill] sm:$0xff]  ;;  %v6100_v53 = vld [vmem:[#allocation127_spill] sm:$0xff] }
 0x475   :  { %v3391_v8 = vpop.eup %3390  ;;  %v1758_v44 = vmul.f32 %v3389_v27, %v4510_v10  ;;  %v6096_v10 = vld [vmem:[#allocation120_spill] sm:$0xff]  ;;  %v6101_v27 = vld [vmem:[#allocation131_spill] sm:$0xff] }
 0x476   :  { %v3393_v30 = vpop.eup %3392  ;;  %v1741_v59 = vadd.f32 1.0, %v3391_v8  ;;  %v4665_v34 = vadd.f32 %v1759_v63, %v1757_v17  ;;  %v6102_v17 = vld [vmem:[#allocation132_spill] sm:$0xff]  ;;  %v6103_v63 = vld [vmem:[#allocation133_spill] sm:$0xff]  ;;  %v6104_v8 = vld [vmem:[#allocation134_spill] sm:$0xff] }
 0x477   :  { %v3395_v7 = vpop.eup %3394  ;;  %v1760_v1 = vmul.f32 %v3393_v30, %v3385_v32  ;;  %v6099_v32 = vld [vmem:[#allocation126_spill] sm:$0xff]  ;;  %v6105_v30 = vld [vmem:[#allocation135_spill] sm:$0xff] }
 0x478   :  { %3396 = vrcp.f32 %v1741_v59  ;;  %v1742_v43 = vadd.f32 1.0, %v3395_v7  ;;  %v6106_v59 = vld [vmem:[#allocation136_spill] sm:$0xff]  ;;  %v6107_v7 = vld [vmem:[#allocation137_spill] sm:$0xff] }
 0x479   :  { %3398 = vtanh.f32 %v4665_v34  ;;  %v4669_v0 = vadd.f32 %v1760_v1, %v1758_v44  ;;  %v6108_v44 = vld [vmem:[#allocation138_spill] sm:$0xff]  ;;  %v6109_v1 = vld [vmem:[#allocation139_spill] sm:$0xff] }
 0x47a   :  { %3400 = vrcp.f32 %v1742_v43  ;;  %v6110_v43 = vld [vmem:[#allocation140_spill] sm:$0xff] }
 0x47b   :  { %3402 = vtanh.f32 %v4669_v0 }
 0x485   :  { %v3397_v40 = vpop.eup %3396 }
 0x486   :  { %v3399_v55 = vpop.eup %3398 }
 0x487   :  { %v3401_v38 = vpop.eup %3400  ;;  %v1765_v49 = vmul.f32 %v3399_v55, %v3397_v40  ;;  %v6111_v40 = vld [vmem:[#allocation141_spill] sm:$0xff]  ;;  %v6112_v55 = vld [vmem:[#allocation142_spill] sm:$0xff] }
 0x488   :  { %v3403_v13 = vpop.eup %3402 }
 0x489   :  { %v1766_v24 = vmul.f32 %v3403_v13, %v3401_v38  ;;  %v4672_v47 = vpack.c.bf16 %v1765_v49, %v1765_v49  ;;  %v6113_v38 = vld [vmem:[#allocation143_spill] sm:$0xff]  ;;  %v6114_v13 = vld [vmem:[#allocation144_spill] sm:$0xff]  ;;  %v6115_v49 = vld [vmem:[#allocation145_spill] sm:$0xff] }
 0x48b   :  { %v1768_v46 = vpack.c.bf16 %v1766_v24, %v1766_v24  ;;  %v6116_v24 = vld [vmem:[#allocation146_spill] sm:$0xff] }
 0x48d   :  { %1813 = vmatprep.mubr.bf16.mxu0 %v1768_v46  ;;  %1854 = vmatprep.mubr.bf16.mxu1 %v1768_v46 }
 0x48e   :  { %1814 = vmatmul.mubr.bf16.vlgmr.msra.gmra.mxu0 %v4672_v47  ;;  %1855 = vmatmul.mubr.bf16.vlgmr.msra.gmra.mxu1 %v4672_v47 }
 0x48f   :  { %1864 = vmatpush1.bf16.msra.mxu0 %v3966_v54  ;;  %1905 = vmatpush1.bf16.msra.mxu1 %v5884_v2 }
 0x490   :  { %1895 = vmatprep.mubr.bf16.mxu0 %v1768_v46  ;;  %1936 = vmatprep.mubr.bf16.mxu1 %v1768_v46  ;;  %v6117_v46 = vld [vmem:[#allocation147_spill] sm:$0xff] }
 0x491   :  { %1865 = vmatprep.subr.bf16.mxu0 %v5885_v25  ;;  %1906 = vmatprep.subr.bf16.mxu1 %v5886_v62 }
 0x493   :  { %1866 = vmatpush1.bf16.msra.mxu0 %v5887_v52  ;;  %1907 = vmatpush1.bf16.msra.mxu1 %v5888_v61 }
 0x494   :  { %1867 = vmatprep.subr.bf16.mxu0 %v5889_v11  ;;  %1908 = vmatprep.subr.bf16.mxu1 %v5890_v48 }
 0x497   :  { %1868 = vmatpush1.bf16.msra.mxu0 %v5891_v50  ;;  %1909 = vmatpush1.bf16.msra.mxu1 %v5892_v56 }
 0x498   :  { %1869 = vmatprep.subr.bf16.mxu0 %v5893_v6  ;;  %1910 = vmatprep.subr.bf16.mxu1 %v5894_v57 }
 0x49b   :  { %1870 = vmatpush1.bf16.msra.mxu0 %v5990_v3  ;;  %1911 = vmatpush1.bf16.msra.mxu1 %v5991_v19 }
 0x49c   :  { %1871 = vmatprep.subr.bf16.mxu0 %v5992_v22  ;;  %1912 = vmatprep.subr.bf16.mxu1 %v5993_v35 }
 0x49f   :  { %1872 = vmatpush1.bf16.msra.mxu0 %v5994_v37  ;;  %1913 = vmatpush1.bf16.msra.mxu1 %v5995_v41 }
 0x4a0   :  { %1873 = vmatprep.subr.bf16.mxu0 %v5996_v42  ;;  %1914 = vmatprep.subr.bf16.mxu1 %v5997_v18 }
 0x4a3   :  { %1874 = vmatpush1.bf16.msra.mxu0 %v5998_v29  ;;  %1915 = vmatpush1.bf16.msra.mxu1 %v5999_v36 }
 0x4a4   :  { %1875 = vmatprep.subr.bf16.mxu0 %v6000_v14  ;;  %1916 = vmatprep.subr.bf16.mxu1 %v6096_v10 }
 0x4a7   :  { %1876 = vmatpush1.bf16.msra.mxu0 %v6097_v9  ;;  %1917 = vmatpush1.bf16.msra.mxu1 %v6098_v51 }
 0x4a8   :  { %1877 = vmatprep.subr.bf16.mxu0 %v6004_v15  ;;  %1918 = vmatprep.subr.bf16.mxu1 %v6005_v20 }
 0x4ab   :  { %1878 = vmatpush1.bf16.msra.mxu0 %v6006_v23  ;;  %1919 = vmatpush1.bf16.msra.mxu1 %v6099_v32 }
 0x4ac   :  { %1879 = vmatprep.subr.bf16.mxu0 %v6100_v53  ;;  %1920 = vmatprep.subr.bf16.mxu1 %v6009_v31  ;;  %v6198_v53 = vld [vmem:[#allocation89_spill] sm:$0xff] }
 0x4af   :  { %1880 = vmatpush2.bf16.msra.mxu0 %v6010_v16  ;;  %1921 = vmatpush2.bf16.msra.mxu1 %v6011_v28 }
 0x4b0   :  { %1881 = vmatprep.subr.bf16.mxu0 %v6101_v27  ;;  %1922 = vmatprep.subr.bf16.mxu1 %v6102_v17 }
 0x4b3   :  { %1882 = vmatpush2.bf16.msra.mxu0 %v6103_v63  ;;  %1923 = vmatpush2.bf16.msra.mxu1 %v6104_v8  ;;  %v1771_v8 = vpop.permute.xlu1 %1770 }
 0x4b4   :  { %1883 = vmatprep.subr.bf16.mxu0 %v6105_v30  ;;  %1924 = vmatprep.subr.bf16.mxu1 %v6106_v59 }
 0x4b7   :  { %1884 = vmatpush2.bf16.msra.mxu0 %v6107_v7  ;;  %1925 = vmatpush2.bf16.msra.mxu1 %v6108_v44  ;;  %v6118_v7 = vld [vmem:[#allocation148_spill] sm:$0xff]  ;;  %v6119_v44 = vld [vmem:[#allocation149_spill] sm:$0xff] }
 0x4b8   :  { %1885 = vmatprep.subr.bf16.mxu0 %v6109_v1  ;;  %1926 = vmatprep.subr.bf16.mxu1 %v6110_v43  ;;  %v6120_v1 = vld [vmem:[#allocation150_spill] sm:$0xff]  ;;  %v6121_v43 = vld [vmem:[#allocation151_spill] sm:$0xff] }
 0x4bb   :  { %1886 = vmatpush2.bf16.msra.mxu0 %v6111_v40  ;;  %1927 = vmatpush2.bf16.msra.mxu1 %v6112_v55  ;;  %v6122_v40 = vld [vmem:[#allocation152_spill] sm:$0xff]  ;;  %v6123_v55 = vld [vmem:[#allocation153_spill] sm:$0xff] }
 0x4bc   :  { %1887 = vmatprep.subr.bf16.mxu0 %v6113_v38  ;;  %1928 = vmatprep.subr.bf16.mxu1 %v6114_v13  ;;  %v6124_v38 = vld [vmem:[#allocation154_spill] sm:$0xff]  ;;  %v6125_v13 = vld [vmem:[#allocation155_spill] sm:$0xff] }
 0x4bf   :  { %1888 = vmatpush2.bf16.msra.mxu0 %v6115_v49  ;;  %1929 = vmatpush2.bf16.msra.mxu1 %v6116_v24  ;;  %v6126_v49 = vld [vmem:[#allocation156_spill] sm:$0xff]  ;;  %v6127_v24 = vld [vmem:[#allocation157_spill] sm:$0xff] }
 0x4c0   :  { %1889 = vmatprep.subr.bf16.mxu0 %v6117_v46  ;;  %1930 = vmatprep.subr.bf16.mxu1 %v6118_v7  ;;  %v6128_v46 = vld [vmem:[#allocation158_spill] sm:$0xff]  ;;  %v6129_v7 = vld [vmem:[#allocation19_spill] sm:$0xff] }
 0x4c3   :  { %1890 = vmatpush2.bf16.msra.mxu0 %v6119_v44  ;;  %1931 = vmatpush2.bf16.msra.mxu1 %v6120_v1  ;;  %v6130_v44 = vld [vmem:[#allocation21_spill] sm:$0xff] }
 0x4c4   :  { %1891 = vmatprep.subr.bf16.mxu0 %v6121_v43  ;;  %1932 = vmatprep.subr.bf16.mxu1 %v6122_v40  ;;  %v6131_v40 = vld [vmem:[#allocation20_spill] sm:$0xff]  ;;  %v6140_v43 = vld [vmem:[#allocation30_spill] sm:$0xff] }
 0x4c7   :  { %1892 = vmatpush2.bf16.msra.mxu0 %v6123_v55  ;;  %1933 = vmatpush2.bf16.msra.mxu1 %v6124_v38  ;;  %v6132_v55 = vld [vmem:[#allocation22_spill] sm:$0xff]  ;;  %v6133_v38 = vld [vmem:[#allocation23_spill] sm:$0xff] }
 0x4c8   :  { %1893 = vmatprep.subr.bf16.mxu0 %v6125_v13  ;;  %1934 = vmatprep.subr.bf16.mxu1 %v6126_v49  ;;  %v6134_v13 = vld [vmem:[#allocation24_spill] sm:$0xff]  ;;  %v6135_v49 = vld [vmem:[#allocation25_spill] sm:$0xff] }
 0x4cb   :  { %1894 = vmatpush2.bf16.msra.mxu0 %v6127_v24  ;;  %1935 = vmatpush2.bf16.msra.mxu1 %v6128_v46  ;;  %v6136_v24 = vld [vmem:[#allocation26_spill] sm:$0xff]  ;;  %v6137_v46 = vld [vmem:[#allocation27_spill] sm:$0xff] }
 0x4cc   :  { %2015 = vmatprep.subr.bf16.mxu0 %v6129_v7  ;;  %2056 = vmatprep.subr.bf16.mxu1 %v6130_v44  ;;  %v6138_v7 = vld [vmem:[#allocation28_spill] sm:$0xff]  ;;  %v6139_v44 = vld [vmem:[#allocation29_spill] sm:$0xff] }
 0x4ce   :  { %1896 = vmatmul.mubr.bf16.vlgmr.msra.gmra.mxu0 %v4672_v47  ;;  %1937 = vmatmul.mubr.bf16.vlgmr.msra.gmra.mxu1 %v4672_v47  ;;  %v6141_v47 = vld [vmem:[#allocation31_spill] sm:$0xff] }
 0x4cf   :  { %2016 = vmatpush1.bf16.msra.mxu0 %v6131_v40  ;;  %2057 = vmatpush1.bf16.msra.mxu1 %v6132_v55  ;;  %v6142_v40 = vld [vmem:[#allocation32_spill] sm:$0xff]  ;;  %v6143_v55 = vld [vmem:[#allocation33_spill] sm:$0xff] }
 0x4d0   :  { %2017 = vmatprep.subr.bf16.mxu0 %v6133_v38  ;;  %2058 = vmatprep.subr.bf16.mxu1 %v6134_v13  ;;  %v6144_v38 = vld [vmem:[#allocation34_spill] sm:$0xff]  ;;  %v6145_v13 = vld [vmem:[#allocation35_spill] sm:$0xff] }
 0x4d3   :  { %2018 = vmatpush1.bf16.msra.mxu0 %v6135_v49  ;;  %2059 = vmatpush1.bf16.msra.mxu1 %v6136_v24  ;;  %v6146_v49 = vld [vmem:[#allocation36_spill] sm:$0xff]  ;;  %v6147_v24 = vld [vmem:[#allocation37_spill] sm:$0xff] }
 0x4d4   :  { %2019 = vmatprep.subr.bf16.mxu0 %v6137_v46  ;;  %2060 = vmatprep.subr.bf16.mxu1 %v6138_v7  ;;  %v6148_v46 = vld [vmem:[#allocation38_spill] sm:$0xff]  ;;  %v6149_v7 = vld [vmem:[#allocation39_spill] sm:$0xff] }
 0x4d7   :  { %2020 = vmatpush1.bf16.msra.mxu0 %v6139_v44  ;;  %2061 = vmatpush1.bf16.msra.mxu1 %v6140_v43  ;;  %v6150_v44 = vld [vmem:[#allocation40_spill] sm:$0xff]  ;;  %v6151_v43 = vld [vmem:[#allocation41_spill] sm:$0xff] }
 0x4d8   :  { %2021 = vmatprep.subr.bf16.mxu0 %v6141_v47  ;;  %2062 = vmatprep.subr.bf16.mxu1 %v6142_v40  ;;  %v6152_v47 = vld [vmem:[#allocation42_spill] sm:$0xff]  ;;  %v6153_v40 = vld [vmem:[#allocation43_spill] sm:$0xff] }
 0x4db   :  { %2022 = vmatpush1.bf16.msra.mxu0 %v6143_v55  ;;  %2063 = vmatpush1.bf16.msra.mxu1 %v6144_v38  ;;  %v6154_v55 = vld [vmem:[#allocation44_spill] sm:$0xff]  ;;  %v6155_v38 = vld [vmem:[#allocation45_spill] sm:$0xff] }
 0x4dc   :  { %2023 = vmatprep.subr.bf16.mxu0 %v6145_v13  ;;  %2064 = vmatprep.subr.bf16.mxu1 %v6146_v49  ;;  %v6156_v13 = vld [vmem:[#allocation46_spill] sm:$0xff]  ;;  %v6157_v49 = vld [vmem:[#allocation47_spill] sm:$0xff] }
 0x4df   :  { %2024 = vmatpush1.bf16.msra.mxu0 %v6147_v24  ;;  %2065 = vmatpush1.bf16.msra.mxu1 %v6148_v46  ;;  %v6158_v24 = vld [vmem:[#allocation48_spill] sm:$0xff]  ;;  %v6159_v46 = vld [vmem:[#allocation49_spill] sm:$0xff] }
 0x4e0   :  { %2025 = vmatprep.subr.bf16.mxu0 %v6149_v7  ;;  %2066 = vmatprep.subr.bf16.mxu1 %v6150_v44  ;;  %v6160_v7 = vld [vmem:[#allocation50_spill] sm:$0xff]  ;;  %v6161_v44 = vld [vmem:[#allocation51_spill] sm:$0xff] }
 0x4e3   :  { %2026 = vmatpush1.bf16.msra.mxu0 %v6151_v43  ;;  %2067 = vmatpush1.bf16.msra.mxu1 %v6152_v47  ;;  %v6162_v43 = vld [vmem:[#allocation52_spill] sm:$0xff]  ;;  %v6163_v47 = vld [vmem:[#allocation53_spill] sm:$0xff] }
 0x4e4   :  { %2027 = vmatprep.subr.bf16.mxu0 %v6153_v40  ;;  %2068 = vmatprep.subr.bf16.mxu1 %v6154_v55  ;;  %v6164_v40 = vld [vmem:[#allocation54_spill] sm:$0xff]  ;;  %v6165_v55 = vld [vmem:[#allocation55_spill] sm:$0xff] }
 0x4e7   :  { %2028 = vmatpush1.bf16.msra.mxu0 %v6155_v38  ;;  %2069 = vmatpush1.bf16.msra.mxu1 %v6156_v13  ;;  %v6166_v38 = vld [vmem:[#allocation56_spill] sm:$0xff]  ;;  %v6167_v13 = vld [vmem:[#allocation57_spill] sm:$0xff] }
 0x4e8   :  { %2029 = vmatprep.subr.bf16.mxu0 %v6157_v49  ;;  %2070 = vmatprep.subr.bf16.mxu1 %v6158_v24  ;;  %v6168_v49 = vld [vmem:[#allocation58_spill] sm:$0xff]  ;;  %v6169_v24 = vld [vmem:[#allocation59_spill] sm:$0xff] }
 0x4eb   :  { %2030 = vmatpush1.bf16.msra.mxu0 %v6159_v46  ;;  %2071 = vmatpush1.bf16.msra.mxu1 %v6160_v7  ;;  %v6170_v46 = vld [vmem:[#allocation60_spill] sm:$0xff]  ;;  %v6171_v7 = vld [vmem:[#allocation61_spill] sm:$0xff] }
 0x4ec   :  { %2031 = vmatprep.subr.bf16.mxu0 %v6161_v44  ;;  %2072 = vmatprep.subr.bf16.mxu1 %v6162_v43  ;;  %v6172_v44 = vld [vmem:[#allocation62_spill] sm:$0xff]  ;;  %v6173_v43 = vld [vmem:[#allocation63_spill] sm:$0xff] }
 0x4ef   :  { %2032 = vmatpush2.bf16.msra.mxu0 %v6163_v47  ;;  %2073 = vmatpush2.bf16.msra.mxu1 %v6164_v40  ;;  %v6174_v47 = vld [vmem:[#allocation64_spill] sm:$0xff]  ;;  %v6175_v40 = vld [vmem:[#allocation65_spill] sm:$0xff] }
 0x4f0   :  { %2033 = vmatprep.subr.bf16.mxu0 %v6165_v55  ;;  %2074 = vmatprep.subr.bf16.mxu1 %v6166_v38  ;;  %v6176_v55 = vld [vmem:[#allocation66_spill] sm:$0xff]  ;;  %v6177_v38 = vld [vmem:[#allocation67_spill] sm:$0xff] }
 0x4f3   :  { %2034 = vmatpush2.bf16.msra.mxu0 %v6167_v13  ;;  %2075 = vmatpush2.bf16.msra.mxu1 %v6168_v49  ;;  %v6178_v13 = vld [vmem:[#allocation68_spill] sm:$0xff]  ;;  %v6179_v49 = vld [vmem:[#allocation69_spill] sm:$0xff] }
 0x4f4   :  { %2035 = vmatprep.subr.bf16.mxu0 %v6169_v24  ;;  %2076 = vmatprep.subr.bf16.mxu1 %v6170_v46  ;;  %v6180_v24 = vld [vmem:[#allocation70_spill] sm:$0xff]  ;;  %v6181_v46 = vld [vmem:[#allocation71_spill] sm:$0xff] }
 0x4f7   :  { %2036 = vmatpush2.bf16.msra.mxu0 %v6171_v7  ;;  %2077 = vmatpush2.bf16.msra.mxu1 %v6172_v44  ;;  %v6182_v7 = vld [vmem:[#allocation72_spill] sm:$0xff]  ;;  %v6183_v44 = vld [vmem:[#allocation73_spill] sm:$0xff] }
 0x4f8   :  { %2037 = vmatprep.subr.bf16.mxu0 %v6173_v43  ;;  %2078 = vmatprep.subr.bf16.mxu1 %v6174_v47  ;;  %v6184_v43 = vld [vmem:[#allocation74_spill] sm:$0xff]  ;;  %v6185_v47 = vld [vmem:[#allocation75_spill] sm:$0xff] }
 0x4fb   :  { %2038 = vmatpush2.bf16.msra.mxu0 %v6175_v40  ;;  %2079 = vmatpush2.bf16.msra.mxu1 %v6176_v55  ;;  %v6186_v40 = vld [vmem:[#allocation76_spill] sm:$0xff]  ;;  %v6187_v55 = vld [vmem:[#allocation77_spill] sm:$0xff] }
 0x4fc   :  { %2039 = vmatprep.subr.bf16.mxu0 %v6177_v38  ;;  %2080 = vmatprep.subr.bf16.mxu1 %v6178_v13  ;;  %v6188_v38 = vld [vmem:[#allocation78_spill] sm:$0xff]  ;;  %v6189_v13 = vld [vmem:[#allocation79_spill] sm:$0xff] }
 0x4ff   :  { %2040 = vmatpush2.bf16.msra.mxu0 %v6179_v49  ;;  %2081 = vmatpush2.bf16.msra.mxu1 %v6180_v24  ;;  %v6190_v49 = vld [vmem:[#allocation80_spill] sm:$0xff]  ;;  %v6191_v24 = vld [vmem:[#allocation81_spill] sm:$0xff] }
 0x500   :  { %2041 = vmatprep.subr.bf16.mxu0 %v6181_v46  ;;  %2082 = vmatprep.subr.bf16.mxu1 %v6182_v7  ;;  %v6192_v46 = vld [vmem:[#allocation83_spill] sm:$0xff]  ;;  %v6193_v7 = vld [vmem:[#allocation84_spill] sm:$0xff] }
 0x503   :  { %2042 = vmatpush2.bf16.msra.mxu0 %v6183_v44  ;;  %2083 = vmatpush2.bf16.msra.mxu1 %v6184_v43  ;;  %v6194_v44 = vld [vmem:[#allocation85_spill] sm:$0xff] }
 0x504   :  { %2043 = vmatprep.subr.bf16.mxu0 %v6185_v47  ;;  %2084 = vmatprep.subr.bf16.mxu1 %v6186_v40 }
 0x507   :  { %2044 = vmatpush2.bf16.msra.mxu0 %v6187_v55  ;;  %2085 = vmatpush2.bf16.msra.mxu1 %v6188_v38 }
 0x508   :  { %2045 = vmatprep.subr.bf16.mxu0 %v6189_v13  ;;  %2086 = vmatprep.subr.bf16.mxu1 %v6190_v49  ;;  %v6195_v13 = vld [vmem:[#allocation90_spill] sm:$0xff]  ;;  %v1775_v49 = vmul.f32 %v1771_v8, %v5980_v39 }
 0x509   :  { %v1773_v63 = vmul.f32 %v1771_v8, %v6195_v13 }
 0x50b   :  { %2046 = vmatpush2.bf16.msra.mxu0 %v6191_v24  ;;  %2087 = vmatpush2.bf16.msra.mxu1 %v6192_v46  ;;  %v6196_v24 = vld [vmem:[#allocation91_spill] sm:$0xff] }
 0x50c   :  { %2097 = vmatprep.subr.bf16.mxu0 %v6193_v7  ;;  %2138 = vmatprep.subr.bf16.mxu1 %v6194_v44  ;;  %v1774_v17 = vmul.f32 %v1771_v8, %v6196_v24  ;;  %v1776_v7 = vmul.f32 %v1771_v8, %v5982_v5 }
 0x54e   :  { %v1815_v43 = vpop.f32.mrf.mxu0  ;;  %v1856_v47 = vpop.f32.mrf.mxu1 }
 0x54f   :  { %v1816_v46 = vadd.f32 %v1815_v43, %v1773_v63  ;;  %v1857_v27 = vadd.f32 %v1856_v47, %v1775_v49  ;;  %v3716_v63 = vmov 5   ;;  %v4814_v43 = vld [vmem:[#allocation2] sm:$0xff] }
 0x550   :  { %v1817_v1 = vpop.f32.mrf.mxu0  ;;  %v1858_v40 = vpop.f32.mrf.mxu1  ;;  %3272 = vset.pattern.permute.xlu0 %v3716_v63  ;;  %6199 = vst [vmem:[#allocation95_spill] sm:$0xff] %v4814_v43  ;;  %v6201_v49 = vld [vmem:[#allocation98_spill] sm:$0xff] }
 0x551   :  { %v1818_v44 = vadd.f32 %v1817_v1, %v1774_v17  ;;  %v1945_v28 = vadd.f32 %v1816_v46, %v5983_v4  ;;  %v1947_v16 = vadd.f32 %v1857_v27, %v5984_v26  ;;  %2004 = vperm.xlu0 %3272, %v4814_v43   ;;  %v6200_v1 = vld [vmem:[#allocation96_spill] sm:$0xff]  ;;  %v1779_v46 = vmul.f32 %v1771_v8, %v6201_v49 }
 0x552   :  { %v1819_v59 = vpop.f32.mrf.mxu0  ;;  %v1860_v55 = vpop.f32.mrf.mxu1 }
 0x553   :  { %v1859_v59 = vadd.f32 %v1858_v40, %v1776_v7  ;;  %v6197_v55 = vld [vmem:[#allocation87_spill] sm:$0xff]  ;;  %v3167_v31 = vmul.f32 -1.442695, %v1947_v16  ;;  %v1777_v40 = vmul.f32 %v1771_v8, %v6200_v1 }
 0x554   :  { %v1820_v30 = vpop.f32.mrf.mxu0  ;;  %v1861_v38 = vpop.f32.mrf.mxu1 }
 0x555   :  { %v1946_v30 = vadd.f32 %v1818_v44, %v6197_v55  ;;  %v3165_v38 = vmul.f32 -1.442695, %v1945_v28  ;;  %v1948_v13 = vadd.f32 %v1859_v59, %v6198_v53  ;;  %v1778_v59 = vmul.f32 %v1771_v8, %v5883_v45 }
 0x557   :  { %v3166_v32 = vmul.f32 -1.442695, %v1946_v30  ;;  %3404 = vpow2.f32 %v3165_v38  ;;  %v3168_v24 = vmul.f32 -1.442695, %v1948_v13 }
 0x558   :  { %3406 = vpow2.f32 %v3167_v31 }
 0x559   :  { %3408 = vpow2.f32 %v3166_v32  ;;  %v1780_v32 = vmul.f32 %v1771_v8, %v4037_v33 }
 0x55a   :  { %3410 = vpow2.f32 %v3168_v24 }
 0x564   :  { %v3405_v27 = vpop.eup %3404 }
 0x565   :  { %v3407_v17 = vpop.eup %3406  ;;  %v1971_v44 = vadd.f32 1.0, %v3405_v27 }
 0x566   :  { %v3409_v7 = vpop.eup %3408  ;;  %v1973_v28 = vadd.f32 1.0, %v3407_v17 }
 0x567   :  { %v3411_v16 = vpop.eup %3410  ;;  %v1972_v31 = vadd.f32 1.0, %v3409_v7  ;;  %3412 = vrcp.f32 %v1971_v44 }
 0x568   :  { %3414 = vrcp.f32 %v1973_v28  ;;  %v1974_v24 = vadd.f32 1.0, %v3411_v16 }
 0x569   :  { %3416 = vrcp.f32 %v1972_v31 }
 0x58e   :  { %v1897_v13 = vpop.f32.mrf.mxu0  ;;  %v1938_v47 = vpop.f32.mrf.mxu1 }
 0x58f   :  { %v1898_v30 = vadd.f32 %v1897_v13, %v1777_v40  ;;  %v1939_v38 = vadd.f32 %v1938_v47, %v1779_v46  ;;  %v3413_v46 = vpop.eup %3412 }
 0x590   :  { %v1899_v63 = vpop.f32.mrf.mxu0  ;;  %v1940_v27 = vpop.f32.mrf.mxu1 }
 0x591   :  { %v1949_v17 = vadd.f32 %v1898_v30, %v4328_v58  ;;  %v1951_v1 = vadd.f32 %v1939_v38, %v4332_v12  ;;  %v1900_v43 = vadd.f32 %v1899_v63, %v1778_v59  ;;  %v1941_v49 = vadd.f32 %v1940_v27, %v1780_v32  ;;  %v3415_v13 = vpop.eup %3414 }
 0x592   :  { %v1901_v7 = vpop.f32.mrf.mxu0  ;;  %v1942_v53 = vpop.f32.mrf.mxu1 }
 0x593   :  { %v3169_v55 = vmul.f32 -1.442695, %v1949_v17  ;;  %3418 = vtanh.f32 %v1951_v1  ;;  %v1950_v44 = vadd.f32 %v1900_v43, %v4335_v21  ;;  %v1952_v40 = vadd.f32 %v1941_v49, %v4338_v60  ;;  %v3417_v47 = vpop.eup %3416 }
 0x594   :  { %3420 = vrcp.f32 %v1974_v24  ;;  %v1902_v8 = vpop.f32.mrf.mxu0  ;;  %v1943_v28 = vpop.f32.mrf.mxu1  ;;  %v1991_v53 = vmul.f32 %v3415_v13, %v4665_v34  ;;  %v6204_v13 = vld [vmem:[#allocation128_spill] sm:$0xff] }
 0x595   :  { %3422 = vpow2.f32 %v3169_v55  ;;  %v3170_v16 = vmul.f32 -1.442695, %v1950_v44 }
 0x596   :  { %3424 = vtanh.f32 %v1952_v40 }
 0x597   :  { %3426 = vpow2.f32 %v3170_v16 }
 0x5a0   :  { %v3419_v59 = vpop.eup %3418 }
 0x5a1   :  { %v3421_v31 = vpop.eup %3420  ;;  %v1993_v30 = vmul.f32 %v3419_v59, %v3413_v46  ;;  %v6203_v46 = vld [vmem:[#allocation127_spill] sm:$0xff]  ;;  %v6206_v59 = vld [vmem:[#allocation130_spill] sm:$0xff] }
 0x5a2   :  { %v3423_v1 = vpop.eup %3422  ;;  %v1992_v24 = vmul.f32 %v3421_v31, %v4669_v0  ;;  %v6202_v0 = vld [vmem:[#allocation126_spill] sm:$0xff]  ;;  %v6207_v31 = vld [vmem:[#allocation131_spill] sm:$0xff] }
 0x5a3   :  { %v3425_v38 = vpop.eup %3424  ;;  %v1975_v43 = vadd.f32 1.0, %v3423_v1  ;;  %v4826_v32 = vadd.f32 %v1993_v30, %v1991_v53  ;;  %v6208_v53 = vld [vmem:[#allocation132_spill] sm:$0xff]  ;;  %v6209_v30 = vld [vmem:[#allocation133_spill] sm:$0xff]  ;;  %v6210_v1 = vld [vmem:[#allocation134_spill] sm:$0xff] }
 0x5a4   :  { %v3427_v49 = vpop.eup %3426  ;;  %v1994_v55 = vmul.f32 %v3425_v38, %v3417_v47  ;;  %v6205_v47 = vld [vmem:[#allocation129_spill] sm:$0xff]  ;;  %v6211_v38 = vld [vmem:[#allocation135_spill] sm:$0xff] }
 0x5a5   :  { %3428 = vrcp.f32 %v1975_v43  ;;  %v1976_v63 = vadd.f32 1.0, %v3427_v49  ;;  %v6212_v43 = vld [vmem:[#allocation136_spill] sm:$0xff]  ;;  %v6213_v49 = vld [vmem:[#allocation137_spill] sm:$0xff] }
 0x5a6   :  { %3430 = vtanh.f32 %v4826_v32  ;;  %v4830_v27 = vadd.f32 %v1994_v55, %v1992_v24  ;;  %v6214_v24 = vld [vmem:[#allocation138_spill] sm:$0xff]  ;;  %v6215_v55 = vld [vmem:[#allocation139_spill] sm:$0xff] }
 0x5a7   :  { %3432 = vrcp.f32 %v1976_v63  ;;  %v6216_v63 = vld [vmem:[#allocation140_spill] sm:$0xff] }
 0x5a8   :  { %3434 = vtanh.f32 %v4830_v27 }
 0x5b2   :  { %v3429_v34 = vpop.eup %3428 }
 0x5b3   :  { %v3431_v17 = vpop.eup %3430 }
 0x5b4   :  { %v3433_v7 = vpop.eup %3432  ;;  %v1999_v40 = vmul.f32 %v3431_v17, %v3429_v34  ;;  %v6217_v34 = vld [vmem:[#allocation141_spill] sm:$0xff]  ;;  %v6218_v17 = vld [vmem:[#allocation142_spill] sm:$0xff] }
 0x5b5   :  { %v3435_v44 = vpop.eup %3434 }
 0x5b6   :  { %v2000_v8 = vmul.f32 %v3435_v44, %v3433_v7  ;;  %v4833_v16 = vpack.c.bf16 %v1999_v40, %v1999_v40  ;;  %v6219_v7 = vld [vmem:[#allocation143_spill] sm:$0xff]  ;;  %v6220_v44 = vld [vmem:[#allocation144_spill] sm:$0xff]  ;;  %v6221_v40 = vld [vmem:[#allocation145_spill] sm:$0xff] }
 0x5b8   :  { %v2002_v28 = vpack.c.bf16 %v2000_v8, %v2000_v8  ;;  %v6222_v8 = vld [vmem:[#allocation146_spill] sm:$0xff] }
 0x5ba   :  { %2047 = vmatprep.mubr.bf16.mxu0 %v2002_v28  ;;  %2088 = vmatprep.mubr.bf16.mxu1 %v2002_v28 }
 0x5bb   :  { %2048 = vmatmul.mubr.bf16.vlgmr.msra.gmra.mxu0 %v4833_v16  ;;  %2089 = vmatmul.mubr.bf16.vlgmr.msra.gmra.mxu1 %v4833_v16 }
 0x5bc   :  { %2098 = vmatpush1.bf16.msra.mxu0 %v3966_v54  ;;  %2139 = vmatpush1.bf16.msra.mxu1 %v5884_v2 }
 0x5bd   :  { %2129 = vmatprep.mubr.bf16.mxu0 %v2002_v28  ;;  %2170 = vmatprep.mubr.bf16.mxu1 %v2002_v28  ;;  %v6223_v28 = vld [vmem:[#allocation147_spill] sm:$0xff] }
 0x5be   :  { %2099 = vmatprep.subr.bf16.mxu0 %v5885_v25  ;;  %2140 = vmatprep.subr.bf16.mxu1 %v5886_v62 }
 0x5c0   :  { %2100 = vmatpush1.bf16.msra.mxu0 %v5887_v52  ;;  %2141 = vmatpush1.bf16.msra.mxu1 %v5888_v61 }
 0x5c1   :  { %2101 = vmatprep.subr.bf16.mxu0 %v5889_v11  ;;  %2142 = vmatprep.subr.bf16.mxu1 %v5890_v48 }
 0x5c4   :  { %2102 = vmatpush1.bf16.msra.mxu0 %v5891_v50  ;;  %2143 = vmatpush1.bf16.msra.mxu1 %v5892_v56 }
 0x5c5   :  { %2103 = vmatprep.subr.bf16.mxu0 %v5893_v6  ;;  %2144 = vmatprep.subr.bf16.mxu1 %v5894_v57 }
 0x5c8   :  { %2104 = vmatpush1.bf16.msra.mxu0 %v5990_v3  ;;  %2145 = vmatpush1.bf16.msra.mxu1 %v5991_v19 }
 0x5c9   :  { %2105 = vmatprep.subr.bf16.mxu0 %v5992_v22  ;;  %2146 = vmatprep.subr.bf16.mxu1 %v5993_v35 }
 0x5cc   :  { %2106 = vmatpush1.bf16.msra.mxu0 %v5994_v37  ;;  %2147 = vmatpush1.bf16.msra.mxu1 %v5995_v41 }
 0x5cd   :  { %2107 = vmatprep.subr.bf16.mxu0 %v5996_v42  ;;  %2148 = vmatprep.subr.bf16.mxu1 %v5997_v18 }
 0x5d0   :  { %2108 = vmatpush1.bf16.msra.mxu0 %v5998_v29  ;;  %2149 = vmatpush1.bf16.msra.mxu1 %v5999_v36 }
 0x5d1   :  { %2109 = vmatprep.subr.bf16.mxu0 %v6000_v14  ;;  %2150 = vmatprep.subr.bf16.mxu1 %v6096_v10 }
 0x5d4   :  { %2110 = vmatpush1.bf16.msra.mxu0 %v6097_v9  ;;  %2151 = vmatpush1.bf16.msra.mxu1 %v6098_v51 }
 0x5d5   :  { %2111 = vmatprep.subr.bf16.mxu0 %v6004_v15  ;;  %2152 = vmatprep.subr.bf16.mxu1 %v6005_v20 }
 0x5d8   :  { %2112 = vmatpush1.bf16.msra.mxu0 %v6006_v23  ;;  %2153 = vmatpush1.bf16.msra.mxu1 %v6202_v0 }
 0x5d9   :  { %2113 = vmatprep.subr.bf16.mxu0 %v6203_v46  ;;  %2154 = vmatprep.subr.bf16.mxu1 %v6204_v13  ;;  %v6304_v46 = vld [vmem:[#allocation89_spill] sm:$0xff] }
 0x5dc   :  { %2114 = vmatpush2.bf16.msra.mxu0 %v6205_v47  ;;  %2155 = vmatpush2.bf16.msra.mxu1 %v6206_v59 }
 0x5dd   :  { %2115 = vmatprep.subr.bf16.mxu0 %v6207_v31  ;;  %2156 = vmatprep.subr.bf16.mxu1 %v6208_v53 }
 0x5e0   :  { %2116 = vmatpush2.bf16.msra.mxu0 %v6209_v30  ;;  %2157 = vmatpush2.bf16.msra.mxu1 %v6210_v1  ;;  %v2005_v1 = vpop.permute.xlu0 %2004 }
 0x5e1   :  { %2117 = vmatprep.subr.bf16.mxu0 %v6211_v38  ;;  %2158 = vmatprep.subr.bf16.mxu1 %v6212_v43 }
 0x5e4   :  { %2118 = vmatpush2.bf16.msra.mxu0 %v6213_v49  ;;  %2159 = vmatpush2.bf16.msra.mxu1 %v6214_v24  ;;  %v6224_v49 = vld [vmem:[#allocation148_spill] sm:$0xff]  ;;  %v6225_v24 = vld [vmem:[#allocation149_spill] sm:$0xff] }
 0x5e5   :  { %2119 = vmatprep.subr.bf16.mxu0 %v6215_v55  ;;  %2160 = vmatprep.subr.bf16.mxu1 %v6216_v63  ;;  %v6226_v55 = vld [vmem:[#allocation150_spill] sm:$0xff]  ;;  %v6227_v63 = vld [vmem:[#allocation151_spill] sm:$0xff] }
 0x5e8   :  { %2120 = vmatpush2.bf16.msra.mxu0 %v6217_v34  ;;  %2161 = vmatpush2.bf16.msra.mxu1 %v6218_v17  ;;  %v6228_v34 = vld [vmem:[#allocation152_spill] sm:$0xff]  ;;  %v6229_v17 = vld [vmem:[#allocation153_spill] sm:$0xff] }
 0x5e9   :  { %2121 = vmatprep.subr.bf16.mxu0 %v6219_v7  ;;  %2162 = vmatprep.subr.bf16.mxu1 %v6220_v44  ;;  %v6230_v7 = vld [vmem:[#allocation154_spill] sm:$0xff]  ;;  %v6231_v44 = vld [vmem:[#allocation155_spill] sm:$0xff] }
 0x5ec   :  { %2122 = vmatpush2.bf16.msra.mxu0 %v6221_v40  ;;  %2163 = vmatpush2.bf16.msra.mxu1 %v6222_v8  ;;  %v6232_v40 = vld [vmem:[#allocation156_spill] sm:$0xff]  ;;  %v6233_v8 = vld [vmem:[#allocation157_spill] sm:$0xff] }
 0x5ed   :  { %2123 = vmatprep.subr.bf16.mxu0 %v6223_v28  ;;  %2164 = vmatprep.subr.bf16.mxu1 %v6224_v49  ;;  %v6234_v28 = vld [vmem:[#allocation158_spill] sm:$0xff]  ;;  %v6235_v49 = vld [vmem:[#allocation19_spill] sm:$0xff] }
 0x5f0   :  { %2124 = vmatpush2.bf16.msra.mxu0 %v6225_v24  ;;  %2165 = vmatpush2.bf16.msra.mxu1 %v6226_v55  ;;  %v6236_v24 = vld [vmem:[#allocation21_spill] sm:$0xff] }
 0x5f1   :  { %2125 = vmatprep.subr.bf16.mxu0 %v6227_v63  ;;  %2166 = vmatprep.subr.bf16.mxu1 %v6228_v34  ;;  %v6237_v34 = vld [vmem:[#allocation20_spill] sm:$0xff]  ;;  %v6246_v63 = vld [vmem:[#allocation30_spill] sm:$0xff] }
 0x5f4   :  { %2126 = vmatpush2.bf16.msra.mxu0 %v6229_v17  ;;  %2167 = vmatpush2.bf16.msra.mxu1 %v6230_v7  ;;  %v6238_v17 = vld [vmem:[#allocation22_spill] sm:$0xff]  ;;  %v6239_v7 = vld [vmem:[#allocation23_spill] sm:$0xff] }
 0x5f5   :  { %2127 = vmatprep.subr.bf16.mxu0 %v6231_v44  ;;  %2168 = vmatprep.subr.bf16.mxu1 %v6232_v40  ;;  %v6240_v44 = vld [vmem:[#allocation24_spill] sm:$0xff]  ;;  %v6241_v40 = vld [vmem:[#allocation25_spill] sm:$0xff] }
 0x5f8   :  { %2128 = vmatpush2.bf16.msra.mxu0 %v6233_v8  ;;  %2169 = vmatpush2.bf16.msra.mxu1 %v6234_v28  ;;  %v6242_v8 = vld [vmem:[#allocation26_spill] sm:$0xff]  ;;  %v6243_v28 = vld [vmem:[#allocation27_spill] sm:$0xff] }
 0x5f9   :  { %2249 = vmatprep.subr.bf16.mxu0 %v6235_v49  ;;  %2290 = vmatprep.subr.bf16.mxu1 %v6236_v24  ;;  %v6244_v49 = vld [vmem:[#allocation28_spill] sm:$0xff]  ;;  %v6245_v24 = vld [vmem:[#allocation29_spill] sm:$0xff] }
 0x5fb   :  { %2130 = vmatmul.mubr.bf16.vlgmr.msra.gmra.mxu0 %v4833_v16  ;;  %2171 = vmatmul.mubr.bf16.vlgmr.msra.gmra.mxu1 %v4833_v16  ;;  %v6247_v16 = vld [vmem:[#allocation31_spill] sm:$0xff] }
 0x5fc   :  { %2250 = vmatpush1.bf16.msra.mxu0 %v6237_v34  ;;  %2291 = vmatpush1.bf16.msra.mxu1 %v6238_v17  ;;  %v6248_v34 = vld [vmem:[#allocation32_spill] sm:$0xff]  ;;  %v6249_v17 = vld [vmem:[#allocation33_spill] sm:$0xff] }
 0x5fd   :  { %2251 = vmatprep.subr.bf16.mxu0 %v6239_v7  ;;  %2292 = vmatprep.subr.bf16.mxu1 %v6240_v44  ;;  %v6250_v7 = vld [vmem:[#allocation34_spill] sm:$0xff]  ;;  %v6251_v44 = vld [vmem:[#allocation35_spill] sm:$0xff] }
 0x600   :  { %2252 = vmatpush1.bf16.msra.mxu0 %v6241_v40  ;;  %2293 = vmatpush1.bf16.msra.mxu1 %v6242_v8  ;;  %v6252_v40 = vld [vmem:[#allocation36_spill] sm:$0xff]  ;;  %v6253_v8 = vld [vmem:[#allocation37_spill] sm:$0xff] }
 0x601   :  { %2253 = vmatprep.subr.bf16.mxu0 %v6243_v28  ;;  %2294 = vmatprep.subr.bf16.mxu1 %v6244_v49  ;;  %v6254_v28 = vld [vmem:[#allocation38_spill] sm:$0xff]  ;;  %v6255_v49 = vld [vmem:[#allocation39_spill] sm:$0xff] }
 0x604   :  { %2254 = vmatpush1.bf16.msra.mxu0 %v6245_v24  ;;  %2295 = vmatpush1.bf16.msra.mxu1 %v6246_v63  ;;  %v6256_v24 = vld [vmem:[#allocation40_spill] sm:$0xff]  ;;  %v6257_v63 = vld [vmem:[#allocation41_spill] sm:$0xff] }
 0x605   :  { %2255 = vmatprep.subr.bf16.mxu0 %v6247_v16  ;;  %2296 = vmatprep.subr.bf16.mxu1 %v6248_v34  ;;  %v6258_v16 = vld [vmem:[#allocation42_spill] sm:$0xff]  ;;  %v6259_v34 = vld [vmem:[#allocation43_spill] sm:$0xff] }
 0x608   :  { %2256 = vmatpush1.bf16.msra.mxu0 %v6249_v17  ;;  %2297 = vmatpush1.bf16.msra.mxu1 %v6250_v7  ;;  %v6260_v17 = vld [vmem:[#allocation44_spill] sm:$0xff]  ;;  %v6261_v7 = vld [vmem:[#allocation45_spill] sm:$0xff] }
 0x609   :  { %2257 = vmatprep.subr.bf16.mxu0 %v6251_v44  ;;  %2298 = vmatprep.subr.bf16.mxu1 %v6252_v40  ;;  %v6262_v44 = vld [vmem:[#allocation46_spill] sm:$0xff]  ;;  %v6263_v40 = vld [vmem:[#allocation47_spill] sm:$0xff] }
 0x60c   :  { %2258 = vmatpush1.bf16.msra.mxu0 %v6253_v8  ;;  %2299 = vmatpush1.bf16.msra.mxu1 %v6254_v28  ;;  %v6264_v8 = vld [vmem:[#allocation48_spill] sm:$0xff]  ;;  %v6265_v28 = vld [vmem:[#allocation49_spill] sm:$0xff] }
 0x60d   :  { %2259 = vmatprep.subr.bf16.mxu0 %v6255_v49  ;;  %2300 = vmatprep.subr.bf16.mxu1 %v6256_v24  ;;  %v6266_v49 = vld [vmem:[#allocation50_spill] sm:$0xff]  ;;  %v6267_v24 = vld [vmem:[#allocation51_spill] sm:$0xff] }
 0x610   :  { %2260 = vmatpush1.bf16.msra.mxu0 %v6257_v63  ;;  %2301 = vmatpush1.bf16.msra.mxu1 %v6258_v16  ;;  %v6268_v63 = vld [vmem:[#allocation52_spill] sm:$0xff]  ;;  %v6269_v16 = vld [vmem:[#allocation53_spill] sm:$0xff] }
 0x611   :  { %2261 = vmatprep.subr.bf16.mxu0 %v6259_v34  ;;  %2302 = vmatprep.subr.bf16.mxu1 %v6260_v17  ;;  %v6270_v34 = vld [vmem:[#allocation54_spill] sm:$0xff]  ;;  %v6271_v17 = vld [vmem:[#allocation55_spill] sm:$0xff] }
 0x614   :  { %2262 = vmatpush1.bf16.msra.mxu0 %v6261_v7  ;;  %2303 = vmatpush1.bf16.msra.mxu1 %v6262_v44  ;;  %v6272_v7 = vld [vmem:[#allocation56_spill] sm:$0xff]  ;;  %v6273_v44 = vld [vmem:[#allocation57_spill] sm:$0xff] }
 0x615   :  { %2263 = vmatprep.subr.bf16.mxu0 %v6263_v40  ;;  %2304 = vmatprep.subr.bf16.mxu1 %v6264_v8  ;;  %v6274_v40 = vld [vmem:[#allocation58_spill] sm:$0xff]  ;;  %v6275_v8 = vld [vmem:[#allocation59_spill] sm:$0xff] }
 0x618   :  { %2264 = vmatpush1.bf16.msra.mxu0 %v6265_v28  ;;  %2305 = vmatpush1.bf16.msra.mxu1 %v6266_v49  ;;  %v6276_v28 = vld [vmem:[#allocation60_spill] sm:$0xff]  ;;  %v6277_v49 = vld [vmem:[#allocation61_spill] sm:$0xff] }
 0x619   :  { %2265 = vmatprep.subr.bf16.mxu0 %v6267_v24  ;;  %2306 = vmatprep.subr.bf16.mxu1 %v6268_v63  ;;  %v6278_v24 = vld [vmem:[#allocation62_spill] sm:$0xff]  ;;  %v6279_v63 = vld [vmem:[#allocation63_spill] sm:$0xff] }
 0x61c   :  { %2266 = vmatpush2.bf16.msra.mxu0 %v6269_v16  ;;  %2307 = vmatpush2.bf16.msra.mxu1 %v6270_v34  ;;  %v6280_v16 = vld [vmem:[#allocation64_spill] sm:$0xff]  ;;  %v6281_v34 = vld [vmem:[#allocation65_spill] sm:$0xff] }
 0x61d   :  { %2267 = vmatprep.subr.bf16.mxu0 %v6271_v17  ;;  %2308 = vmatprep.subr.bf16.mxu1 %v6272_v7  ;;  %v6282_v17 = vld [vmem:[#allocation66_spill] sm:$0xff]  ;;  %v6283_v7 = vld [vmem:[#allocation67_spill] sm:$0xff] }
 0x620   :  { %2268 = vmatpush2.bf16.msra.mxu0 %v6273_v44  ;;  %2309 = vmatpush2.bf16.msra.mxu1 %v6274_v40  ;;  %v6284_v44 = vld [vmem:[#allocation68_spill] sm:$0xff]  ;;  %v6285_v40 = vld [vmem:[#allocation69_spill] sm:$0xff] }
 0x621   :  { %2269 = vmatprep.subr.bf16.mxu0 %v6275_v8  ;;  %2310 = vmatprep.subr.bf16.mxu1 %v6276_v28  ;;  %v6286_v8 = vld [vmem:[#allocation70_spill] sm:$0xff]  ;;  %v6287_v28 = vld [vmem:[#allocation71_spill] sm:$0xff] }
 0x624   :  { %2270 = vmatpush2.bf16.msra.mxu0 %v6277_v49  ;;  %2311 = vmatpush2.bf16.msra.mxu1 %v6278_v24  ;;  %v6288_v49 = vld [vmem:[#allocation72_spill] sm:$0xff]  ;;  %v6289_v24 = vld [vmem:[#allocation73_spill] sm:$0xff] }
 0x625   :  { %2271 = vmatprep.subr.bf16.mxu0 %v6279_v63  ;;  %2312 = vmatprep.subr.bf16.mxu1 %v6280_v16  ;;  %v6290_v63 = vld [vmem:[#allocation74_spill] sm:$0xff]  ;;  %v6291_v16 = vld [vmem:[#allocation75_spill] sm:$0xff] }
 0x628   :  { %2272 = vmatpush2.bf16.msra.mxu0 %v6281_v34  ;;  %2313 = vmatpush2.bf16.msra.mxu1 %v6282_v17  ;;  %v6292_v34 = vld [vmem:[#allocation76_spill] sm:$0xff]  ;;  %v6293_v17 = vld [vmem:[#allocation77_spill] sm:$0xff] }
 0x629   :  { %2273 = vmatprep.subr.bf16.mxu0 %v6283_v7  ;;  %2314 = vmatprep.subr.bf16.mxu1 %v6284_v44  ;;  %v6294_v7 = vld [vmem:[#allocation78_spill] sm:$0xff]  ;;  %v6295_v44 = vld [vmem:[#allocation79_spill] sm:$0xff] }
 0x62c   :  { %2274 = vmatpush2.bf16.msra.mxu0 %v6285_v40  ;;  %2315 = vmatpush2.bf16.msra.mxu1 %v6286_v8  ;;  %v6296_v40 = vld [vmem:[#allocation80_spill] sm:$0xff]  ;;  %v6297_v8 = vld [vmem:[#allocation81_spill] sm:$0xff] }
 0x62d   :  { %2275 = vmatprep.subr.bf16.mxu0 %v6287_v28  ;;  %2316 = vmatprep.subr.bf16.mxu1 %v6288_v49  ;;  %v6298_v28 = vld [vmem:[#allocation83_spill] sm:$0xff]  ;;  %v6299_v49 = vld [vmem:[#allocation84_spill] sm:$0xff] }
 0x630   :  { %2276 = vmatpush2.bf16.msra.mxu0 %v6289_v24  ;;  %2317 = vmatpush2.bf16.msra.mxu1 %v6290_v63  ;;  %v6300_v24 = vld [vmem:[#allocation85_spill] sm:$0xff] }
 0x631   :  { %2277 = vmatprep.subr.bf16.mxu0 %v6291_v16  ;;  %2318 = vmatprep.subr.bf16.mxu1 %v6292_v34 }
 0x634   :  { %2278 = vmatpush2.bf16.msra.mxu0 %v6293_v17  ;;  %2319 = vmatpush2.bf16.msra.mxu1 %v6294_v7 }
 0x635   :  { %2279 = vmatprep.subr.bf16.mxu0 %v6295_v44  ;;  %2320 = vmatprep.subr.bf16.mxu1 %v6296_v40  ;;  %v6301_v44 = vld [vmem:[#allocation90_spill] sm:$0xff]  ;;  %v2009_v40 = vmul.f32 %v2005_v1, %v5980_v39 }
 0x636   :  { %v2007_v30 = vmul.f32 %v2005_v1, %v6301_v44 }
 0x638   :  { %2280 = vmatpush2.bf16.msra.mxu0 %v6297_v8  ;;  %2321 = vmatpush2.bf16.msra.mxu1 %v6298_v28  ;;  %v6302_v8 = vld [vmem:[#allocation91_spill] sm:$0xff] }
 0x639   :  { %2331 = vmatprep.subr.bf16.mxu0 %v6299_v49  ;;  %2372 = vmatprep.subr.bf16.mxu1 %v6300_v24  ;;  %v2008_v53 = vmul.f32 %v2005_v1, %v6302_v8  ;;  %v2010_v49 = vmul.f32 %v2005_v1, %v5982_v5 }
 0x67b   :  { %v2049_v63 = vpop.f32.mrf.mxu0  ;;  %v2090_v16 = vpop.f32.mrf.mxu1 }
 0x67c   :  { %v2050_v28 = vadd.f32 %v2049_v63, %v2007_v30  ;;  %v2091_v31 = vadd.f32 %v2090_v16, %v2009_v40  ;;  %v3717_v30 = vmov 6   ;;  %v6305_v63 = vld [vmem:[#allocation95_spill] sm:$0xff]  ;;  %v6307_v40 = vld [vmem:[#allocation98_spill] sm:$0xff] }
 0x67d   :  { %v2051_v55 = vpop.f32.mrf.mxu0  ;;  %v2092_v34 = vpop.f32.mrf.mxu1  ;;  %3273 = vset.pattern.permute.xlu1 %v3717_v30 }
 0x67e   :  { %v2052_v24 = vadd.f32 %v2051_v55, %v2008_v53  ;;  %v2179_v59 = vadd.f32 %v2050_v28, %v5983_v4  ;;  %v2181_v47 = vadd.f32 %v2091_v31, %v5984_v26  ;;  %2238 = vperm.xlu1 %3273, %v6305_v63   ;;  %v2013_v28 = vmul.f32 %v2005_v1, %v6307_v40 }
 0x67f   :  { %v2053_v43 = vpop.f32.mrf.mxu0  ;;  %v2094_v17 = vpop.f32.mrf.mxu1 }
 0x680   :  { %v2093_v43 = vadd.f32 %v2092_v34, %v2010_v49  ;;  %v6303_v17 = vld [vmem:[#allocation87_spill] sm:$0xff]  ;;  %v3173_v13 = vmul.f32 -1.442695, %v2181_v47 }
 0x681   :  { %v2054_v38 = vpop.f32.mrf.mxu0  ;;  %v2095_v7 = vpop.f32.mrf.mxu1 }
 0x682   :  { %v2180_v38 = vadd.f32 %v2052_v24, %v6303_v17  ;;  %v3171_v7 = vmul.f32 -1.442695, %v2179_v59  ;;  %v2182_v44 = vadd.f32 %v2093_v43, %v6304_v46  ;;  %v6306_v59 = vld [vmem:[#allocation96_spill] sm:$0xff] }
 0x683   :  { %v2011_v47 = vmul.f32 %v2005_v1, %v6306_v59 }
 0x684   :  { %v3172_v0 = vmul.f32 -1.442695, %v2180_v38  ;;  %3436 = vpow2.f32 %v3171_v7  ;;  %v3174_v8 = vmul.f32 -1.442695, %v2182_v44  ;;  %v2012_v44 = vmul.f32 %v2005_v1, %v5883_v45 }
 0x685   :  { %3438 = vpow2.f32 %v3173_v13 }
 0x686   :  { %3440 = vpow2.f32 %v3172_v0  ;;  %v2014_v0 = vmul.f32 %v2005_v1, %v4037_v33 }
 0x687   :  { %3442 = vpow2.f32 %v3174_v8 }
 0x691   :  { %v3437_v53 = vpop.eup %3436 }
 0x692   :  { %v3439_v55 = vpop.eup %3438  ;;  %v2205_v49 = vadd.f32 1.0, %v3437_v53 }
 0x693   :  { %v3441_v31 = vpop.eup %3440  ;;  %v2207_v34 = vadd.f32 1.0, %v3439_v55 }
 0x694   :  { %v3443_v24 = vpop.eup %3442  ;;  %v2206_v16 = vadd.f32 1.0, %v3441_v31  ;;  %3444 = vrcp.f32 %v2205_v49 }
 0x695   :  { %3446 = vrcp.f32 %v2207_v34  ;;  %v2208_v8 = vadd.f32 1.0, %v3443_v24 }
 0x696   :  { %3448 = vrcp.f32 %v2206_v16 }
 0x6bb   :  { %v2131_v43 = vpop.f32.mrf.mxu0  ;;  %v2172_v13 = vpop.f32.mrf.mxu1 }
 0x6bc   :  { %v2132_v38 = vadd.f32 %v2131_v43, %v2011_v47  ;;  %v2173_v7 = vadd.f32 %v2172_v13, %v2013_v28  ;;  %v3445_v28 = vpop.eup %3444 }
 0x6bd   :  { %v2133_v30 = vpop.f32.mrf.mxu0  ;;  %v2174_v53 = vpop.f32.mrf.mxu1 }
 0x6be   :  { %v2183_v55 = vadd.f32 %v2132_v38, %v4328_v58  ;;  %v2185_v59 = vadd.f32 %v2173_v7, %v4332_v12  ;;  %v2134_v63 = vadd.f32 %v2133_v30, %v2012_v44  ;;  %v2175_v40 = vadd.f32 %v2174_v53, %v2014_v0  ;;  %v3447_v43 = vpop.eup %3446 }
 0x6bf   :  { %v2135_v31 = vpop.f32.mrf.mxu0  ;;  %v2176_v46 = vpop.f32.mrf.mxu1 }
 0x6c0   :  { %v3175_v17 = vmul.f32 -1.442695, %v2183_v55  ;;  %3450 = vtanh.f32 %v2185_v59  ;;  %v2184_v49 = vadd.f32 %v2134_v63, %v4335_v21  ;;  %v2186_v47 = vadd.f32 %v2175_v40, %v4338_v60  ;;  %v3449_v13 = vpop.eup %3448 }
 0x6c1   :  { %3452 = vrcp.f32 %v2208_v8  ;;  %v2136_v1 = vpop.f32.mrf.mxu0  ;;  %v2177_v34 = vpop.f32.mrf.mxu1  ;;  %v2225_v46 = vmul.f32 %v3447_v43, %v4826_v32  ;;  %v6310_v43 = vld [vmem:[#allocation128_spill] sm:$0xff] }
 0x6c2   :  { %3454 = vpow2.f32 %v3175_v17  ;;  %v3176_v24 = vmul.f32 -1.442695, %v2184_v49 }
 0x6c3   :  { %3456 = vtanh.f32 %v2186_v47 }
 0x6c4   :  { %3458 = vpow2.f32 %v3176_v24 }
 0x6cd   :  { %v3451_v44 = vpop.eup %3450 }
 0x6ce   :  { %v3453_v16 = vpop.eup %3452  ;;  %v2227_v38 = vmul.f32 %v3451_v44, %v3445_v28  ;;  %v6309_v28 = vld [vmem:[#allocation127_spill] sm:$0xff]  ;;  %v6312_v44 = vld [vmem:[#allocation130_spill] sm:$0xff] }
 0x6cf   :  { %v3455_v59 = vpop.eup %3454  ;;  %v2226_v8 = vmul.f32 %v3453_v16, %v4830_v27  ;;  %v6308_v27 = vld [vmem:[#allocation126_spill] sm:$0xff]  ;;  %v6313_v16 = vld [vmem:[#allocation131_spill] sm:$0xff] }
 0x6d0   :  { %v3457_v7 = vpop.eup %3456  ;;  %v2209_v63 = vadd.f32 1.0, %v3455_v59  ;;  %v4985_v0 = vadd.f32 %v2227_v38, %v2225_v46  ;;  %v6314_v46 = vld [vmem:[#allocation132_spill] sm:$0xff]  ;;  %v6315_v38 = vld [vmem:[#allocation133_spill] sm:$0xff]  ;;  %v6316_v59 = vld [vmem:[#allocation134_spill] sm:$0xff] }
 0x6d1   :  { %v3459_v40 = vpop.eup %3458  ;;  %v2228_v17 = vmul.f32 %v3457_v7, %v3449_v13  ;;  %v6311_v13 = vld [vmem:[#allocation129_spill] sm:$0xff]  ;;  %v6317_v7 = vld [vmem:[#allocation135_spill] sm:$0xff] }
 0x6d2   :  { %3460 = vrcp.f32 %v2209_v63  ;;  %v2210_v30 = vadd.f32 1.0, %v3459_v40  ;;  %v6318_v63 = vld [vmem:[#allocation136_spill] sm:$0xff]  ;;  %v6319_v40 = vld [vmem:[#allocation137_spill] sm:$0xff] }
 0x6d3   :  { %3462 = vtanh.f32 %v4985_v0  ;;  %v4989_v53 = vadd.f32 %v2228_v17, %v2226_v8  ;;  %v6320_v8 = vld [vmem:[#allocation138_spill] sm:$0xff]  ;;  %v6321_v17 = vld [vmem:[#allocation139_spill] sm:$0xff] }
 0x6d4   :  { %3464 = vrcp.f32 %v2210_v30  ;;  %v6322_v30 = vld [vmem:[#allocation140_spill] sm:$0xff] }
 0x6d5   :  { %3466 = vtanh.f32 %v4989_v53 }
 0x6df   :  { %v3461_v32 = vpop.eup %3460 }
 0x6e0   :  { %v3463_v55 = vpop.eup %3462 }
 0x6e1   :  { %v3465_v31 = vpop.eup %3464  ;;  %v2233_v47 = vmul.f32 %v3463_v55, %v3461_v32  ;;  %v6323_v32 = vld [vmem:[#allocation141_spill] sm:$0xff]  ;;  %v6324_v55 = vld [vmem:[#allocation142_spill] sm:$0xff] }
 0x6e2   :  { %v3467_v49 = vpop.eup %3466 }
 0x6e3   :  { %v2234_v1 = vmul.f32 %v3467_v49, %v3465_v31  ;;  %v4992_v24 = vpack.c.bf16 %v2233_v47, %v2233_v47  ;;  %v6325_v31 = vld [vmem:[#allocation143_spill] sm:$0xff]  ;;  %v6326_v49 = vld [vmem:[#allocation144_spill] sm:$0xff]  ;;  %v6327_v47 = vld [vmem:[#allocation145_spill] sm:$0xff] }
 0x6e5   :  { %v2236_v34 = vpack.c.bf16 %v2234_v1, %v2234_v1  ;;  %v6328_v1 = vld [vmem:[#allocation146_spill] sm:$0xff] }
 0x6e7   :  { %2281 = vmatprep.mubr.bf16.mxu0 %v2236_v34  ;;  %2322 = vmatprep.mubr.bf16.mxu1 %v2236_v34 }
 0x6e8   :  { %2282 = vmatmul.mubr.bf16.vlgmr.msra.gmra.mxu0 %v4992_v24  ;;  %2323 = vmatmul.mubr.bf16.vlgmr.msra.gmra.mxu1 %v4992_v24 }
 0x6e9   :  { %2332 = vmatpush1.bf16.msra.mxu0 %v3966_v54  ;;  %2373 = vmatpush1.bf16.msra.mxu1 %v5884_v2 }
 0x6ea   :  { %2363 = vmatprep.mubr.bf16.mxu0 %v2236_v34  ;;  %2404 = vmatprep.mubr.bf16.mxu1 %v2236_v34  ;;  %v6329_v34 = vld [vmem:[#allocation147_spill] sm:$0xff] }
 0x6eb   :  { %2333 = vmatprep.subr.bf16.mxu0 %v5885_v25  ;;  %2374 = vmatprep.subr.bf16.mxu1 %v5886_v62 }
 0x6ed   :  { %2334 = vmatpush1.bf16.msra.mxu0 %v5887_v52  ;;  %2375 = vmatpush1.bf16.msra.mxu1 %v5888_v61 }
 0x6ee   :  { %2335 = vmatprep.subr.bf16.mxu0 %v5889_v11  ;;  %2376 = vmatprep.subr.bf16.mxu1 %v5890_v48 }
 0x6f1   :  { %2336 = vmatpush1.bf16.msra.mxu0 %v5891_v50  ;;  %2377 = vmatpush1.bf16.msra.mxu1 %v5892_v56 }
 0x6f2   :  { %2337 = vmatprep.subr.bf16.mxu0 %v5893_v6  ;;  %2378 = vmatprep.subr.bf16.mxu1 %v5894_v57 }
 0x6f5   :  { %2338 = vmatpush1.bf16.msra.mxu0 %v5990_v3  ;;  %2379 = vmatpush1.bf16.msra.mxu1 %v5991_v19 }
 0x6f6   :  { %2339 = vmatprep.subr.bf16.mxu0 %v5992_v22  ;;  %2380 = vmatprep.subr.bf16.mxu1 %v5993_v35 }
 0x6f9   :  { %2340 = vmatpush1.bf16.msra.mxu0 %v5994_v37  ;;  %2381 = vmatpush1.bf16.msra.mxu1 %v5995_v41 }
 0x6fa   :  { %2341 = vmatprep.subr.bf16.mxu0 %v5996_v42  ;;  %2382 = vmatprep.subr.bf16.mxu1 %v5997_v18 }
 0x6fd   :  { %2342 = vmatpush1.bf16.msra.mxu0 %v5998_v29  ;;  %2383 = vmatpush1.bf16.msra.mxu1 %v5999_v36 }
 0x6fe   :  { %2343 = vmatprep.subr.bf16.mxu0 %v6000_v14  ;;  %2384 = vmatprep.subr.bf16.mxu1 %v6096_v10 }
 0x701   :  { %2344 = vmatpush1.bf16.msra.mxu0 %v6097_v9  ;;  %2385 = vmatpush1.bf16.msra.mxu1 %v6098_v51 }
 0x702   :  { %2345 = vmatprep.subr.bf16.mxu0 %v6004_v15  ;;  %2386 = vmatprep.subr.bf16.mxu1 %v6005_v20 }
 0x705   :  { %2346 = vmatpush1.bf16.msra.mxu0 %v6006_v23  ;;  %2387 = vmatpush1.bf16.msra.mxu1 %v6308_v27 }
 0x706   :  { %2347 = vmatprep.subr.bf16.mxu0 %v6309_v28  ;;  %2388 = vmatprep.subr.bf16.mxu1 %v6310_v43  ;;  %v6410_v28 = vld [vmem:[#allocation89_spill] sm:$0xff] }
 0x709   :  { %2348 = vmatpush2.bf16.msra.mxu0 %v6311_v13  ;;  %2389 = vmatpush2.bf16.msra.mxu1 %v6312_v44 }
 0x70a   :  { %2349 = vmatprep.subr.bf16.mxu0 %v6313_v16  ;;  %2390 = vmatprep.subr.bf16.mxu1 %v6314_v46 }
 0x70d   :  { %2350 = vmatpush2.bf16.msra.mxu0 %v6315_v38  ;;  %2391 = vmatpush2.bf16.msra.mxu1 %v6316_v59  ;;  %v2239_v59 = vpop.permute.xlu1 %2238 }
 0x70e   :  { %2351 = vmatprep.subr.bf16.mxu0 %v6317_v7  ;;  %2392 = vmatprep.subr.bf16.mxu1 %v6318_v63 }
 0x711   :  { %2352 = vmatpush2.bf16.msra.mxu0 %v6319_v40  ;;  %2393 = vmatpush2.bf16.msra.mxu1 %v6320_v8  ;;  %v6330_v40 = vld [vmem:[#allocation148_spill] sm:$0xff]  ;;  %v6331_v8 = vld [vmem:[#allocation149_spill] sm:$0xff] }
 0x712   :  { %2353 = vmatprep.subr.bf16.mxu0 %v6321_v17  ;;  %2394 = vmatprep.subr.bf16.mxu1 %v6322_v30  ;;  %v6332_v17 = vld [vmem:[#allocation150_spill] sm:$0xff]  ;;  %v6333_v30 = vld [vmem:[#allocation151_spill] sm:$0xff] }
 0x715   :  { %2354 = vmatpush2.bf16.msra.mxu0 %v6323_v32  ;;  %2395 = vmatpush2.bf16.msra.mxu1 %v6324_v55  ;;  %v6334_v32 = vld [vmem:[#allocation152_spill] sm:$0xff]  ;;  %v6335_v55 = vld [vmem:[#allocation153_spill] sm:$0xff] }
 0x716   :  { %2355 = vmatprep.subr.bf16.mxu0 %v6325_v31  ;;  %2396 = vmatprep.subr.bf16.mxu1 %v6326_v49  ;;  %v6336_v31 = vld [vmem:[#allocation154_spill] sm:$0xff]  ;;  %v6337_v49 = vld [vmem:[#allocation155_spill] sm:$0xff] }
 0x719   :  { %2356 = vmatpush2.bf16.msra.mxu0 %v6327_v47  ;;  %2397 = vmatpush2.bf16.msra.mxu1 %v6328_v1  ;;  %v6338_v47 = vld [vmem:[#allocation156_spill] sm:$0xff]  ;;  %v6339_v1 = vld [vmem:[#allocation157_spill] sm:$0xff] }
 0x71a   :  { %2357 = vmatprep.subr.bf16.mxu0 %v6329_v34  ;;  %2398 = vmatprep.subr.bf16.mxu1 %v6330_v40  ;;  %v6340_v34 = vld [vmem:[#allocation158_spill] sm:$0xff]  ;;  %v6341_v40 = vld [vmem:[#allocation19_spill] sm:$0xff] }
 0x71d   :  { %2358 = vmatpush2.bf16.msra.mxu0 %v6331_v8  ;;  %2399 = vmatpush2.bf16.msra.mxu1 %v6332_v17  ;;  %v6342_v8 = vld [vmem:[#allocation21_spill] sm:$0xff] }
 0x71e   :  { %2359 = vmatprep.subr.bf16.mxu0 %v6333_v30  ;;  %2400 = vmatprep.subr.bf16.mxu1 %v6334_v32  ;;  %v6343_v32 = vld [vmem:[#allocation20_spill] sm:$0xff]  ;;  %v6352_v30 = vld [vmem:[#allocation30_spill] sm:$0xff] }
 0x721   :  { %2360 = vmatpush2.bf16.msra.mxu0 %v6335_v55  ;;  %2401 = vmatpush2.bf16.msra.mxu1 %v6336_v31  ;;  %v6344_v55 = vld [vmem:[#allocation22_spill] sm:$0xff]  ;;  %v6345_v31 = vld [vmem:[#allocation23_spill] sm:$0xff] }
 0x722   :  { %2361 = vmatprep.subr.bf16.mxu0 %v6337_v49  ;;  %2402 = vmatprep.subr.bf16.mxu1 %v6338_v47  ;;  %v6346_v49 = vld [vmem:[#allocation24_spill] sm:$0xff]  ;;  %v6347_v47 = vld [vmem:[#allocation25_spill] sm:$0xff] }
 0x725   :  { %2362 = vmatpush2.bf16.msra.mxu0 %v6339_v1  ;;  %2403 = vmatpush2.bf16.msra.mxu1 %v6340_v34  ;;  %v6348_v1 = vld [vmem:[#allocation26_spill] sm:$0xff]  ;;  %v6349_v34 = vld [vmem:[#allocation27_spill] sm:$0xff] }
 0x726   :  { %2483 = vmatprep.subr.bf16.mxu0 %v6341_v40  ;;  %2524 = vmatprep.subr.bf16.mxu1 %v6342_v8  ;;  %v6350_v40 = vld [vmem:[#allocation28_spill] sm:$0xff]  ;;  %v6351_v8 = vld [vmem:[#allocation29_spill] sm:$0xff] }
 0x728   :  { %2364 = vmatmul.mubr.bf16.vlgmr.msra.gmra.mxu0 %v4992_v24  ;;  %2405 = vmatmul.mubr.bf16.vlgmr.msra.gmra.mxu1 %v4992_v24  ;;  %v6353_v24 = vld [vmem:[#allocation31_spill] sm:$0xff] }
 0x729   :  { %2484 = vmatpush1.bf16.msra.mxu0 %v6343_v32  ;;  %2525 = vmatpush1.bf16.msra.mxu1 %v6344_v55  ;;  %v6354_v32 = vld [vmem:[#allocation32_spill] sm:$0xff]  ;;  %v6355_v55 = vld [vmem:[#allocation33_spill] sm:$0xff] }
 0x72a   :  { %2485 = vmatprep.subr.bf16.mxu0 %v6345_v31  ;;  %2526 = vmatprep.subr.bf16.mxu1 %v6346_v49  ;;  %v6356_v31 = vld [vmem:[#allocation34_spill] sm:$0xff]  ;;  %v6357_v49 = vld [vmem:[#allocation35_spill] sm:$0xff] }
 0x72d   :  { %2486 = vmatpush1.bf16.msra.mxu0 %v6347_v47  ;;  %2527 = vmatpush1.bf16.msra.mxu1 %v6348_v1  ;;  %v6358_v47 = vld [vmem:[#allocation36_spill] sm:$0xff]  ;;  %v6359_v1 = vld [vmem:[#allocation37_spill] sm:$0xff] }
 0x72e   :  { %2487 = vmatprep.subr.bf16.mxu0 %v6349_v34  ;;  %2528 = vmatprep.subr.bf16.mxu1 %v6350_v40  ;;  %v6360_v34 = vld [vmem:[#allocation38_spill] sm:$0xff]  ;;  %v6361_v40 = vld [vmem:[#allocation39_spill] sm:$0xff] }
 0x731   :  { %2488 = vmatpush1.bf16.msra.mxu0 %v6351_v8  ;;  %2529 = vmatpush1.bf16.msra.mxu1 %v6352_v30  ;;  %v6362_v8 = vld [vmem:[#allocation40_spill] sm:$0xff]  ;;  %v6363_v30 = vld [vmem:[#allocation41_spill] sm:$0xff] }
 0x732   :  { %2489 = vmatprep.subr.bf16.mxu0 %v6353_v24  ;;  %2530 = vmatprep.subr.bf16.mxu1 %v6354_v32  ;;  %v6364_v24 = vld [vmem:[#allocation42_spill] sm:$0xff]  ;;  %v6365_v32 = vld [vmem:[#allocation43_spill] sm:$0xff] }
 0x735   :  { %2490 = vmatpush1.bf16.msra.mxu0 %v6355_v55  ;;  %2531 = vmatpush1.bf16.msra.mxu1 %v6356_v31  ;;  %v6366_v55 = vld [vmem:[#allocation44_spill] sm:$0xff]  ;;  %v6367_v31 = vld [vmem:[#allocation45_spill] sm:$0xff] }
 0x736   :  { %2491 = vmatprep.subr.bf16.mxu0 %v6357_v49  ;;  %2532 = vmatprep.subr.bf16.mxu1 %v6358_v47  ;;  %v6368_v49 = vld [vmem:[#allocation46_spill] sm:$0xff]  ;;  %v6369_v47 = vld [vmem:[#allocation47_spill] sm:$0xff] }
 0x739   :  { %2492 = vmatpush1.bf16.msra.mxu0 %v6359_v1  ;;  %2533 = vmatpush1.bf16.msra.mxu1 %v6360_v34  ;;  %v6370_v1 = vld [vmem:[#allocation48_spill] sm:$0xff]  ;;  %v6371_v34 = vld [vmem:[#allocation49_spill] sm:$0xff] }
 0x73a   :  { %2493 = vmatprep.subr.bf16.mxu0 %v6361_v40  ;;  %2534 = vmatprep.subr.bf16.mxu1 %v6362_v8  ;;  %v6372_v40 = vld [vmem:[#allocation50_spill] sm:$0xff]  ;;  %v6373_v8 = vld [vmem:[#allocation51_spill] sm:$0xff] }
 0x73d   :  { %2494 = vmatpush1.bf16.msra.mxu0 %v6363_v30  ;;  %2535 = vmatpush1.bf16.msra.mxu1 %v6364_v24  ;;  %v6374_v30 = vld [vmem:[#allocation52_spill] sm:$0xff]  ;;  %v6375_v24 = vld [vmem:[#allocation53_spill] sm:$0xff] }
 0x73e   :  { %2495 = vmatprep.subr.bf16.mxu0 %v6365_v32  ;;  %2536 = vmatprep.subr.bf16.mxu1 %v6366_v55  ;;  %v6376_v32 = vld [vmem:[#allocation54_spill] sm:$0xff]  ;;  %v6377_v55 = vld [vmem:[#allocation55_spill] sm:$0xff] }
 0x741   :  { %2496 = vmatpush1.bf16.msra.mxu0 %v6367_v31  ;;  %2537 = vmatpush1.bf16.msra.mxu1 %v6368_v49  ;;  %v6378_v31 = vld [vmem:[#allocation56_spill] sm:$0xff]  ;;  %v6379_v49 = vld [vmem:[#allocation57_spill] sm:$0xff] }
 0x742   :  { %2497 = vmatprep.subr.bf16.mxu0 %v6369_v47  ;;  %2538 = vmatprep.subr.bf16.mxu1 %v6370_v1  ;;  %v6380_v47 = vld [vmem:[#allocation58_spill] sm:$0xff]  ;;  %v6381_v1 = vld [vmem:[#allocation59_spill] sm:$0xff] }
 0x745   :  { %2498 = vmatpush1.bf16.msra.mxu0 %v6371_v34  ;;  %2539 = vmatpush1.bf16.msra.mxu1 %v6372_v40  ;;  %v6382_v34 = vld [vmem:[#allocation60_spill] sm:$0xff]  ;;  %v6383_v40 = vld [vmem:[#allocation61_spill] sm:$0xff] }
 0x746   :  { %2499 = vmatprep.subr.bf16.mxu0 %v6373_v8  ;;  %2540 = vmatprep.subr.bf16.mxu1 %v6374_v30  ;;  %v6384_v8 = vld [vmem:[#allocation62_spill] sm:$0xff]  ;;  %v6385_v30 = vld [vmem:[#allocation63_spill] sm:$0xff] }
 0x749   :  { %2500 = vmatpush2.bf16.msra.mxu0 %v6375_v24  ;;  %2541 = vmatpush2.bf16.msra.mxu1 %v6376_v32  ;;  %v6386_v24 = vld [vmem:[#allocation64_spill] sm:$0xff]  ;;  %v6387_v32 = vld [vmem:[#allocation65_spill] sm:$0xff] }
 0x74a   :  { %2501 = vmatprep.subr.bf16.mxu0 %v6377_v55  ;;  %2542 = vmatprep.subr.bf16.mxu1 %v6378_v31  ;;  %v6388_v55 = vld [vmem:[#allocation66_spill] sm:$0xff]  ;;  %v6389_v31 = vld [vmem:[#allocation67_spill] sm:$0xff] }
 0x74d   :  { %2502 = vmatpush2.bf16.msra.mxu0 %v6379_v49  ;;  %2543 = vmatpush2.bf16.msra.mxu1 %v6380_v47  ;;  %v6390_v49 = vld [vmem:[#allocation68_spill] sm:$0xff]  ;;  %v6391_v47 = vld [vmem:[#allocation69_spill] sm:$0xff] }
 0x74e   :  { %2503 = vmatprep.subr.bf16.mxu0 %v6381_v1  ;;  %2544 = vmatprep.subr.bf16.mxu1 %v6382_v34  ;;  %v6392_v1 = vld [vmem:[#allocation70_spill] sm:$0xff]  ;;  %v6393_v34 = vld [vmem:[#allocation71_spill] sm:$0xff] }
 0x751   :  { %2504 = vmatpush2.bf16.msra.mxu0 %v6383_v40  ;;  %2545 = vmatpush2.bf16.msra.mxu1 %v6384_v8  ;;  %v6394_v40 = vld [vmem:[#allocation72_spill] sm:$0xff]  ;;  %v6395_v8 = vld [vmem:[#allocation73_spill] sm:$0xff] }
 0x752   :  { %2505 = vmatprep.subr.bf16.mxu0 %v6385_v30  ;;  %2546 = vmatprep.subr.bf16.mxu1 %v6386_v24  ;;  %v6396_v30 = vld [vmem:[#allocation74_spill] sm:$0xff]  ;;  %v6397_v24 = vld [vmem:[#allocation75_spill] sm:$0xff] }
 0x755   :  { %2506 = vmatpush2.bf16.msra.mxu0 %v6387_v32  ;;  %2547 = vmatpush2.bf16.msra.mxu1 %v6388_v55  ;;  %v6398_v32 = vld [vmem:[#allocation76_spill] sm:$0xff]  ;;  %v6399_v55 = vld [vmem:[#allocation77_spill] sm:$0xff] }
 0x756   :  { %2507 = vmatprep.subr.bf16.mxu0 %v6389_v31  ;;  %2548 = vmatprep.subr.bf16.mxu1 %v6390_v49  ;;  %v6400_v31 = vld [vmem:[#allocation78_spill] sm:$0xff]  ;;  %v6401_v49 = vld [vmem:[#allocation79_spill] sm:$0xff] }
 0x759   :  { %2508 = vmatpush2.bf16.msra.mxu0 %v6391_v47  ;;  %2549 = vmatpush2.bf16.msra.mxu1 %v6392_v1  ;;  %v6402_v47 = vld [vmem:[#allocation80_spill] sm:$0xff]  ;;  %v6403_v1 = vld [vmem:[#allocation81_spill] sm:$0xff] }
 0x75a   :  { %2509 = vmatprep.subr.bf16.mxu0 %v6393_v34  ;;  %2550 = vmatprep.subr.bf16.mxu1 %v6394_v40  ;;  %v6404_v34 = vld [vmem:[#allocation83_spill] sm:$0xff]  ;;  %v6405_v40 = vld [vmem:[#allocation84_spill] sm:$0xff] }
 0x75d   :  { %2510 = vmatpush2.bf16.msra.mxu0 %v6395_v8  ;;  %2551 = vmatpush2.bf16.msra.mxu1 %v6396_v30  ;;  %v6406_v8 = vld [vmem:[#allocation85_spill] sm:$0xff] }
 0x75e   :  { %2511 = vmatprep.subr.bf16.mxu0 %v6397_v24  ;;  %2552 = vmatprep.subr.bf16.mxu1 %v6398_v32 }
 0x761   :  { %2512 = vmatpush2.bf16.msra.mxu0 %v6399_v55  ;;  %2553 = vmatpush2.bf16.msra.mxu1 %v6400_v31 }
 0x762   :  { %2513 = vmatprep.subr.bf16.mxu0 %v6401_v49  ;;  %2554 = vmatprep.subr.bf16.mxu1 %v6402_v47  ;;  %v6407_v49 = vld [vmem:[#allocation90_spill] sm:$0xff]  ;;  %v2243_v47 = vmul.f32 %v2239_v59, %v5980_v39 }
 0x763   :  { %v2241_v38 = vmul.f32 %v2239_v59, %v6407_v49 }
 0x765   :  { %2514 = vmatpush2.bf16.msra.mxu0 %v6403_v1  ;;  %2555 = vmatpush2.bf16.msra.mxu1 %v6404_v34  ;;  %v6408_v1 = vld [vmem:[#allocation91_spill] sm:$0xff] }
 0x766   :  { %2565 = vmatprep.subr.bf16.mxu0 %v6405_v40  ;;  %2606 = vmatprep.subr.bf16.mxu1 %v6406_v8  ;;  %v2242_v46 = vmul.f32 %v2239_v59, %v6408_v1  ;;  %v2244_v40 = vmul.f32 %v2239_v59, %v5982_v5 }
 0x7a8   :  { %v2283_v30 = vpop.f32.mrf.mxu0  ;;  %v2324_v24 = vpop.f32.mrf.mxu1 }
 0x7a9   :  { %v2284_v34 = vadd.f32 %v2283_v30, %v2241_v38  ;;  %v2325_v16 = vadd.f32 %v2324_v24, %v2243_v47  ;;  %v3718_v38 = vmov 7   ;;  %v6411_v30 = vld [vmem:[#allocation95_spill] sm:$0xff]  ;;  %v6413_v47 = vld [vmem:[#allocation98_spill] sm:$0xff] }
 0x7aa   :  { %v2285_v17 = vpop.f32.mrf.mxu0  ;;  %v2326_v32 = vpop.f32.mrf.mxu1  ;;  %3274 = vset.pattern.permute.xlu1 %v3718_v38 }
 0x7ab   :  { %v2286_v8 = vadd.f32 %v2285_v17, %v2242_v46  ;;  %v2413_v44 = vadd.f32 %v2284_v34, %v5983_v4  ;;  %v2415_v13 = vadd.f32 %v2325_v16, %v5984_v26  ;;  %2472 = vperm.xlu1 %3274, %v6411_v30   ;;  %v2247_v34 = vmul.f32 %v2239_v59, %v6413_v47 }
 0x7ac   :  { %v2287_v63 = vpop.f32.mrf.mxu0  ;;  %v2328_v55 = vpop.f32.mrf.mxu1 }
 0x7ad   :  { %v2327_v63 = vadd.f32 %v2326_v32, %v2244_v40  ;;  %v6409_v55 = vld [vmem:[#allocation87_spill] sm:$0xff]  ;;  %v3179_v43 = vmul.f32 -1.442695, %v2415_v13 }
 0x7ae   :  { %v2288_v7 = vpop.f32.mrf.mxu0  ;;  %v2329_v31 = vpop.f32.mrf.mxu1 }
 0x7af   :  { %v2414_v7 = vadd.f32 %v2286_v8, %v6409_v55  ;;  %v3177_v31 = vmul.f32 -1.442695, %v2413_v44  ;;  %v2416_v49 = vadd.f32 %v2327_v63, %v6410_v28  ;;  %v6412_v44 = vld [vmem:[#allocation96_spill] sm:$0xff] }
 0x7b0   :  { %v2245_v13 = vmul.f32 %v2239_v59, %v6412_v44 }
 0x7b1   :  { %v3178_v27 = vmul.f32 -1.442695, %v2414_v7  ;;  %3468 = vpow2.f32 %v3177_v31  ;;  %v3180_v1 = vmul.f32 -1.442695, %v2416_v49  ;;  %v2246_v49 = vmul.f32 %v2239_v59, %v5883_v45 }
 0x7b2   :  { %3470 = vpow2.f32 %v3179_v43 }
 0x7b3   :  { %3472 = vpow2.f32 %v3178_v27  ;;  %v2248_v27 = vmul.f32 %v2239_v59, %v4037_v33 }
 0x7b4   :  { %3474 = vpow2.f32 %v3180_v1 }
 0x7be   :  { %v3469_v46 = vpop.eup %3468 }
 0x7bf   :  { %v3471_v17 = vpop.eup %3470  ;;  %v2439_v40 = vadd.f32 1.0, %v3469_v46 }
 0x7c0   :  { %v3473_v16 = vpop.eup %3472  ;;  %v2441_v32 = vadd.f32 1.0, %v3471_v17 }
 0x7c1   :  { %v3475_v8 = vpop.eup %3474  ;;  %v2440_v24 = vadd.f32 1.0, %v3473_v16  ;;  %3476 = vrcp.f32 %v2439_v40 }
 0x7c2   :  { %3478 = vrcp.f32 %v2441_v32  ;;  %v2442_v1 = vadd.f32 1.0, %v3475_v8 }
 0x7c3   :  { %3480 = vrcp.f32 %v2440_v24 }
 0x7e8   :  { %v2365_v63 = vpop.f32.mrf.mxu0  ;;  %v2406_v43 = vpop.f32.mrf.mxu1 }
 0x7e9   :  { %v2366_v7 = vadd.f32 %v2365_v63, %v2245_v13  ;;  %v2407_v31 = vadd.f32 %v2406_v43, %v2247_v34  ;;  %v3477_v34 = vpop.eup %3476 }
 0x7ea   :  { %v2367_v38 = vpop.f32.mrf.mxu0  ;;  %v2408_v30 = vpop.f32.mrf.mxu1 }
 0x7eb   :  { %v2417_v46 = vadd.f32 %v2366_v7, %v4328_v58  ;;  %v2419_v17 = vadd.f32 %v2407_v31, %v4332_v12  ;;  %v2368_v44 = vadd.f32 %v2367_v38, %v2246_v49  ;;  %v2409_v47 = vadd.f32 %v2408_v30, %v2248_v27  ;;  %v3479_v63 = vpop.eup %3478 }
 0x7ec   :  { %v2369_v16 = vpop.f32.mrf.mxu0  ;;  %v2410_v28 = vpop.f32.mrf.mxu1 }
 0x7ed   :  { %v3181_v55 = vmul.f32 -1.442695, %v2417_v46  ;;  %3482 = vtanh.f32 %v2419_v17  ;;  %v2418_v40 = vadd.f32 %v2368_v44, %v4335_v21  ;;  %v2420_v13 = vadd.f32 %v2409_v47, %v4338_v60  ;;  %v3481_v43 = vpop.eup %3480 }
 0x7ee   :  { %3484 = vrcp.f32 %v2442_v1  ;;  %v2370_v59 = vpop.f32.mrf.mxu0  ;;  %v2411_v32 = vpop.f32.mrf.mxu1  ;;  %v2459_v28 = vmul.f32 %v3479_v63, %v4985_v0  ;;  %v6416_v63 = vld [vmem:[#allocation128_spill] sm:$0xff] }
 0x7ef   :  { %3486 = vpow2.f32 %v3181_v55  ;;  %v3182_v8 = vmul.f32 -1.442695, %v2418_v40 }
 0x7f0   :  { %3488 = vtanh.f32 %v2420_v13 }
 0x7f1   :  { %3490 = vpow2.f32 %v3182_v8 }
 0x7fa   :  { %v3483_v49 = vpop.eup %3482 }
 0x7fb   :  { %v3485_v24 = vpop.eup %3484  ;;  %v2461_v7 = vmul.f32 %v3483_v49, %v3477_v34  ;;  %v6415_v34 = vld [vmem:[#allocation127_spill] sm:$0xff]  ;;  %v6418_v49 = vld [vmem:[#allocation130_spill] sm:$0xff] }
 0x7fc   :  { %v3487_v31 = vpop.eup %3486  ;;  %v2460_v1 = vmul.f32 %v3485_v24, %v4989_v53  ;;  %v6414_v53 = vld [vmem:[#allocation126_spill] sm:$0xff]  ;;  %v6419_v24 = vld [vmem:[#allocation131_spill] sm:$0xff] }
 0x7fd   :  { %v3489_v27 = vpop.eup %3488  ;;  %v2443_v44 = vadd.f32 1.0, %v3487_v31  ;;  %v5144_v38 = vadd.f32 %v2461_v7, %v2459_v28  ;;  %v6420_v28 = vld [vmem:[#allocation132_spill] sm:$0xff]  ;;  %v6421_v7 = vld [vmem:[#allocation133_spill] sm:$0xff]  ;;  %v6422_v31 = vld [vmem:[#allocation134_spill] sm:$0xff] }
 0x7fe   :  { %v3491_v47 = vpop.eup %3490  ;;  %v2462_v55 = vmul.f32 %v3489_v27, %v3481_v43  ;;  %v6417_v43 = vld [vmem:[#allocation129_spill] sm:$0xff]  ;;  %v6423_v27 = vld [vmem:[#allocation135_spill] sm:$0xff] }
 0x7ff   :  { %3492 = vrcp.f32 %v2443_v44  ;;  %v2444_v30 = vadd.f32 1.0, %v3491_v47  ;;  %v6424_v44 = vld [vmem:[#allocation136_spill] sm:$0xff]  ;;  %v6425_v47 = vld [vmem:[#allocation137_spill] sm:$0xff] }
 0x800   :  { %3494 = vtanh.f32 %v5144_v38  ;;  %v5148_v46 = vadd.f32 %v2462_v55, %v2460_v1  ;;  %v6426_v1 = vld [vmem:[#allocation138_spill] sm:$0xff]  ;;  %v6427_v55 = vld [vmem:[#allocation139_spill] sm:$0xff] }
 0x801   :  { %3496 = vrcp.f32 %v2444_v30  ;;  %v6428_v30 = vld [vmem:[#allocation140_spill] sm:$0xff] }
 0x802   :  { %3498 = vtanh.f32 %v5148_v46 }
 0x80c   :  { %v3493_v0 = vpop.eup %3492 }
 0x80d   :  { %v3495_v17 = vpop.eup %3494 }
 0x80e   :  { %v3497_v16 = vpop.eup %3496  ;;  %v2467_v13 = vmul.f32 %v3495_v17, %v3493_v0  ;;  %v6429_v0 = vld [vmem:[#allocation141_spill] sm:$0xff]  ;;  %v6430_v17 = vld [vmem:[#allocation142_spill] sm:$0xff] }
 0x80f   :  { %v3499_v40 = vpop.eup %3498 }
 0x810   :  { %v2468_v59 = vmul.f32 %v3499_v40, %v3497_v16  ;;  %v5151_v8 = vpack.c.bf16 %v2467_v13, %v2467_v13  ;;  %v6431_v16 = vld [vmem:[#allocation143_spill] sm:$0xff]  ;;  %v6432_v40 = vld [vmem:[#allocation144_spill] sm:$0xff]  ;;  %v6433_v13 = vld [vmem:[#allocation145_spill] sm:$0xff] }
 0x812   :  { %v2470_v32 = vpack.c.bf16 %v2468_v59, %v2468_v59  ;;  %v6434_v59 = vld [vmem:[#allocation146_spill] sm:$0xff] }
 0x814   :  { %2515 = vmatprep.mubr.bf16.mxu0 %v2470_v32  ;;  %2556 = vmatprep.mubr.bf16.mxu1 %v2470_v32 }
 0x815   :  { %2516 = vmatmul.mubr.bf16.vlgmr.msra.gmra.mxu0 %v5151_v8  ;;  %2557 = vmatmul.mubr.bf16.vlgmr.msra.gmra.mxu1 %v5151_v8 }
 0x816   :  { %2566 = vmatpush1.bf16.msra.mxu0 %v3966_v54  ;;  %2607 = vmatpush1.bf16.msra.mxu1 %v5884_v2 }
 0x817   :  { %2597 = vmatprep.mubr.bf16.mxu0 %v2470_v32  ;;  %2638 = vmatprep.mubr.bf16.mxu1 %v2470_v32  ;;  %v6435_v32 = vld [vmem:[#allocation147_spill] sm:$0xff] }
 0x818   :  { %2567 = vmatprep.subr.bf16.mxu0 %v5885_v25  ;;  %2608 = vmatprep.subr.bf16.mxu1 %v5886_v62 }
 0x81a   :  { %2568 = vmatpush1.bf16.msra.mxu0 %v5887_v52  ;;  %2609 = vmatpush1.bf16.msra.mxu1 %v5888_v61 }
 0x81b   :  { %2569 = vmatprep.subr.bf16.mxu0 %v5889_v11  ;;  %2610 = vmatprep.subr.bf16.mxu1 %v5890_v48 }
 0x81e   :  { %2570 = vmatpush1.bf16.msra.mxu0 %v5891_v50  ;;  %2611 = vmatpush1.bf16.msra.mxu1 %v5892_v56 }
 0x81f   :  { %2571 = vmatprep.subr.bf16.mxu0 %v5893_v6  ;;  %2612 = vmatprep.subr.bf16.mxu1 %v5894_v57 }
 0x822   :  { %2572 = vmatpush1.bf16.msra.mxu0 %v5990_v3  ;;  %2613 = vmatpush1.bf16.msra.mxu1 %v5991_v19 }
 0x823   :  { %2573 = vmatprep.subr.bf16.mxu0 %v5992_v22  ;;  %2614 = vmatprep.subr.bf16.mxu1 %v5993_v35 }
 0x826   :  { %2574 = vmatpush1.bf16.msra.mxu0 %v5994_v37  ;;  %2615 = vmatpush1.bf16.msra.mxu1 %v5995_v41 }
 0x827   :  { %2575 = vmatprep.subr.bf16.mxu0 %v5996_v42  ;;  %2616 = vmatprep.subr.bf16.mxu1 %v5997_v18 }
 0x82a   :  { %2576 = vmatpush1.bf16.msra.mxu0 %v5998_v29  ;;  %2617 = vmatpush1.bf16.msra.mxu1 %v5999_v36 }
 0x82b   :  { %2577 = vmatprep.subr.bf16.mxu0 %v6000_v14  ;;  %2618 = vmatprep.subr.bf16.mxu1 %v6096_v10 }
 0x82e   :  { %2578 = vmatpush1.bf16.msra.mxu0 %v6097_v9  ;;  %2619 = vmatpush1.bf16.msra.mxu1 %v6098_v51 }
 0x82f   :  { %2579 = vmatprep.subr.bf16.mxu0 %v6004_v15  ;;  %2620 = vmatprep.subr.bf16.mxu1 %v6005_v20 }
 0x832   :  { %2580 = vmatpush1.bf16.msra.mxu0 %v6006_v23  ;;  %2621 = vmatpush1.bf16.msra.mxu1 %v6414_v53 }
 0x833   :  { %2581 = vmatprep.subr.bf16.mxu0 %v6415_v34  ;;  %2622 = vmatprep.subr.bf16.mxu1 %v6416_v63  ;;  %v6516_v34 = vld [vmem:[#allocation89_spill] sm:$0xff] }
 0x836   :  { %2582 = vmatpush2.bf16.msra.mxu0 %v6417_v43  ;;  %2623 = vmatpush2.bf16.msra.mxu1 %v6418_v49 }
 0x837   :  { %2583 = vmatprep.subr.bf16.mxu0 %v6419_v24  ;;  %2624 = vmatprep.subr.bf16.mxu1 %v6420_v28 }
 0x83a   :  { %2584 = vmatpush2.bf16.msra.mxu0 %v6421_v7  ;;  %2625 = vmatpush2.bf16.msra.mxu1 %v6422_v31  ;;  %v2473_v31 = vpop.permute.xlu1 %2472 }
 0x83b   :  { %2585 = vmatprep.subr.bf16.mxu0 %v6423_v27  ;;  %2626 = vmatprep.subr.bf16.mxu1 %v6424_v44 }
 0x83e   :  { %2586 = vmatpush2.bf16.msra.mxu0 %v6425_v47  ;;  %2627 = vmatpush2.bf16.msra.mxu1 %v6426_v1  ;;  %v6436_v47 = vld [vmem:[#allocation148_spill] sm:$0xff]  ;;  %v6437_v1 = vld [vmem:[#allocation149_spill] sm:$0xff] }
 0x83f   :  { %2587 = vmatprep.subr.bf16.mxu0 %v6427_v55  ;;  %2628 = vmatprep.subr.bf16.mxu1 %v6428_v30  ;;  %v6438_v55 = vld [vmem:[#allocation150_spill] sm:$0xff]  ;;  %v6439_v30 = vld [vmem:[#allocation151_spill] sm:$0xff] }
 0x842   :  { %2588 = vmatpush2.bf16.msra.mxu0 %v6429_v0  ;;  %2629 = vmatpush2.bf16.msra.mxu1 %v6430_v17  ;;  %v6440_v0 = vld [vmem:[#allocation152_spill] sm:$0xff]  ;;  %v6441_v17 = vld [vmem:[#allocation153_spill] sm:$0xff] }
 0x843   :  { %2589 = vmatprep.subr.bf16.mxu0 %v6431_v16  ;;  %2630 = vmatprep.subr.bf16.mxu1 %v6432_v40  ;;  %v6442_v16 = vld [vmem:[#allocation154_spill] sm:$0xff]  ;;  %v6443_v40 = vld [vmem:[#allocation155_spill] sm:$0xff] }
 0x846   :  { %2590 = vmatpush2.bf16.msra.mxu0 %v6433_v13  ;;  %2631 = vmatpush2.bf16.msra.mxu1 %v6434_v59  ;;  %v6444_v13 = vld [vmem:[#allocation156_spill] sm:$0xff]  ;;  %v6445_v59 = vld [vmem:[#allocation157_spill] sm:$0xff] }
 0x847   :  { %2591 = vmatprep.subr.bf16.mxu0 %v6435_v32  ;;  %2632 = vmatprep.subr.bf16.mxu1 %v6436_v47  ;;  %v6446_v32 = vld [vmem:[#allocation158_spill] sm:$0xff]  ;;  %v6447_v47 = vld [vmem:[#allocation19_spill] sm:$0xff] }
 0x84a   :  { %2592 = vmatpush2.bf16.msra.mxu0 %v6437_v1  ;;  %2633 = vmatpush2.bf16.msra.mxu1 %v6438_v55  ;;  %v6448_v1 = vld [vmem:[#allocation21_spill] sm:$0xff] }
 0x84b   :  { %2593 = vmatprep.subr.bf16.mxu0 %v6439_v30  ;;  %2634 = vmatprep.subr.bf16.mxu1 %v6440_v0  ;;  %v6449_v0 = vld [vmem:[#allocation20_spill] sm:$0xff]  ;;  %v6458_v30 = vld [vmem:[#allocation30_spill] sm:$0xff] }
 0x84e   :  { %2594 = vmatpush2.bf16.msra.mxu0 %v6441_v17  ;;  %2635 = vmatpush2.bf16.msra.mxu1 %v6442_v16  ;;  %v6450_v17 = vld [vmem:[#allocation22_spill] sm:$0xff]  ;;  %v6451_v16 = vld [vmem:[#allocation23_spill] sm:$0xff] }
 0x84f   :  { %2595 = vmatprep.subr.bf16.mxu0 %v6443_v40  ;;  %2636 = vmatprep.subr.bf16.mxu1 %v6444_v13  ;;  %v6452_v40 = vld [vmem:[#allocation24_spill] sm:$0xff]  ;;  %v6453_v13 = vld [vmem:[#allocation25_spill] sm:$0xff] }
 0x852   :  { %2596 = vmatpush2.bf16.msra.mxu0 %v6445_v59  ;;  %2637 = vmatpush2.bf16.msra.mxu1 %v6446_v32  ;;  %v6454_v59 = vld [vmem:[#allocation26_spill] sm:$0xff]  ;;  %v6455_v32 = vld [vmem:[#allocation27_spill] sm:$0xff] }
 0x853   :  { %2713 = vmatprep.subr.bf16.mxu0 %v6447_v47  ;;  %2753 = vmatprep.subr.bf16.mxu1 %v6448_v1  ;;  %v6456_v47 = vld [vmem:[#allocation28_spill] sm:$0xff]  ;;  %v6457_v1 = vld [vmem:[#allocation29_spill] sm:$0xff] }
 0x855   :  { %2598 = vmatmul.mubr.bf16.vlgmr.msra.gmra.mxu0 %v5151_v8  ;;  %2639 = vmatmul.mubr.bf16.vlgmr.msra.gmra.mxu1 %v5151_v8  ;;  %v6459_v8 = vld [vmem:[#allocation31_spill] sm:$0xff] }
 0x856   :  { %2714 = vmatpush1.bf16.msra.mxu0 %v6449_v0  ;;  %2754 = vmatpush1.bf16.msra.mxu1 %v6450_v17  ;;  %v6460_v0 = vld [vmem:[#allocation32_spill] sm:$0xff]  ;;  %v6461_v17 = vld [vmem:[#allocation33_spill] sm:$0xff] }
 0x857   :  { %2715 = vmatprep.subr.bf16.mxu0 %v6451_v16  ;;  %2755 = vmatprep.subr.bf16.mxu1 %v6452_v40  ;;  %v6462_v16 = vld [vmem:[#allocation34_spill] sm:$0xff]  ;;  %v6463_v40 = vld [vmem:[#allocation35_spill] sm:$0xff] }
 0x85a   :  { %2716 = vmatpush1.bf16.msra.mxu0 %v6453_v13  ;;  %2756 = vmatpush1.bf16.msra.mxu1 %v6454_v59  ;;  %v6464_v13 = vld [vmem:[#allocation36_spill] sm:$0xff]  ;;  %v6465_v59 = vld [vmem:[#allocation37_spill] sm:$0xff] }
 0x85b   :  { %2717 = vmatprep.subr.bf16.mxu0 %v6455_v32  ;;  %2757 = vmatprep.subr.bf16.mxu1 %v6456_v47  ;;  %v6466_v32 = vld [vmem:[#allocation38_spill] sm:$0xff]  ;;  %v6467_v47 = vld [vmem:[#allocation39_spill] sm:$0xff] }
 0x85e   :  { %2718 = vmatpush1.bf16.msra.mxu0 %v6457_v1  ;;  %2758 = vmatpush1.bf16.msra.mxu1 %v6458_v30  ;;  %v6468_v1 = vld [vmem:[#allocation40_spill] sm:$0xff]  ;;  %v6469_v30 = vld [vmem:[#allocation41_spill] sm:$0xff] }
 0x85f   :  { %2719 = vmatprep.subr.bf16.mxu0 %v6459_v8  ;;  %2759 = vmatprep.subr.bf16.mxu1 %v6460_v0  ;;  %v6470_v8 = vld [vmem:[#allocation42_spill] sm:$0xff]  ;;  %v6471_v0 = vld [vmem:[#allocation43_spill] sm:$0xff] }
 0x862   :  { %2720 = vmatpush1.bf16.msra.mxu0 %v6461_v17  ;;  %2760 = vmatpush1.bf16.msra.mxu1 %v6462_v16  ;;  %v6472_v17 = vld [vmem:[#allocation44_spill] sm:$0xff]  ;;  %v6473_v16 = vld [vmem:[#allocation45_spill] sm:$0xff] }
 0x863   :  { %2721 = vmatprep.subr.bf16.mxu0 %v6463_v40  ;;  %2761 = vmatprep.subr.bf16.mxu1 %v6464_v13  ;;  %v6474_v40 = vld [vmem:[#allocation46_spill] sm:$0xff]  ;;  %v6475_v13 = vld [vmem:[#allocation47_spill] sm:$0xff] }
 0x866   :  { %2722 = vmatpush1.bf16.msra.mxu0 %v6465_v59  ;;  %2762 = vmatpush1.bf16.msra.mxu1 %v6466_v32  ;;  %v6476_v59 = vld [vmem:[#allocation48_spill] sm:$0xff]  ;;  %v6477_v32 = vld [vmem:[#allocation49_spill] sm:$0xff] }
 0x867   :  { %2723 = vmatprep.subr.bf16.mxu0 %v6467_v47  ;;  %2763 = vmatprep.subr.bf16.mxu1 %v6468_v1  ;;  %v6478_v47 = vld [vmem:[#allocation50_spill] sm:$0xff]  ;;  %v6479_v1 = vld [vmem:[#allocation51_spill] sm:$0xff] }
 0x86a   :  { %2724 = vmatpush1.bf16.msra.mxu0 %v6469_v30  ;;  %2764 = vmatpush1.bf16.msra.mxu1 %v6470_v8  ;;  %v6480_v30 = vld [vmem:[#allocation52_spill] sm:$0xff]  ;;  %v6481_v8 = vld [vmem:[#allocation53_spill] sm:$0xff] }
 0x86b   :  { %2725 = vmatprep.subr.bf16.mxu0 %v6471_v0  ;;  %2765 = vmatprep.subr.bf16.mxu1 %v6472_v17  ;;  %v6482_v0 = vld [vmem:[#allocation54_spill] sm:$0xff]  ;;  %v6483_v17 = vld [vmem:[#allocation55_spill] sm:$0xff] }
 0x86e   :  { %2726 = vmatpush1.bf16.msra.mxu0 %v6473_v16  ;;  %2766 = vmatpush1.bf16.msra.mxu1 %v6474_v40  ;;  %v6484_v16 = vld [vmem:[#allocation56_spill] sm:$0xff]  ;;  %v6485_v40 = vld [vmem:[#allocation57_spill] sm:$0xff] }
 0x86f   :  { %2727 = vmatprep.subr.bf16.mxu0 %v6475_v13  ;;  %2767 = vmatprep.subr.bf16.mxu1 %v6476_v59  ;;  %v6486_v13 = vld [vmem:[#allocation58_spill] sm:$0xff]  ;;  %v6487_v59 = vld [vmem:[#allocation59_spill] sm:$0xff] }
 0x872   :  { %2728 = vmatpush1.bf16.msra.mxu0 %v6477_v32  ;;  %2768 = vmatpush1.bf16.msra.mxu1 %v6478_v47  ;;  %v6488_v32 = vld [vmem:[#allocation60_spill] sm:$0xff]  ;;  %v6489_v47 = vld [vmem:[#allocation61_spill] sm:$0xff] }
 0x873   :  { %2729 = vmatprep.subr.bf16.mxu0 %v6479_v1  ;;  %2769 = vmatprep.subr.bf16.mxu1 %v6480_v30  ;;  %v6490_v1 = vld [vmem:[#allocation62_spill] sm:$0xff]  ;;  %v6491_v30 = vld [vmem:[#allocation63_spill] sm:$0xff] }
 0x876   :  { %2730 = vmatpush2.bf16.msra.mxu0 %v6481_v8  ;;  %2770 = vmatpush2.bf16.msra.mxu1 %v6482_v0  ;;  %v6492_v8 = vld [vmem:[#allocation64_spill] sm:$0xff]  ;;  %v6493_v0 = vld [vmem:[#allocation65_spill] sm:$0xff] }
 0x877   :  { %2731 = vmatprep.subr.bf16.mxu0 %v6483_v17  ;;  %2771 = vmatprep.subr.bf16.mxu1 %v6484_v16  ;;  %v6494_v17 = vld [vmem:[#allocation66_spill] sm:$0xff]  ;;  %v6495_v16 = vld [vmem:[#allocation67_spill] sm:$0xff] }
 0x87a   :  { %2732 = vmatpush2.bf16.msra.mxu0 %v6485_v40  ;;  %2772 = vmatpush2.bf16.msra.mxu1 %v6486_v13  ;;  %v6496_v40 = vld [vmem:[#allocation68_spill] sm:$0xff]  ;;  %v6497_v13 = vld [vmem:[#allocation69_spill] sm:$0xff] }
 0x87b   :  { %2733 = vmatprep.subr.bf16.mxu0 %v6487_v59  ;;  %2773 = vmatprep.subr.bf16.mxu1 %v6488_v32  ;;  %v6498_v59 = vld [vmem:[#allocation70_spill] sm:$0xff]  ;;  %v6499_v32 = vld [vmem:[#allocation71_spill] sm:$0xff] }
 0x87e   :  { %2734 = vmatpush2.bf16.msra.mxu0 %v6489_v47  ;;  %2774 = vmatpush2.bf16.msra.mxu1 %v6490_v1  ;;  %v6500_v47 = vld [vmem:[#allocation72_spill] sm:$0xff]  ;;  %v6501_v1 = vld [vmem:[#allocation73_spill] sm:$0xff] }
 0x87f   :  { %2735 = vmatprep.subr.bf16.mxu0 %v6491_v30  ;;  %2775 = vmatprep.subr.bf16.mxu1 %v6492_v8  ;;  %v6502_v30 = vld [vmem:[#allocation74_spill] sm:$0xff]  ;;  %v6503_v8 = vld [vmem:[#allocation75_spill] sm:$0xff] }
 0x882   :  { %2736 = vmatpush2.bf16.msra.mxu0 %v6493_v0  ;;  %2776 = vmatpush2.bf16.msra.mxu1 %v6494_v17  ;;  %v6504_v0 = vld [vmem:[#allocation76_spill] sm:$0xff]  ;;  %v6505_v17 = vld [vmem:[#allocation77_spill] sm:$0xff] }
 0x883   :  { %2737 = vmatprep.subr.bf16.mxu0 %v6495_v16  ;;  %2777 = vmatprep.subr.bf16.mxu1 %v6496_v40  ;;  %v6506_v16 = vld [vmem:[#allocation78_spill] sm:$0xff]  ;;  %v6507_v40 = vld [vmem:[#allocation79_spill] sm:$0xff] }
 0x886   :  { %2738 = vmatpush2.bf16.msra.mxu0 %v6497_v13  ;;  %2778 = vmatpush2.bf16.msra.mxu1 %v6498_v59  ;;  %v6508_v13 = vld [vmem:[#allocation80_spill] sm:$0xff]  ;;  %v6509_v59 = vld [vmem:[#allocation81_spill] sm:$0xff] }
 0x887   :  { %2739 = vmatprep.subr.bf16.mxu0 %v6499_v32  ;;  %2779 = vmatprep.subr.bf16.mxu1 %v6500_v47  ;;  %v6510_v32 = vld [vmem:[#allocation83_spill] sm:$0xff]  ;;  %v6511_v47 = vld [vmem:[#allocation84_spill] sm:$0xff] }
 0x88a   :  { %2740 = vmatpush2.bf16.msra.mxu0 %v6501_v1  ;;  %2780 = vmatpush2.bf16.msra.mxu1 %v6502_v30  ;;  %v6512_v1 = vld [vmem:[#allocation85_spill] sm:$0xff] }
 0x88b   :  { %2741 = vmatprep.subr.bf16.mxu0 %v6503_v8  ;;  %2781 = vmatprep.subr.bf16.mxu1 %v6504_v0 }
 0x88e   :  { %2742 = vmatpush2.bf16.msra.mxu0 %v6505_v17  ;;  %2782 = vmatpush2.bf16.msra.mxu1 %v6506_v16 }
 0x88f   :  { %2743 = vmatprep.subr.bf16.mxu0 %v6507_v40  ;;  %2783 = vmatprep.subr.bf16.mxu1 %v6508_v13  ;;  %v6513_v40 = vld [vmem:[#allocation90_spill] sm:$0xff]  ;;  %v2477_v13 = vmul.f32 %v2473_v31, %v5980_v39 }
 0x890   :  { %v2475_v7 = vmul.f32 %v2473_v31, %v6513_v40 }
 0x892   :  { %2744 = vmatpush2.bf16.msra.mxu0 %v6509_v59  ;;  %2784 = vmatpush2.bf16.msra.mxu1 %v6510_v32  ;;  %v6514_v59 = vld [vmem:[#allocation91_spill] sm:$0xff] }
 0x893   :  { %2793 = vmatprep.subr.bf16.mxu0 %v6511_v47  ;;  %2833 = vmatprep.subr.bf16.mxu1 %v6512_v1  ;;  %v2476_v28 = vmul.f32 %v2473_v31, %v6514_v59  ;;  %v2478_v47 = vmul.f32 %v2473_v31, %v5982_v5 }
 0x8d5   :  { %v2517_v30 = vpop.f32.mrf.mxu0  ;;  %v2558_v8 = vpop.f32.mrf.mxu1 }
 0x8d6   :  { %v2518_v32 = vadd.f32 %v2517_v30, %v2475_v7  ;;  %v2559_v24 = vadd.f32 %v2558_v8, %v2477_v13  ;;  %v3719_v7 = vmov 8   ;;  %v3550_v30 = vld [vmem:[#allocation2] sm:$0xff] }
 0x8d7   :  { %v2519_v55 = vpop.f32.mrf.mxu0  ;;  %v2560_v0 = vpop.f32.mrf.mxu1  ;;  %3275 = vset.pattern.permute.xlu0 %v3719_v7 }
 0x8d8   :  { %v2520_v1 = vadd.f32 %v2519_v55, %v2476_v28  ;;  %v2647_v49 = vadd.f32 %v2518_v32, %v5983_v4  ;;  %v2649_v43 = vadd.f32 %v2559_v24, %v5984_v26  ;;  %2706 = vperm.xlu0 %3275, %v3550_v30  }
 0x8d9   :  { %v2521_v44 = vpop.f32.mrf.mxu0  ;;  %v2562_v17 = vpop.f32.mrf.mxu1 }
 0x8da   :  { %v2561_v44 = vadd.f32 %v2560_v0, %v2478_v47  ;;  %v6515_v17 = vld [vmem:[#allocation87_spill] sm:$0xff]  ;;  %v3185_v63 = vmul.f32 -1.442695, %v2649_v43  ;;  %v6518_v0 = vld [vmem:[#allocation98_spill] sm:$0xff] }
 0x8db   :  { %v2522_v27 = vpop.f32.mrf.mxu0  ;;  %v2563_v16 = vpop.f32.mrf.mxu1  ;;  %v2481_v13 = vmul.f32 %v2473_v31, %v6518_v0 }
 0x8dc   :  { %v2648_v27 = vadd.f32 %v2520_v1, %v6515_v17  ;;  %v3183_v16 = vmul.f32 -1.442695, %v2647_v49  ;;  %v2650_v40 = vadd.f32 %v2561_v44, %v6516_v34  ;;  %v6517_v49 = vld [vmem:[#allocation96_spill] sm:$0xff]  ;;  %v2480_v1 = vmul.f32 %v2473_v31, %v5883_v45 }
 0x8dd   :  { %v2479_v43 = vmul.f32 %v2473_v31, %v6517_v49 }
 0x8de   :  { %v3184_v53 = vmul.f32 -1.442695, %v2648_v27  ;;  %3500 = vpow2.f32 %v3183_v16  ;;  %v3186_v39 = vmul.f32 -1.442695, %v2650_v40 }
 0x8df   :  { %3502 = vpow2.f32 %v3185_v63 }
 0x8e0   :  { %3504 = vpow2.f32 %v3184_v53  ;;  %v2482_v53 = vmul.f32 %v2473_v31, %v4037_v33 }
 0x8e1   :  { %3506 = vpow2.f32 %v3186_v39 }
 0x8eb   :  { %v3501_v4 = vpop.eup %3500 }
 0x8ec   :  { %v3503_v28 = vpop.eup %3502  ;;  %v2673_v24 = vadd.f32 1.0, %v3501_v4 }
 0x8ed   :  { %v3505_v26 = vpop.eup %3504  ;;  %v2675_v55 = vadd.f32 1.0, %v3503_v28 }
 0x8ee   :  { %v3507_v8 = vpop.eup %3506  ;;  %v2674_v32 = vadd.f32 1.0, %v3505_v26  ;;  %3508 = vrcp.f32 %v2673_v24 }
 0x8ef   :  { %3510 = vrcp.f32 %v2675_v55  ;;  %v2676_v16 = vadd.f32 1.0, %v3507_v8 }
 0x8f0   :  { %3512 = vrcp.f32 %v2674_v32 }
 0x915   :  { %v2599_v47 = vpop.f32.mrf.mxu0  ;;  %v2640_v63 = vpop.f32.mrf.mxu1 }
 0x916   :  { %v2600_v44 = vadd.f32 %v2599_v47, %v2479_v43  ;;  %v2641_v27 = vadd.f32 %v2640_v63, %v2481_v13 }
 0x917   :  { %v2601_v40 = vpop.f32.mrf.mxu0  ;;  %v2642_v39 = vpop.f32.mrf.mxu1 }
 0x918   :  { %v2651_v7 = vadd.f32 %v2600_v44, %v4328_v58  ;;  %v2653_v30 = vadd.f32 %v2641_v27, %v4332_v12  ;;  %v2602_v4 = vadd.f32 %v2601_v40, %v2480_v1  ;;  %v2643_v28 = vadd.f32 %v2642_v39, %v2482_v53  ;;  %v3509_v58 = vpop.eup %3508 }
 0x919   :  { %v2603_v26 = vpop.f32.mrf.mxu0  ;;  %v2644_v49 = vpop.f32.mrf.mxu1 }
 0x91a   :  { %v3187_v0 = vmul.f32 -1.442695, %v2651_v7  ;;  %3514 = vtanh.f32 %v2653_v30  ;;  %v2652_v24 = vadd.f32 %v2602_v4, %v4335_v21  ;;  %v2654_v43 = vadd.f32 %v2643_v28, %v4338_v60  ;;  %v3511_v12 = vpop.eup %3510 }
 0x91b   :  { %3516 = vrcp.f32 %v2676_v16  ;;  %v2604_v31 = vpop.f32.mrf.mxu0  ;;  %v2645_v55 = vpop.f32.mrf.mxu1  ;;  %v2693_v63 = vmul.f32 %v3511_v12, %v5144_v38  ;;  %v3720_v12 = vmov 0.0  }
 0x91c   :  { %3518 = vpow2.f32 %v3187_v0  ;;  %v3188_v8 = vmul.f32 -1.442695, %v2652_v24  ;;  %v3513_v13 = vpop.eup %3512  ;;  %v6549_v55 = vld [vmem:[#allocation156_spill] sm:$0xff] }
 0x91d   :  { %3520 = vtanh.f32 %v2654_v43 }
 0x91e   :  { %3522 = vpow2.f32 %v3188_v8  ;;  %v6550_v8 = vld [vmem:[#allocation157_spill] sm:$0xff] }
 0x927   :  { %v3515_v47 = vpop.eup %3514 }
 0x928   :  { %v3517_v32 = vpop.eup %3516  ;;  %v2695_v1 = vmul.f32 %v3515_v47, %v3509_v58  ;;  %v6551_v58 = vld [vmem:[#allocation158_spill] sm:$0xff]  ;;  %v2915_v47 = vld [vmem:[#allocation11 + $0x70] sm:$0xff] }
 0x929   :  { %v3519_v44 = vpop.eup %3518  ;;  %v2694_v16 = vmul.f32 %v3517_v32, %v5148_v46  ;;  %v6548_v46 = vld [vmem:[#allocation155_spill] sm:$0xff] }
 0x92a   :  { %v3521_v27 = vpop.eup %3520  ;;  %v2677_v53 = vadd.f32 1.0, %v3519_v44  ;;  %v2697_v40 = vadd.f32 %v2695_v1, %v2693_v63  ;;  %v2914_v32 = vld [vmem:[#allocation11 + $0x68] sm:$0xff]  ;;  %v2913_v63 = vld [vmem:[#allocation11 + $0x60] sm:$0xff]  ;;  %v2912_v1 = vld [vmem:[#allocation11 + $0x58] sm:$0xff] }
 0x92b   :  { %v3523_v39 = vpop.eup %3522  ;;  %v2696_v7 = vmul.f32 %v3521_v27, %v3513_v13  ;;  %v2916_v13 = vld [vmem:[#allocation11 + $0x78] sm:$0xff]  ;;  %v2911_v44 = vld [vmem:[#allocation11 + $0x50] sm:$0xff]  ;;  %v2910_v27 = vld [vmem:[#allocation11 + $0x48] sm:$0xff] }
 0x92c   :  { %3524 = vrcp.f32 %v2677_v53  ;;  %v2678_v30 = vadd.f32 1.0, %v3523_v39  ;;  %v2909_v53 = vld [vmem:[#allocation11 + $0x40] sm:$0xff]  ;;  %v2907_v39 = vld [vmem:[#allocation11 + $0x30] sm:$0xff] }
 0x92d   :  { %3526 = vtanh.f32 %v2697_v40  ;;  %v5303_v4 = vadd.f32 %v2696_v7, %v2694_v16  ;;  %v2908_v40 = vld [vmem:[#allocation11 + $0x38] sm:$0xff]  ;;  %v2906_v16 = vld [vmem:[#allocation11 + $0x28] sm:$0xff]  ;;  %v2905_v7 = vld [vmem:[#allocation11 + $0x20] sm:$0xff] }
 0x92e   :  { %3528 = vrcp.f32 %v2678_v30  ;;  %v2904_v30 = vld [vmem:[#allocation11 + $0x18] sm:$0xff] }
 0x92f   :  { %3530 = vtanh.f32 %v5303_v4 }
 0x939   :  { %v3525_v28 = vpop.eup %3524 }
 0x93a   :  { %v3527_v26 = vpop.eup %3526 }
 0x93b   :  { %v3529_v38 = vpop.eup %3528  ;;  %v2701_v0 = vmul.f32 %v3527_v26, %v3525_v28  ;;  %v2903_v28 = vld [vmem:[#allocation11 + $0x10] sm:$0xff]  ;;  %v2902_v26 = vld [vmem:[#allocation11 + $0x8] sm:$0xff] }
 0x93c   :  { %v3531_v49 = vpop.eup %3530 }
 0x93d   :  { %v2702_v24 = vmul.f32 %v3531_v49, %v3529_v38  ;;  %v5306_v31 = vpack.c.bf16 %v2701_v0, %v2701_v0  ;;  %v2901_v38 = vld [vmem:[#allocation11] sm:$0xff] }
 0x93f   :  { %v2704_v43 = vpack.c.bf16 %v2702_v24, %v2702_v24 }
 0x941   :  { %2745 = vmatprep.mubr.bf16.mxu0 %v2704_v43  ;;  %2785 = vmatprep.mubr.bf16.mxu1 %v2704_v43 }
 0x942   :  { %2746 = vmatmul.mubr.bf16.vlgmr.msra.gmra.mxu0 %v5306_v31  ;;  %2786 = vmatmul.mubr.bf16.vlgmr.msra.gmra.mxu1 %v5306_v31 }
 0x943   :  { %2794 = vmatpush1.bf16.msra.mxu0 %v3966_v54  ;;  %2834 = vmatpush1.bf16.msra.mxu1 %v5884_v2  ;;  %v6519_v54 = vld [vmem:[#allocation126_spill] sm:$0xff]  ;;  %v6520_v2 = vld [vmem:[#allocation127_spill] sm:$0xff] }
 0x944   :  { %2825 = vmatprep.mubr.bf16.mxu0 %v2704_v43  ;;  %2865 = vmatprep.mubr.bf16.mxu1 %v2704_v43 }
 0x945   :  { %2795 = vmatprep.subr.bf16.mxu0 %v5885_v25  ;;  %2835 = vmatprep.subr.bf16.mxu1 %v5886_v62  ;;  %v6521_v25 = vld [vmem:[#allocation128_spill] sm:$0xff]  ;;  %v6522_v62 = vld [vmem:[#allocation129_spill] sm:$0xff] }
 0x947   :  { %2796 = vmatpush1.bf16.msra.mxu0 %v5887_v52  ;;  %2836 = vmatpush1.bf16.msra.mxu1 %v5888_v61  ;;  %v6523_v52 = vld [vmem:[#allocation130_spill] sm:$0xff]  ;;  %v6524_v61 = vld [vmem:[#allocation131_spill] sm:$0xff] }
 0x948   :  { %2797 = vmatprep.subr.bf16.mxu0 %v5889_v11  ;;  %2837 = vmatprep.subr.bf16.mxu1 %v5890_v48  ;;  %v6525_v11 = vld [vmem:[#allocation132_spill] sm:$0xff]  ;;  %v6526_v48 = vld [vmem:[#allocation133_spill] sm:$0xff] }
 0x94b   :  { %2798 = vmatpush1.bf16.msra.mxu0 %v5891_v50  ;;  %2838 = vmatpush1.bf16.msra.mxu1 %v5892_v56  ;;  %v6527_v50 = vld [vmem:[#allocation134_spill] sm:$0xff]  ;;  %v6528_v56 = vld [vmem:[#allocation135_spill] sm:$0xff] }
 0x94c   :  { %2799 = vmatprep.subr.bf16.mxu0 %v5893_v6  ;;  %2839 = vmatprep.subr.bf16.mxu1 %v5894_v57  ;;  %v6529_v6 = vld [vmem:[#allocation136_spill] sm:$0xff]  ;;  %v6530_v57 = vld [vmem:[#allocation137_spill] sm:$0xff] }
 0x94f   :  { %2800 = vmatpush1.bf16.msra.mxu0 %v5990_v3  ;;  %2840 = vmatpush1.bf16.msra.mxu1 %v5991_v19  ;;  %v6531_v3 = vld [vmem:[#allocation138_spill] sm:$0xff]  ;;  %v6532_v19 = vld [vmem:[#allocation139_spill] sm:$0xff] }
 0x950   :  { %2801 = vmatprep.subr.bf16.mxu0 %v5992_v22  ;;  %2841 = vmatprep.subr.bf16.mxu1 %v5993_v35  ;;  %v6533_v22 = vld [vmem:[#allocation140_spill] sm:$0xff]  ;;  %v6534_v35 = vld [vmem:[#allocation141_spill] sm:$0xff] }
 0x953   :  { %2802 = vmatpush1.bf16.msra.mxu0 %v5994_v37  ;;  %2842 = vmatpush1.bf16.msra.mxu1 %v5995_v41  ;;  %v6535_v37 = vld [vmem:[#allocation142_spill] sm:$0xff]  ;;  %v6536_v41 = vld [vmem:[#allocation143_spill] sm:$0xff] }
 0x954   :  { %2803 = vmatprep.subr.bf16.mxu0 %v5996_v42  ;;  %2843 = vmatprep.subr.bf16.mxu1 %v5997_v18  ;;  %v6537_v42 = vld [vmem:[#allocation144_spill] sm:$0xff]  ;;  %v6538_v18 = vld [vmem:[#allocation145_spill] sm:$0xff] }
 0x957   :  { %2804 = vmatpush1.bf16.msra.mxu0 %v5998_v29  ;;  %2844 = vmatpush1.bf16.msra.mxu1 %v5999_v36  ;;  %v6539_v29 = vld [vmem:[#allocation146_spill] sm:$0xff]  ;;  %v6540_v36 = vld [vmem:[#allocation147_spill] sm:$0xff] }
 0x958   :  { %2805 = vmatprep.subr.bf16.mxu0 %v6000_v14  ;;  %2845 = vmatprep.subr.bf16.mxu1 %v6096_v10  ;;  %v6541_v14 = vld [vmem:[#allocation148_spill] sm:$0xff] }
 0x959   :  { %v6545_v10 = vld [vmem:[#allocation152_spill] sm:$0xff] }
 0x95b   :  { %2806 = vmatpush1.bf16.msra.mxu0 %v6097_v9  ;;  %2846 = vmatpush1.bf16.msra.mxu1 %v6098_v51  ;;  %v6546_v9 = vld [vmem:[#allocation153_spill] sm:$0xff]  ;;  %v6547_v51 = vld [vmem:[#allocation154_spill] sm:$0xff] }
 0x95c   :  { %2807 = vmatprep.subr.bf16.mxu0 %v6004_v15  ;;  %2847 = vmatprep.subr.bf16.mxu1 %v6005_v20  ;;  %v6542_v15 = vld [vmem:[#allocation149_spill] sm:$0xff]  ;;  %v6543_v20 = vld [vmem:[#allocation150_spill] sm:$0xff] }
 0x95f   :  { %2808 = vmatpush1.bf16.msra.mxu0 %v6006_v23  ;;  %2848 = vmatpush1.bf16.msra.mxu1 %v6519_v54  ;;  %v6544_v23 = vld [vmem:[#allocation151_spill] sm:$0xff] }
 0x960   :  { %2809 = vmatprep.subr.bf16.mxu0 %v6520_v2  ;;  %2849 = vmatprep.subr.bf16.mxu1 %v6521_v25 }
 0x963   :  { %2810 = vmatpush2.bf16.msra.mxu0 %v6522_v62  ;;  %2850 = vmatpush2.bf16.msra.mxu1 %v6523_v52  ;;  %v2707_v62 = vpop.permute.xlu0 %2706 }
 0x964   :  { %2811 = vmatprep.subr.bf16.mxu0 %v6524_v61  ;;  %2851 = vmatprep.subr.bf16.mxu1 %v6525_v11  ;;  %v2710_v52 = vmul.f32 %v2707_v62, %v5982_v5  ;;  %v2709_v61 = vmul.f32 %v2707_v62, %v6514_v59  ;;  %v2712_v5 = vmul.f32 %v2707_v62, %v4037_v33 }
 0x967   :  { %2812 = vmatpush2.bf16.msra.mxu0 %v6526_v48  ;;  %2852 = vmatpush2.bf16.msra.mxu1 %v6527_v50 }
 0x968   :  { %2813 = vmatprep.subr.bf16.mxu0 %v6528_v56  ;;  %2853 = vmatprep.subr.bf16.mxu1 %v6529_v6 }
 0x96b   :  { %2814 = vmatpush2.bf16.msra.mxu0 %v6530_v57  ;;  %2854 = vmatpush2.bf16.msra.mxu1 %v6531_v3 }
 0x96c   :  { %2815 = vmatprep.subr.bf16.mxu0 %v6532_v19  ;;  %2855 = vmatprep.subr.bf16.mxu1 %v6533_v22 }
 0x96f   :  { %2816 = vmatpush2.bf16.msra.mxu0 %v6534_v35  ;;  %2856 = vmatpush2.bf16.msra.mxu1 %v6535_v37 }
 0x970   :  { %2817 = vmatprep.subr.bf16.mxu0 %v6536_v41  ;;  %2857 = vmatprep.subr.bf16.mxu1 %v6537_v42  ;;  %v2711_v41 = vmul.f32 %v2707_v62, %v5883_v45 }
 0x973   :  { %2818 = vmatpush2.bf16.msra.mxu0 %v6538_v18  ;;  %2858 = vmatpush2.bf16.msra.mxu1 %v6539_v29 }
 0x974   :  { %2819 = vmatprep.subr.bf16.mxu0 %v6540_v36  ;;  %2859 = vmatprep.subr.bf16.mxu1 %v6541_v14 }
 0x977   :  { %2820 = vmatpush2.bf16.msra.mxu0 %v6542_v15  ;;  %2860 = vmatpush2.bf16.msra.mxu1 %v6543_v20 }
 0x978   :  { %2821 = vmatprep.subr.bf16.mxu0 %v6544_v23  ;;  %2861 = vmatprep.subr.bf16.mxu1 %v6545_v10 }
 0x97b   :  { %2822 = vmatpush2.bf16.msra.mxu0 %v6546_v9  ;;  %2862 = vmatpush2.bf16.msra.mxu1 %v6547_v51 }
 0x97c   :  { %2823 = vmatprep.subr.bf16.mxu0 %v6548_v46  ;;  %2863 = vmatprep.subr.bf16.mxu1 %v6549_v55 }
 0x97f   :  { %2824 = vmatpush2.bf16.msra.mxu0 %v6550_v8  ;;  %2864 = vmatpush2.bf16.msra.mxu1 %v6551_v58 }
 0x980   :  { %3210 = vmatprep.subr.mxu0 %v3720_v12 }
 0x982   :  { %2826 = vmatmul.mubr.bf16.vlgmr.msra.gmra.mxu0 %v5306_v31  ;;  %2866 = vmatmul.mubr.bf16.vlgmr.msra.gmra.mxu1 %v5306_v31 }
 0x983   :  { %3211 = vmatpush3.msra.mxu0 %v2916_v13  ;;  %3242 = vmatprep.mubr.msk.f32.mxu0 %vm3721_vm0, %v3720_v12  ;;  %v3192_v13 = vld [vmem:[%s5395_s6] ss:$0 sm:$0xff] }
 0x984   :  { %3212 = vmatprep.subr.mxu0 %v3720_v12 }
 0x985   :  { %3213 = vmatpush3.msra.mxu0 %v2915_v47 }
 0x986   :  { %3214 = vmatprep.subr.mxu0 %v3720_v12 }
 0x987   :  { %3215 = vmatpush3.msra.mxu0 %v2914_v32 }
 0x988   :  { %3216 = vmatprep.subr.mxu0 %v3720_v12 }
 0x989   :  { %3217 = vmatpush3.msra.mxu0 %v2913_v63 }
 0x98a   :  { %3218 = vmatprep.subr.mxu0 %v3720_v12 }
 0x98b   :  { %3219 = vmatpush3.msra.mxu0 %v2912_v1 }
 0x98c   :  { %3220 = vmatprep.subr.mxu0 %v3720_v12 }
 0x98d   :  { %3221 = vmatpush3.msra.mxu0 %v2911_v44 }
 0x98e   :  { %3222 = vmatprep.subr.mxu0 %v3720_v12 }
 0x98f   :  { %3223 = vmatpush3.msra.mxu0 %v2910_v27 }
 0x990   :  { %3224 = vmatprep.subr.mxu0 %v3720_v12 }
 0x991   :  { %3225 = vmatpush3.msra.mxu0 %v2909_v53 }
 0x992   :  { %3226 = vmatprep.subr.mxu0 %v3720_v12 }
 0x993   :  { %3227 = vmatpush3.msra.mxu0 %v2908_v40 }
 0x994   :  { %3228 = vmatprep.subr.mxu0 %v3720_v12 }
 0x995   :  { %3229 = vmatpush3.msra.mxu0 %v2907_v39 }
 0x996   :  { %3230 = vmatprep.subr.mxu0 %v3720_v12 }
 0x997   :  { %3231 = vmatpush3.msra.mxu0 %v2906_v16 }
 0x998   :  { %3232 = vmatprep.subr.mxu0 %v3720_v12 }
 0x999   :  { %3233 = vmatpush3.msra.mxu0 %v2905_v7 }
 0x99a   :  { %3234 = vmatprep.subr.mxu0 %v3720_v12 }
 0x99b   :  { %3235 = vmatpush3.msra.mxu0 %v2904_v30 }
 0x99c   :  { %3236 = vmatprep.subr.mxu0 %v3720_v12 }
 0x99d   :  { %3237 = vmatpush3.msra.mxu0 %v2903_v28 }
 0x99e   :  { %3238 = vmatprep.subr.mxu0 %v3720_v12 }
 0x99f   :  { %3239 = vmatpush3.msra.mxu0 %v2902_v26 }
 0x9a0   :  { %3240 = vmatprep.subr.mxu0 %v3720_v12 }
 0x9a1   :  { %3241 = vmatpush3.msra.mxu0 %v2901_v38 }
 0xa02   :  { %v2747_v49 = vpop.f32.mrf.mxu0  ;;  %v2787_v0 = vpop.f32.mrf.mxu1 }
 0xa04   :  { %v2748_v24 = vpop.f32.mrf.mxu0  ;;  %v2788_v43 = vpop.f32.mrf.mxu1 }
 0xa05   :  { %v2789_v11 = vadd.f32 %v2788_v43, %v2710_v52  ;;  %v2749_v48 = vadd.f32 %v2748_v24, %v2709_v61 }
 0xa06   :  { %v2750_v31 = vpop.f32.mrf.mxu0  ;;  %v2790_v54 = vpop.f32.mrf.mxu1 }
 0xa07   :  { %v2874_v50 = vadd.f32 %v2789_v11, %v6516_v34  ;;  %v2873_v56 = vadd.f32 %v2749_v48, %v6515_v17 }
 0xa08   :  { %v2751_v2 = vpop.f32.mrf.mxu0  ;;  %v2791_v25 = vpop.f32.mrf.mxu1 }
 0xa09   :  { %v3190_v6 = vmul.f32 -1.442695, %v2874_v50  ;;  %v3189_v57 = vmul.f32 -1.442695, %v2873_v56 }
 0xa0b   :  { %3532 = vpow2.f32 %v3190_v6 }
 0xa0c   :  { %3534 = vpow2.f32 %v3189_v57 }
 0xa18   :  { %v3533_v3 = vpop.eup %3532 }
 0xa19   :  { %v3535_v19 = vpop.eup %3534  ;;  %v2887_v37 = vadd.f32 1.0, %v3533_v3 }
 0xa1a   :  { %v2886_v59 = vadd.f32 1.0, %v3535_v19 }
 0xa1b   :  { %3536 = vrcp.f32 %v2887_v37 }
 0xa1c   :  { %3538 = vrcp.f32 %v2886_v59 }
 0xa28   :  { %v3537_v45 = vpop.eup %3536 }
 0xa29   :  { %v3539_v33 = vpop.eup %3538  ;;  %v2896_v51 = vmul.f32 %v3537_v45, %v5303_v4 }
 0xa42   :  { %v2827_v22 = vpop.f32.mrf.mxu0  ;;  %v2867_v35 = vpop.f32.mrf.mxu1 }
 0xa44   :  { %v2828_v42 = vpop.f32.mrf.mxu0  ;;  %v2868_v18 = vpop.f32.mrf.mxu1 }
 0xa45   :  { %v2829_v29 = vadd.f32 %v2828_v42, %v2711_v41  ;;  %v2869_v34 = vadd.f32 %v2868_v18, %v2712_v5 }
 0xa46   :  { %v2830_v36 = vpop.f32.mrf.mxu0  ;;  %v2870_v17 = vpop.f32.mrf.mxu1 }
 0xa47   :  { %v2875_v14 = vadd.f32 %v2829_v29, %v4335_v21  ;;  %v2876_v15 = vadd.f32 %v2869_v34, %v4338_v60 }
 0xa48   :  { %v2831_v20 = vpop.f32.mrf.mxu0  ;;  %v2871_v23 = vpop.f32.mrf.mxu1 }
 0xa49   :  { %v3191_v10 = vmul.f32 -1.442695, %v2875_v14  ;;  %3540 = vtanh.f32 %v2876_v15 }
 0xa4b   :  { %3542 = vpow2.f32 %v3191_v10 }
 0xa56   :  { %v3541_v9 = vpop.eup %3540 }
 0xa57   :  { %v2897_v46 = vmul.f32 %v3541_v9, %v3539_v33 }
 0xa58   :  { %v3543_v55 = vpop.eup %3542 }
 0xa59   :  { %v2888_v8 = vadd.f32 1.0, %v3543_v55  ;;  %v2898_v58 = vadd.f32 %v2897_v46, %v2896_v51 }
 0xa5b   :  { %3544 = vrcp.f32 %v2888_v8 }
 0xa5c   :  { %3546 = vtanh.f32 %v2898_v58 }
 0xa68   :  { %v3545_v21 = vpop.eup %3544 }
 0xa69   :  { %v3547_v12 = vpop.eup %3546 }
 0xa6a   :  { %v2900_v60 = vmul.f32 %v3547_v12, %v3545_v21 }
 0xa6c   :  { %3243 = vmatmul.mubr.f32.vlgmr.msra.gmra.mxu0 %v2900_v60 }
 0xb2c   :  { %v2990_v47 = vpop.f32.mrf.mxu0 }
 0xb2d   :  { %v2991_v32 = vadd.f32 %v3192_v13, %v2990_v47 }
 0xb2e   :  { %v3244_v4 = vpop.f32.mrf.mxu0 }
 0xb2f   :  { %2994 = vst [vmem:[#allocation13] sm:$0xff] %v2991_v32 }
 0xb30   :  { %3682 = shalt.err (!%p3679_p6)
}
 0xb31   :  { %3004 = dma.vmem_to_hbm [thread:$0]  %s3002_s9, 128, %s5396_s7, [#allocation4]  }
 0xb32   :  { %3699 = dma.done.wait [#allocation4], 128  }
 0xb33   :  { %3700 = vsyncadd [#allocation4], 4294967168 }
 0xb34   :  { %3008 = vsyncpa [#allocation3], 1 }
 0xb35   :  { %3009 = vsyncpa [#allocation6], 1 }
 0xb36   :  { %3010 = vsyncpa [#allocation9], 1 }
 0xb37   :  { %3011 = vsyncpa [#allocation12], 1 }
 0xb38   :  { %3012 = vsyncpa [#allocation4], 1 }

</bundles_post_ra>
